<compile_context>
chip_gen: v5e
topology: v5e:2x2
jax: 0.10.0
libtpu: 0.0.40
codegen_flags: <defaults>
</compile_context>

<pallas_src>
import numpy as np

import jax
import jax.numpy as jnp
from jax.experimental import pallas as pl
from jax.experimental.pallas import tpu as pltpu

LANE = 128     # lane width (last-dim alignment)
SUBLANE = 8    # f32 sublane count (second-to-last-dim alignment)


def _ru(x, m):
    return ((x + m - 1) // m) * m


# ------------------------------ fused kernel ----------------------------------
def _make_fused_kernel(T, B_pad, IN_pad, H_pad, num_layers):
    def kernel(x_ref, wih_ref, whh_ref, b_ref, wout_ref, bout_ref,
               out_ref, seq_sc, gx_sc):
        # seq_sc carries layer l's hidden sequence to layer l+1 (all in VMEM).
        if num_layers > 1:
            seq_sc[...] = jnp.zeros_like(seq_sc)

        h = jnp.zeros((B_pad, H_pad), jnp.float32)
        for layer in range(num_layers):
            # ---- (1) fat input projection over all T timesteps (one MXU call) ----
            if layer == 0:
                src = x_ref[...]                                  # (T*B_pad, IN_pad) bf16
            else:
                src = seq_sc[...].astype(jnp.bfloat16)            # cast only matmul operand
            gx_sc[...] = (jnp.dot(src, wih_ref[layer],
                                  preferred_element_type=jnp.float32)
                          + b_ref[layer])                         # (T*B_pad, 4*H_pad) f32

            # ---- (2) sequential recurrence: only h @ W_hh^T left per step ----
            w_hh = whh_ref[layer]                                 # (H_pad, 4*H_pad) bf16
            h = jnp.zeros((B_pad, H_pad), jnp.float32)
            c = jnp.zeros((B_pad, H_pad), jnp.float32)
            for t in range(T):                                    # static unroll (small T)
                r0 = t * B_pad
                gates = (gx_sc[r0:r0 + B_pad, :]
                         + jnp.dot(h.astype(jnp.bfloat16), w_hh,
                                   preferred_element_type=jnp.float32))
                # lane-aligned gate slices (each gate = whole 128-lane tiles)
                i = jax.nn.sigmoid(gates[:, 0 * H_pad:1 * H_pad])
                f = jax.nn.sigmoid(gates[:, 1 * H_pad:2 * H_pad])
                g = jnp.tanh(gates[:, 2 * H_pad:3 * H_pad])
                o = jax.nn.sigmoid(gates[:, 3 * H_pad:4 * H_pad])
                c = f * c + i * g
                h = o * jnp.tanh(c)
                if layer < num_layers - 1:     # last layer only needs the final h
                    seq_sc[r0:r0 + B_pad, 0:H_pad] = h

        # ---- (3) fused head: ReLU(h_last) @ W_out^T + b_out ----
        hr = jnp.maximum(h, 0.0)
        out_ref[...] = (jnp.dot(hr.astype(jnp.bfloat16), wout_ref[...],
                                preferred_element_type=jnp.float32)
                        + bout_ref[...]).astype(out_ref.dtype)

    return kernel


# ------------------------------ model wrapper ----------------------------------
def make_lstm_forward(output_size, input_size, hidden_size, num_layers):
    D, H, O, L = input_size, hidden_size, output_size, num_layers
    H_pad = _ru(H, LANE)
    O_pad = _ru(O, LANE)
    IN_pad = _ru(max(D, H if L > 1 else 1), LANE)

    @jax.jit
    def forward(params, x):
        B, T, _ = x.shape
        B_pad = _ru(B, SUBLANE)

        # Tiny one-time prep (a few KB): time-major, pad batch -> 8 sublanes and
        # features -> 128 lanes, flatten to (T*B_pad, IN_pad), cast to bf16.
        xt = jnp.transpose(x.astype(jnp.float32), (1, 0, 2))          # (T, B, D)
        xt = jnp.pad(xt, ((0, 0), (0, B_pad - B), (0, IN_pad - D)))
        x2d = xt.reshape(T * B_pad, IN_pad).astype(jnp.bfloat16)

        kernel = _make_fused_kernel(T, B_pad, IN_pad, H_pad, L)
        out_pad = pl.pallas_call(
            kernel,
            out_shape=jax.ShapeDtypeStruct((B_pad, O_pad), jnp.float32),
            grid_spec=pltpu.PrefetchScalarGridSpec(
                num_scalar_prefetch=0,
                grid=(1,),                       # single invocation; loops live inside
                in_specs=[
                    pl.BlockSpec((T * B_pad, IN_pad), lambda i: (0, 0)),        # x (flattened)
                    pl.BlockSpec((L, IN_pad, 4 * H_pad), lambda i: (0, 0, 0)),  # W_ih^T (stacked)
                    pl.BlockSpec((L, H_pad, 4 * H_pad), lambda i: (0, 0, 0)),   # W_hh^T (stacked)
                    pl.BlockSpec((L, 1, 4 * H_pad), lambda i: (0, 0, 0)),       # b_ih + b_hh
                    pl.BlockSpec((H_pad, O_pad), lambda i: (0, 0)),             # W_out^T
                    pl.BlockSpec((1, O_pad), lambda i: (0, 0)),                 # b_out
                ],
                out_specs=pl.BlockSpec((B_pad, O_pad), lambda i: (0, 0)),
                scratch_shapes=[
                    pltpu.VMEM((T * B_pad, IN_pad), jnp.float32),     # layer->layer hidden seq
                    pltpu.VMEM((T * B_pad, 4 * H_pad), jnp.float32),  # precomputed x-projection
                ],
            ),
            compiler_params=pltpu.CompilerParams(
                dimension_semantics=("arbitrary",)),
        )(x2d, params["w_ih"], params["w_hh"], params["b"],
          params["w_out"], params["b_out"])
        return out_pad[:B, :O]

    return forward


# ------------------------------- parameters ------------------------------------
def init_params(key, output_size, input_size, hidden_size, num_layers,
                mm_dtype=jnp.bfloat16):
    """nn.LSTM / nn.Linear style init (uniform +-1/sqrt(H)), returned both as
    padded/stacked kernel params and as unpadded f32 reference params."""
    D, H, O, L = input_size, hidden_size, output_size, num_layers
    H_pad = _ru(H, LANE)
    O_pad = _ru(O, LANE)
    IN_pad = _ru(max(D, H if L > 1 else 1), LANE)
    bound = 1.0 / float(np.sqrt(H))
    keys = jax.random.split(key, 4 * L + 2)

    w_ih_p = jnp.zeros((L, IN_pad, 4 * H_pad), jnp.float32)
    w_hh_p = jnp.zeros((L, H_pad, 4 * H_pad), jnp.float32)
    b_p = jnp.zeros((L, 1, 4 * H_pad), jnp.float32)
    ref_layers = []
    ki = 0
    for l in range(L):
        d_in = D if l == 0 else H
        w_ih = jax.random.uniform(keys[ki], (4 * H, d_in), jnp.float32, -bound, bound); ki += 1
        w_hh = jax.random.uniform(keys[ki], (4 * H, H), jnp.float32, -bound, bound); ki += 1
        b_ih = jax.random.uniform(keys[ki], (4 * H,), jnp.float32, -bound, bound); ki += 1
        b_hh = jax.random.uniform(keys[ki], (4 * H,), jnp.float32, -bound, bound); ki += 1
        ref_layers.append(dict(w_ih=w_ih, w_hh=w_hh, b=b_ih + b_hh))
        wiT, whT, bsum = w_ih.T, w_hh.T, b_ih + b_hh
        # place each PyTorch gate block (i,f,g,o) at a lane-aligned offset g*H_pad
        for g in range(4):
            w_ih_p = w_ih_p.at[l, :d_in, g * H_pad:g * H_pad + H].set(wiT[:, g * H:(g + 1) * H])
            w_hh_p = w_hh_p.at[l, :H, g * H_pad:g * H_pad + H].set(whT[:, g * H:(g + 1) * H])
            b_p = b_p.at[l, 0, g * H_pad:g * H_pad + H].set(bsum[g * H:(g + 1) * H])

    w_out = jax.random.uniform(keys[ki], (O, H), jnp.float32, -bound, bound); ki += 1
    b_out = jax.random.uniform(keys[ki], (O,), jnp.float32, -bound, bound)
    w_out_p = jnp.zeros((H_pad, O_pad), jnp.float32).at[:H, :O].set(w_out.T)
    b_out_p = jnp.zeros((1, O_pad), jnp.float32).at[0, :O].set(b_out)

    params = {
        "w_ih": w_ih_p.astype(mm_dtype),      # bf16 matmul operands
        "w_hh": w_hh_p.astype(mm_dtype),
        "b": b_p,                             # f32 (added post-matmul)
        "w_out": w_out_p.astype(mm_dtype),
        "b_out": b_out_p,
    }
    ref = {"layers": ref_layers, "w_out": w_out, "b_out": b_out}
    return params, ref


# -------------------------- pure-JAX f32 reference ------------------------------
def lstm_reference(ref, x):
    B, T, _ = x.shape
    inp = x.astype(jnp.float32)
    for p in ref["layers"]:
        H = p["w_hh"].shape[1]
        h = jnp.zeros((B, H), jnp.float32)
        c = jnp.zeros((B, H), jnp.float32)
        outs = []
        for t in range(T):
            gates = inp[:, t, :] @ p["w_ih"].T + h @ p["w_hh"].T + p["b"]
            i = jax.nn.sigmoid(gates[:, 0 * H:1 * H])
            f = jax.nn.sigmoid(gates[:, 1 * H:2 * H])
            g = jnp.tanh(gates[:, 2 * H:3 * H])
            o = jax.nn.sigmoid(gates[:, 3 * H:4 * H])
            c = f * c + i * g
            h = o * jnp.tanh(c)
            outs.append(h)
        inp = jnp.stack(outs, axis=1)
    hl = jnp.maximum(inp[:, -1, :], 0.0)
    return hl @ ref["w_out"].T + ref["b_out"]


# ------------------------------------ main --------------------------------------
if __name__ == "__main__":
    B, T = 2, 8
    input_size, hidden_size, output_size, num_layers = 4, 32, 4, 2

    key = jax.random.PRNGKey(0)
    k_params, k_x = jax.random.split(key)
    params, ref_params = init_params(k_params, output_size, input_size,
                                     hidden_size, num_layers)
    x = jax.random.normal(k_x, (B, T, input_size), dtype=jnp.float32)

    forward = make_lstm_forward(output_size, input_size, hidden_size, num_layers)
    out = forward(params, x)
    jax.block_until_ready(out)
    assert out.shape == (B, output_size)

    # Numerics check vs pure-JAX f32 reference (kernel uses bf16 matmul operands).
    out_ref = lstm_reference(ref_params, x)
    err = float(jnp.max(jnp.abs(out - out_ref)))
    assert err < 5e-2, f"max abs diff vs reference too large: {err}"
    print("KERNEL_OK")
</pallas_src>

<mosaic_0001>
module attributes {stable_mosaic.version = 11 : i64} {
  func.func @kernel(%arg0: i32, %arg1: memref<64x128xbf16, #tpu.memory_space<vmem>>, %arg2: memref<2x128x512xbf16, #tpu.memory_space<vmem>>, %arg3: memref<2x128x512xbf16, #tpu.memory_space<vmem>>, %arg4: memref<2x1x512xf32, #tpu.memory_space<vmem>>, %arg5: memref<128x128xbf16, #tpu.memory_space<vmem>>, %arg6: memref<1x128xf32, #tpu.memory_space<vmem>>, %arg7: memref<8x128xf32, #tpu.memory_space<vmem>>, %arg8: memref<64x128xf32, #tpu.memory_space<vmem>>, %arg9: memref<64x512xf32, #tpu.memory_space<vmem>>) attributes {dimension_semantics = [#tpu.dimension_semantics<arbitrary>], iteration_bounds = array<i64: 1>, scalar_prefetch = 0 : i64, scratch_operands = 2 : i64, tpu.core_type = #tpu.core_type<tc>, window_params = [{pipeline_mode = #tpu.pipeline_mode<synchronous>, transform_indices = @transform_0, window_bounds = array<i64: 64, 128>}, {pipeline_mode = #tpu.pipeline_mode<synchronous>, transform_indices = @transform_1, window_bounds = array<i64: 2, 128, 512>}, {pipeline_mode = #tpu.pipeline_mode<synchronous>, transform_indices = @transform_2, window_bounds = array<i64: 2, 128, 512>}, {pipeline_mode = #tpu.pipeline_mode<synchronous>, transform_indices = @transform_3, window_bounds = array<i64: 2, 1, 512>}, {pipeline_mode = #tpu.pipeline_mode<synchronous>, transform_indices = @transform_4, window_bounds = array<i64: 128, 128>}, {pipeline_mode = #tpu.pipeline_mode<synchronous>, transform_indices = @transform_5, window_bounds = array<i64: 1, 128>}, {pipeline_mode = #tpu.pipeline_mode<synchronous>, transform_indices = @transform_6, window_bounds = array<i64: 8, 128>}]} {
    %cst = arith.constant 0.000000e+00 : f32
    %0 = vector.broadcast %cst : f32 to vector<64x128xf32>
    %c0 = arith.constant 0 : index
    %c0_0 = arith.constant 0 : index
    %1 = vector.load %arg8[%c0, %c0_0] : memref<64x128xf32, #tpu.memory_space<vmem>>, vector<64x128xf32>
    tpu.vector_store %arg8[%c0, %c0_0], %0 {strides = array<i32>} : memref<64x128xf32, #tpu.memory_space<vmem>>, vector<64x128xf32>,
    %c0_1 = arith.constant 0 : index
    %c0_2 = arith.constant 0 : index
    %2 = vector.load %arg1[%c0_1, %c0_2] : memref<64x128xbf16, #tpu.memory_space<vmem>>, vector<64x128xbf16>
    %c0_3 = arith.constant 0 : index
    %c0_4 = arith.constant 0 : index
    %c0_5 = arith.constant 0 : index
    %3 = vector.load %arg2[%c0_3, %c0_4, %c0_5] : memref<2x128x512xbf16, #tpu.memory_space<vmem>>, vector<1x128x512xbf16>
    %4 = vector.shape_cast %3 : vector<1x128x512xbf16> to vector<128x512xbf16>
    %cst_6 = arith.constant dense<0.000000e+00> : vector<64x512xf32>
    %5 = tpu.matmul %2, %4, %cst_6 {dimension_numbers = #tpu.dot_dimension_numbers<[1], [0], [0], [1], [0, 0, 1, 1], [], []>} : vector<64x128xbf16>, vector<128x512xbf16>, vector<64x512xf32> -> vector<64x512xf32>
    %c0_7 = arith.constant 0 : index
    %c0_8 = arith.constant 0 : index
    %c0_9 = arith.constant 0 : index
    %6 = vector.load %arg4[%c0_7, %c0_8, %c0_9] : memref<2x1x512xf32, #tpu.memory_space<vmem>>, vector<1x1x512xf32>
    %7 = vector.shape_cast %6 : vector<1x1x512xf32> to vector<1x512xf32>
    %8 = vector.broadcast %7 : vector<1x512xf32> to vector<64x512xf32>
    %9 = arith.addf %5, %8 : vector<64x512xf32>
    %c0_10 = arith.constant 0 : index
    %c0_11 = arith.constant 0 : index
    %10 = vector.load %arg9[%c0_10, %c0_11] : memref<64x512xf32, #tpu.memory_space<vmem>>, vector<64x512xf32>
    tpu.vector_store %arg9[%c0_10, %c0_11], %9 {strides = array<i32>} : memref<64x512xf32, #tpu.memory_space<vmem>>, vector<64x512xf32>,
    %c0_12 = arith.constant 0 : index
    %c0_13 = arith.constant 0 : index
    %c0_14 = arith.constant 0 : index
    %11 = vector.load %arg3[%c0_12, %c0_13, %c0_14] : memref<2x128x512xbf16, #tpu.memory_space<vmem>>, vector<1x128x512xbf16>
    %12 = vector.shape_cast %11 : vector<1x128x512xbf16> to vector<128x512xbf16>
    %cst_15 = arith.constant 0.000000e+00 : f32
    %13 = vector.broadcast %cst_15 : f32 to vector<8x128xf32>
    %cst_16 = arith.constant 0.000000e+00 : f32
    %14 = vector.broadcast %cst_16 : f32 to vector<8x128xf32>
    %c0_17 = arith.constant 0 : index
    %c0_18 = arith.constant 0 : index
    %15 = vector.load %arg9[%c0_17, %c0_18] : memref<64x512xf32, #tpu.memory_space<vmem>>, vector<8x512xf32>
    %16 = arith.truncf %13 : vector<8x128xf32> to vector<8x128xbf16>
    %cst_19 = arith.constant dense<0.000000e+00> : vector<8x512xf32>
    %17 = tpu.matmul %16, %12, %cst_19 {dimension_numbers = #tpu.dot_dimension_numbers<[1], [0], [0], [1], [0, 0, 1, 1], [], []>} : vector<8x128xbf16>, vector<128x512xbf16>, vector<8x512xf32> -> vector<8x512xf32>
    %18 = arith.addf %15, %17 : vector<8x512xf32>
    %19 = vector.extract_strided_slice %18 {offsets = [0, 0], sizes = [8, 128], strides = [1, 1]} : vector<8x512xf32> to vector<8x128xf32>
    %20 = arith.negf %19 : vector<8x128xf32>
    %21 = math.exp %20 : vector<8x128xf32>
    %cst_20 = arith.constant 1.000000e+00 : f32
    %22 = vector.broadcast %cst_20 : f32 to vector<8x128xf32>
    %23 = arith.addf %22, %21 : vector<8x128xf32>
    %24 = arith.divf %22, %23 : vector<8x128xf32>
    %25 = vector.extract_strided_slice %18 {offsets = [0, 128], sizes = [8, 128], strides = [1, 1]} : vector<8x512xf32> to vector<8x128xf32>
    %26 = arith.negf %25 : vector<8x128xf32>
    %27 = math.exp %26 : vector<8x128xf32>
    %cst_21 = arith.constant 1.000000e+00 : f32
    %28 = vector.broadcast %cst_21 : f32 to vector<8x128xf32>
    %29 = arith.addf %28, %27 : vector<8x128xf32>
    %30 = arith.divf %28, %29 : vector<8x128xf32>
    %31 = vector.extract_strided_slice %18 {offsets = [0, 256], sizes = [8, 128], strides = [1, 1]} : vector<8x512xf32> to vector<8x128xf32>
    %32 = math.tanh %31 : vector<8x128xf32>
    %33 = vector.extract_strided_slice %18 {offsets = [0, 384], sizes = [8, 128], strides = [1, 1]} : vector<8x512xf32> to vector<8x128xf32>
    %34 = arith.negf %33 : vector<8x128xf32>
    %35 = math.exp %34 : vector<8x128xf32>
    %cst_22 = arith.constant 1.000000e+00 : f32
    %36 = vector.broadcast %cst_22 : f32 to vector<8x128xf32>
    %37 = arith.addf %36, %35 : vector<8x128xf32>
    %38 = arith.divf %36, %37 : vector<8x128xf32>
    %39 = arith.mulf %30, %14 : vector<8x128xf32>
    %40 = arith.mulf %24, %32 : vector<8x128xf32>
    %41 = arith.addf %39, %40 : vector<8x128xf32>
    %42 = math.tanh %41 : vector<8x128xf32>
    %43 = arith.mulf %38, %42 : vector<8x128xf32>
    %c0_23 = arith.constant 0 : index
    %c0_24 = arith.constant 0 : index
    %44 = vector.load %arg8[%c0_23, %c0_24] : memref<64x128xf32, #tpu.memory_space<vmem>>, vector<8x128xf32>
    tpu.vector_store %arg8[%c0_23, %c0_24], %43 {strides = array<i32>} : memref<64x128xf32, #tpu.memory_space<vmem>>, vector<8x128xf32>,
    %c8 = arith.constant 8 : index
    %c0_25 = arith.constant 0 : index
    %45 = vector.load %arg9[%c8, %c0_25] : memref<64x512xf32, #tpu.memory_space<vmem>>, vector<8x512xf32>
    %46 = arith.truncf %43 : vector<8x128xf32> to vector<8x128xbf16>
    %cst_26 = arith.constant dense<0.000000e+00> : vector<8x512xf32>
    %47 = tpu.matmul %46, %12, %cst_26 {dimension_numbers = #tpu.dot_dimension_numbers<[1], [0], [0], [1], [0, 0, 1, 1], [], []>} : vector<8x128xbf16>, vector<128x512xbf16>, vector<8x512xf32> -> vector<8x512xf32>
    %48 = arith.addf %45, %47 : vector<8x512xf32>
    %49 = vector.extract_strided_slice %48 {offsets = [0, 0], sizes = [8, 128], strides = [1, 1]} : vector<8x512xf32> to vector<8x128xf32>
    %50 = arith.negf %49 : vector<8x128xf32>
    %51 = math.exp %50 : vector<8x128xf32>
    %cst_27 = arith.constant 1.000000e+00 : f32
    %52 = vector.broadcast %cst_27 : f32 to vector<8x128xf32>
    %53 = arith.addf %52, %51 : vector<8x128xf32>
    %54 = arith.divf %52, %53 : vector<8x128xf32>
    %55 = vector.extract_strided_slice %48 {offsets = [0, 128], sizes = [8, 128], strides = [1, 1]} : vector<8x512xf32> to vector<8x128xf32>
    %56 = arith.negf %55 : vector<8x128xf32>
    %57 = math.exp %56 : vector<8x128xf32>
    %cst_28 = arith.constant 1.000000e+00 : f32
    %58 = vector.broadcast %cst_28 : f32 to vector<8x128xf32>
    %59 = arith.addf %58, %57 : vector<8x128xf32>
    %60 = arith.divf %58, %59 : vector<8x128xf32>
    %61 = vector.extract_strided_slice %48 {offsets = [0, 256], sizes = [8, 128], strides = [1, 1]} : vector<8x512xf32> to vector<8x128xf32>
    %62 = math.tanh %61 : vector<8x128xf32>
    %63 = vector.extract_strided_slice %48 {offsets = [0, 384], sizes = [8, 128], strides = [1, 1]} : vector<8x512xf32> to vector<8x128xf32>
    %64 = arith.negf %63 : vector<8x128xf32>
    %65 = math.exp %64 : vector<8x128xf32>
    %cst_29 = arith.constant 1.000000e+00 : f32
    %66 = vector.broadcast %cst_29 : f32 to vector<8x128xf32>
    %67 = arith.addf %66, %65 : vector<8x128xf32>
    %68 = arith.divf %66, %67 : vector<8x128xf32>
    %69 = arith.mulf %60, %41 : vector<8x128xf32>
    %70 = arith.mulf %54, %62 : vector<8x128xf32>
    %71 = arith.addf %69, %70 : vector<8x128xf32>
    %72 = math.tanh %71 : vector<8x128xf32>
    %73 = arith.mulf %68, %72 : vector<8x128xf32>
    %c8_30 = arith.constant 8 : index
    %c0_31 = arith.constant 0 : index
    %74 = vector.load %arg8[%c8_30, %c0_31] : memref<64x128xf32, #tpu.memory_space<vmem>>, vector<8x128xf32>
    tpu.vector_store %arg8[%c8_30, %c0_31], %73 {strides = array<i32>} : memref<64x128xf32, #tpu.memory_space<vmem>>, vector<8x128xf32>,
    %c16 = arith.constant 16 : index
    %c0_32 = arith.constant 0 : index
    %75 = vector.load %arg9[%c16, %c0_32] : memref<64x512xf32, #tpu.memory_space<vmem>>, vector<8x512xf32>
    %76 = arith.truncf %73 : vector<8x128xf32> to vector<8x128xbf16>
    %cst_33 = arith.constant dense<0.000000e+00> : vector<8x512xf32>
    %77 = tpu.matmul %76, %12, %cst_33 {dimension_numbers = #tpu.dot_dimension_numbers<[1], [0], [0], [1], [0, 0, 1, 1], [], []>} : vector<8x128xbf16>, vector<128x512xbf16>, vector<8x512xf32> -> vector<8x512xf32>
    %78 = arith.addf %75, %77 : vector<8x512xf32>
    %79 = vector.extract_strided_slice %78 {offsets = [0, 0], sizes = [8, 128], strides = [1, 1]} : vector<8x512xf32> to vector<8x128xf32>
    %80 = arith.negf %79 : vector<8x128xf32>
    %81 = math.exp %80 : vector<8x128xf32>
    %cst_34 = arith.constant 1.000000e+00 : f32
    %82 = vector.broadcast %cst_34 : f32 to vector<8x128xf32>
    %83 = arith.addf %82, %81 : vector<8x128xf32>
    %84 = arith.divf %82, %83 : vector<8x128xf32>
    %85 = vector.extract_strided_slice %78 {offsets = [0, 128], sizes = [8, 128], strides = [1, 1]} : vector<8x512xf32> to vector<8x128xf32>
    %86 = arith.negf %85 : vector<8x128xf32>
    %87 = math.exp %86 : vector<8x128xf32>
    %cst_35 = arith.constant 1.000000e+00 : f32
    %88 = vector.broadcast %cst_35 : f32 to vector<8x128xf32>
    %89 = arith.addf %88, %87 : vector<8x128xf32>
    %90 = arith.divf %88, %89 : vector<8x128xf32>
    %91 = vector.extract_strided_slice %78 {offsets = [0, 256], sizes = [8, 128], strides = [1, 1]} : vector<8x512xf32> to vector<8x128xf32>
    %92 = math.tanh %91 : vector<8x128xf32>
    %93 = vector.extract_strided_slice %78 {offsets = [0, 384], sizes = [8, 128], strides = [1, 1]} : vector<8x512xf32> to vector<8x128xf32>
    %94 = arith.negf %93 : vector<8x128xf32>
    %95 = math.exp %94 : vector<8x128xf32>
    %cst_36 = arith.constant 1.000000e+00 : f32
    %96 = vector.broadcast %cst_36 : f32 to vector<8x128xf32>
    %97 = arith.addf %96, %95 : vector<8x128xf32>
    %98 = arith.divf %96, %97 : vector<8x128xf32>
    %99 = arith.mulf %90, %71 : vector<8x128xf32>
    %100 = arith.mulf %84, %92 : vector<8x128xf32>
    %101 = arith.addf %99, %100 : vector<8x128xf32>
    %102 = math.tanh %101 : vector<8x128xf32>
    %103 = arith.mulf %98, %102 : vector<8x128xf32>
    %c16_37 = arith.constant 16 : index
    %c0_38 = arith.constant 0 : index
    %104 = vector.load %arg8[%c16_37, %c0_38] : memref<64x128xf32, #tpu.memory_space<vmem>>, vector<8x128xf32>
    tpu.vector_store %arg8[%c16_37, %c0_38], %103 {strides = array<i32>} : memref<64x128xf32, #tpu.memory_space<vmem>>, vector<8x128xf32>,
    %c24 = arith.constant 24 : index
    %c0_39 = arith.constant 0 : index
    %105 = vector.load %arg9[%c24, %c0_39] : memref<64x512xf32, #tpu.memory_space<vmem>>, vector<8x512xf32>
    %106 = arith.truncf %103 : vector<8x128xf32> to vector<8x128xbf16>
    %cst_40 = arith.constant dense<0.000000e+00> : vector<8x512xf32>
    %107 = tpu.matmul %106, %12, %cst_40 {dimension_numbers = #tpu.dot_dimension_numbers<[1], [0], [0], [1], [0, 0, 1, 1], [], []>} : vector<8x128xbf16>, vector<128x512xbf16>, vector<8x512xf32> -> vector<8x512xf32>
    %108 = arith.addf %105, %107 : vector<8x512xf32>
    %109 = vector.extract_strided_slice %108 {offsets = [0, 0], sizes = [8, 128], strides = [1, 1]} : vector<8x512xf32> to vector<8x128xf32>
    %110 = arith.negf %109 : vector<8x128xf32>
    %111 = math.exp %110 : vector<8x128xf32>
    %cst_41 = arith.constant 1.000000e+00 : f32
    %112 = vector.broadcast %cst_41 : f32 to vector<8x128xf32>
    %113 = arith.addf %112, %111 : vector<8x128xf32>
    %114 = arith.divf %112, %113 : vector<8x128xf32>
    %115 = vector.extract_strided_slice %108 {offsets = [0, 128], sizes = [8, 128], strides = [1, 1]} : vector<8x512xf32> to vector<8x128xf32>
    %116 = arith.negf %115 : vector<8x128xf32>
    %117 = math.exp %116 : vector<8x128xf32>
    %cst_42 = arith.constant 1.000000e+00 : f32
    %118 = vector.broadcast %cst_42 : f32 to vector<8x128xf32>
    %119 = arith.addf %118, %117 : vector<8x128xf32>
    %120 = arith.divf %118, %119 : vector<8x128xf32>
    %121 = vector.extract_strided_slice %108 {offsets = [0, 256], sizes = [8, 128], strides = [1, 1]} : vector<8x512xf32> to vector<8x128xf32>
    %122 = math.tanh %121 : vector<8x128xf32>
    %123 = vector.extract_strided_slice %108 {offsets = [0, 384], sizes = [8, 128], strides = [1, 1]} : vector<8x512xf32> to vector<8x128xf32>
    %124 = arith.negf %123 : vector<8x128xf32>
    %125 = math.exp %124 : vector<8x128xf32>
    %cst_43 = arith.constant 1.000000e+00 : f32
    %126 = vector.broadcast %cst_43 : f32 to vector<8x128xf32>
    %127 = arith.addf %126, %125 : vector<8x128xf32>
    %128 = arith.divf %126, %127 : vector<8x128xf32>
    %129 = arith.mulf %120, %101 : vector<8x128xf32>
    %130 = arith.mulf %114, %122 : vector<8x128xf32>
    %131 = arith.addf %129, %130 : vector<8x128xf32>
    %132 = math.tanh %131 : vector<8x128xf32>
    %133 = arith.mulf %128, %132 : vector<8x128xf32>
    %c24_44 = arith.constant 24 : index
    %c0_45 = arith.constant 0 : index
    %134 = vector.load %arg8[%c24_44, %c0_45] : memref<64x128xf32, #tpu.memory_space<vmem>>, vector<8x128xf32>
    tpu.vector_store %arg8[%c24_44, %c0_45], %133 {strides = array<i32>} : memref<64x128xf32, #tpu.memory_space<vmem>>, vector<8x128xf32>,
    %c32 = arith.constant 32 : index
    %c0_46 = arith.constant 0 : index
    %135 = vector.load %arg9[%c32, %c0_46] : memref<64x512xf32, #tpu.memory_space<vmem>>, vector<8x512xf32>
    %136 = arith.truncf %133 : vector<8x128xf32> to vector<8x128xbf16>
    %cst_47 = arith.constant dense<0.000000e+00> : vector<8x512xf32>
    %137 = tpu.matmul %136, %12, %cst_47 {dimension_numbers = #tpu.dot_dimension_numbers<[1], [0], [0], [1], [0, 0, 1, 1], [], []>} : vector<8x128xbf16>, vector<128x512xbf16>, vector<8x512xf32> -> vector<8x512xf32>
    %138 = arith.addf %135, %137 : vector<8x512xf32>
    %139 = vector.extract_strided_slice %138 {offsets = [0, 0], sizes = [8, 128], strides = [1, 1]} : vector<8x512xf32> to vector<8x128xf32>
    %140 = arith.negf %139 : vector<8x128xf32>
    %141 = math.exp %140 : vector<8x128xf32>
    %cst_48 = arith.constant 1.000000e+00 : f32
    %142 = vector.broadcast %cst_48 : f32 to vector<8x128xf32>
    %143 = arith.addf %142, %141 : vector<8x128xf32>
    %144 = arith.divf %142, %143 : vector<8x128xf32>
    %145 = vector.extract_strided_slice %138 {offsets = [0, 128], sizes = [8, 128], strides = [1, 1]} : vector<8x512xf32> to vector<8x128xf32>
    %146 = arith.negf %145 : vector<8x128xf32>
    %147 = math.exp %146 : vector<8x128xf32>
    %cst_49 = arith.constant 1.000000e+00 : f32
    %148 = vector.broadcast %cst_49 : f32 to vector<8x128xf32>
    %149 = arith.addf %148, %147 : vector<8x128xf32>
    %150 = arith.divf %148, %149 : vector<8x128xf32>
    %151 = vector.extract_strided_slice %138 {offsets = [0, 256], sizes = [8, 128], strides = [1, 1]} : vector<8x512xf32> to vector<8x128xf32>
    %152 = math.tanh %151 : vector<8x128xf32>
    %153 = vector.extract_strided_slice %138 {offsets = [0, 384], sizes = [8, 128], strides = [1, 1]} : vector<8x512xf32> to vector<8x128xf32>
    %154 = arith.negf %153 : vector<8x128xf32>
    %155 = math.exp %154 : vector<8x128xf32>
    %cst_50 = arith.constant 1.000000e+00 : f32
    %156 = vector.broadcast %cst_50 : f32 to vector<8x128xf32>
    %157 = arith.addf %156, %155 : vector<8x128xf32>
    %158 = arith.divf %156, %157 : vector<8x128xf32>
    %159 = arith.mulf %150, %131 : vector<8x128xf32>
    %160 = arith.mulf %144, %152 : vector<8x128xf32>
    %161 = arith.addf %159, %160 : vector<8x128xf32>
    %162 = math.tanh %161 : vector<8x128xf32>
    %163 = arith.mulf %158, %162 : vector<8x128xf32>
    %c32_51 = arith.constant 32 : index
    %c0_52 = arith.constant 0 : index
    %164 = vector.load %arg8[%c32_51, %c0_52] : memref<64x128xf32, #tpu.memory_space<vmem>>, vector<8x128xf32>
    tpu.vector_store %arg8[%c32_51, %c0_52], %163 {strides = array<i32>} : memref<64x128xf32, #tpu.memory_space<vmem>>, vector<8x128xf32>,
    %c40 = arith.constant 40 : index
    %c0_53 = arith.constant 0 : index
    %165 = vector.load %arg9[%c40, %c0_53] : memref<64x512xf32, #tpu.memory_space<vmem>>, vector<8x512xf32>
    %166 = arith.truncf %163 : vector<8x128xf32> to vector<8x128xbf16>
    %cst_54 = arith.constant dense<0.000000e+00> : vector<8x512xf32>
    %167 = tpu.matmul %166, %12, %cst_54 {dimension_numbers = #tpu.dot_dimension_numbers<[1], [0], [0], [1], [0, 0, 1, 1], [], []>} : vector<8x128xbf16>, vector<128x512xbf16>, vector<8x512xf32> -> vector<8x512xf32>
    %168 = arith.addf %165, %167 : vector<8x512xf32>
    %169 = vector.extract_strided_slice %168 {offsets = [0, 0], sizes = [8, 128], strides = [1, 1]} : vector<8x512xf32> to vector<8x128xf32>
    %170 = arith.negf %169 : vector<8x128xf32>
    %171 = math.exp %170 : vector<8x128xf32>
    %cst_55 = arith.constant 1.000000e+00 : f32
    %172 = vector.broadcast %cst_55 : f32 to vector<8x128xf32>
    %173 = arith.addf %172, %171 : vector<8x128xf32>
    %174 = arith.divf %172, %173 : vector<8x128xf32>
    %175 = vector.extract_strided_slice %168 {offsets = [0, 128], sizes = [8, 128], strides = [1, 1]} : vector<8x512xf32> to vector<8x128xf32>
    %176 = arith.negf %175 : vector<8x128xf32>
    %177 = math.exp %176 : vector<8x128xf32>
    %cst_56 = arith.constant 1.000000e+00 : f32
    %178 = vector.broadcast %cst_56 : f32 to vector<8x128xf32>
    %179 = arith.addf %178, %177 : vector<8x128xf32>
    %180 = arith.divf %178, %179 : vector<8x128xf32>
    %181 = vector.extract_strided_slice %168 {offsets = [0, 256], sizes = [8, 128], strides = [1, 1]} : vector<8x512xf32> to vector<8x128xf32>
    %182 = math.tanh %181 : vector<8x128xf32>
    %183 = vector.extract_strided_slice %168 {offsets = [0, 384], sizes = [8, 128], strides = [1, 1]} : vector<8x512xf32> to vector<8x128xf32>
    %184 = arith.negf %183 : vector<8x128xf32>
    %185 = math.exp %184 : vector<8x128xf32>
    %cst_57 = arith.constant 1.000000e+00 : f32
    %186 = vector.broadcast %cst_57 : f32 to vector<8x128xf32>
    %187 = arith.addf %186, %185 : vector<8x128xf32>
    %188 = arith.divf %186, %187 : vector<8x128xf32>
    %189 = arith.mulf %180, %161 : vector<8x128xf32>
    %190 = arith.mulf %174, %182 : vector<8x128xf32>
    %191 = arith.addf %189, %190 : vector<8x128xf32>
    %192 = math.tanh %191 : vector<8x128xf32>
    %193 = arith.mulf %188, %192 : vector<8x128xf32>
    %c40_58 = arith.constant 40 : index
    %c0_59 = arith.constant 0 : index
    %194 = vector.load %arg8[%c40_58, %c0_59] : memref<64x128xf32, #tpu.memory_space<vmem>>, vector<8x128xf32>
    tpu.vector_store %arg8[%c40_58, %c0_59], %193 {strides = array<i32>} : memref<64x128xf32, #tpu.memory_space<vmem>>, vector<8x128xf32>,
    %c48 = arith.constant 48 : index
    %c0_60 = arith.constant 0 : index
    %195 = vector.load %arg9[%c48, %c0_60] : memref<64x512xf32, #tpu.memory_space<vmem>>, vector<8x512xf32>
    %196 = arith.truncf %193 : vector<8x128xf32> to vector<8x128xbf16>
    %cst_61 = arith.constant dense<0.000000e+00> : vector<8x512xf32>
    %197 = tpu.matmul %196, %12, %cst_61 {dimension_numbers = #tpu.dot_dimension_numbers<[1], [0], [0], [1], [0, 0, 1, 1], [], []>} : vector<8x128xbf16>, vector<128x512xbf16>, vector<8x512xf32> -> vector<8x512xf32>
    %198 = arith.addf %195, %197 : vector<8x512xf32>
    %199 = vector.extract_strided_slice %198 {offsets = [0, 0], sizes = [8, 128], strides = [1, 1]} : vector<8x512xf32> to vector<8x128xf32>
    %200 = arith.negf %199 : vector<8x128xf32>
    %201 = math.exp %200 : vector<8x128xf32>
    %cst_62 = arith.constant 1.000000e+00 : f32
    %202 = vector.broadcast %cst_62 : f32 to vector<8x128xf32>
    %203 = arith.addf %202, %201 : vector<8x128xf32>
    %204 = arith.divf %202, %203 : vector<8x128xf32>
    %205 = vector.extract_strided_slice %198 {offsets = [0, 128], sizes = [8, 128], strides = [1, 1]} : vector<8x512xf32> to vector<8x128xf32>
    %206 = arith.negf %205 : vector<8x128xf32>
    %207 = math.exp %206 : vector<8x128xf32>
    %cst_63 = arith.constant 1.000000e+00 : f32
    %208 = vector.broadcast %cst_63 : f32 to vector<8x128xf32>
    %209 = arith.addf %208, %207 : vector<8x128xf32>
    %210 = arith.divf %208, %209 : vector<8x128xf32>
    %211 = vector.extract_strided_slice %198 {offsets = [0, 256], sizes = [8, 128], strides = [1, 1]} : vector<8x512xf32> to vector<8x128xf32>
    %212 = math.tanh %211 : vector<8x128xf32>
    %213 = vector.extract_strided_slice %198 {offsets = [0, 384], sizes = [8, 128], strides = [1, 1]} : vector<8x512xf32> to vector<8x128xf32>
    %214 = arith.negf %213 : vector<8x128xf32>
    %215 = math.exp %214 : vector<8x128xf32>
    %cst_64 = arith.constant 1.000000e+00 : f32
    %216 = vector.broadcast %cst_64 : f32 to vector<8x128xf32>
    %217 = arith.addf %216, %215 : vector<8x128xf32>
    %218 = arith.divf %216, %217 : vector<8x128xf32>
    %219 = arith.mulf %210, %191 : vector<8x128xf32>
    %220 = arith.mulf %204, %212 : vector<8x128xf32>
    %221 = arith.addf %219, %220 : vector<8x128xf32>
    %222 = math.tanh %221 : vector<8x128xf32>
    %223 = arith.mulf %218, %222 : vector<8x128xf32>
    %c48_65 = arith.constant 48 : index
    %c0_66 = arith.constant 0 : index
    %224 = vector.load %arg8[%c48_65, %c0_66] : memref<64x128xf32, #tpu.memory_space<vmem>>, vector<8x128xf32>
    tpu.vector_store %arg8[%c48_65, %c0_66], %223 {strides = array<i32>} : memref<64x128xf32, #tpu.memory_space<vmem>>, vector<8x128xf32>,
    %c56 = arith.constant 56 : index
    %c0_67 = arith.constant 0 : index
    %225 = vector.load %arg9[%c56, %c0_67] : memref<64x512xf32, #tpu.memory_space<vmem>>, vector<8x512xf32>
    %226 = arith.truncf %223 : vector<8x128xf32> to vector<8x128xbf16>
    %cst_68 = arith.constant dense<0.000000e+00> : vector<8x512xf32>
    %227 = tpu.matmul %226, %12, %cst_68 {dimension_numbers = #tpu.dot_dimension_numbers<[1], [0], [0], [1], [0, 0, 1, 1], [], []>} : vector<8x128xbf16>, vector<128x512xbf16>, vector<8x512xf32> -> vector<8x512xf32>
    %228 = arith.addf %225, %227 : vector<8x512xf32>
    %229 = vector.extract_strided_slice %228 {offsets = [0, 0], sizes = [8, 128], strides = [1, 1]} : vector<8x512xf32> to vector<8x128xf32>
    %230 = arith.negf %229 : vector<8x128xf32>
    %231 = math.exp %230 : vector<8x128xf32>
    %cst_69 = arith.constant 1.000000e+00 : f32
    %232 = vector.broadcast %cst_69 : f32 to vector<8x128xf32>
    %233 = arith.addf %232, %231 : vector<8x128xf32>
    %234 = arith.divf %232, %233 : vector<8x128xf32>
    %235 = vector.extract_strided_slice %228 {offsets = [0, 128], sizes = [8, 128], strides = [1, 1]} : vector<8x512xf32> to vector<8x128xf32>
    %236 = arith.negf %235 : vector<8x128xf32>
    %237 = math.exp %236 : vector<8x128xf32>
    %cst_70 = arith.constant 1.000000e+00 : f32
    %238 = vector.broadcast %cst_70 : f32 to vector<8x128xf32>
    %239 = arith.addf %238, %237 : vector<8x128xf32>
    %240 = arith.divf %238, %239 : vector<8x128xf32>
    %241 = vector.extract_strided_slice %228 {offsets = [0, 256], sizes = [8, 128], strides = [1, 1]} : vector<8x512xf32> to vector<8x128xf32>
    %242 = math.tanh %241 : vector<8x128xf32>
    %243 = vector.extract_strided_slice %228 {offsets = [0, 384], sizes = [8, 128], strides = [1, 1]} : vector<8x512xf32> to vector<8x128xf32>
    %244 = arith.negf %243 : vector<8x128xf32>
    %245 = math.exp %244 : vector<8x128xf32>
    %cst_71 = arith.constant 1.000000e+00 : f32
    %246 = vector.broadcast %cst_71 : f32 to vector<8x128xf32>
    %247 = arith.addf %246, %245 : vector<8x128xf32>
    %248 = arith.divf %246, %247 : vector<8x128xf32>
    %249 = arith.mulf %240, %221 : vector<8x128xf32>
    %250 = arith.mulf %234, %242 : vector<8x128xf32>
    %251 = arith.addf %249, %250 : vector<8x128xf32>
    %252 = math.tanh %251 : vector<8x128xf32>
    %253 = arith.mulf %248, %252 : vector<8x128xf32>
    %c56_72 = arith.constant 56 : index
    %c0_73 = arith.constant 0 : index
    %254 = vector.load %arg8[%c56_72, %c0_73] : memref<64x128xf32, #tpu.memory_space<vmem>>, vector<8x128xf32>
    tpu.vector_store %arg8[%c56_72, %c0_73], %253 {strides = array<i32>} : memref<64x128xf32, #tpu.memory_space<vmem>>, vector<8x128xf32>,
    %c0_74 = arith.constant 0 : index
    %c0_75 = arith.constant 0 : index
    %255 = vector.load %arg8[%c0_74, %c0_75] : memref<64x128xf32, #tpu.memory_space<vmem>>, vector<64x128xf32>
    %256 = arith.truncf %255 : vector<64x128xf32> to vector<64x128xbf16>
    %c1 = arith.constant 1 : index
    %c0_76 = arith.constant 0 : index
    %c0_77 = arith.constant 0 : index
    %257 = vector.load %arg2[%c1, %c0_76, %c0_77] : memref<2x128x512xbf16, #tpu.memory_space<vmem>>, vector<1x128x512xbf16>
    %258 = vector.shape_cast %257 : vector<1x128x512xbf16> to vector<128x512xbf16>
    %cst_78 = arith.constant dense<0.000000e+00> : vector<64x512xf32>
    %259 = tpu.matmul %256, %258, %cst_78 {dimension_numbers = #tpu.dot_dimension_numbers<[1], [0], [0], [1], [0, 0, 1, 1], [], []>} : vector<64x128xbf16>, vector<128x512xbf16>, vector<64x512xf32> -> vector<64x512xf32>
    %c1_79 = arith.constant 1 : index
    %c0_80 = arith.constant 0 : index
    %c0_81 = arith.constant 0 : index
    %260 = vector.load %arg4[%c1_79, %c0_80, %c0_81] : memref<2x1x512xf32, #tpu.memory_space<vmem>>, vector<1x1x512xf32>
    %261 = vector.shape_cast %260 : vector<1x1x512xf32> to vector<1x512xf32>
    %262 = vector.broadcast %261 : vector<1x512xf32> to vector<64x512xf32>
    %263 = arith.addf %259, %262 : vector<64x512xf32>
    %c0_82 = arith.constant 0 : index
    %c0_83 = arith.constant 0 : index
    %264 = vector.load %arg9[%c0_82, %c0_83] : memref<64x512xf32, #tpu.memory_space<vmem>>, vector<64x512xf32>
    tpu.vector_store %arg9[%c0_82, %c0_83], %263 {strides = array<i32>} : memref<64x512xf32, #tpu.memory_space<vmem>>, vector<64x512xf32>,
    %c1_84 = arith.constant 1 : index
    %c0_85 = arith.constant 0 : index
    %c0_86 = arith.constant 0 : index
    %265 = vector.load %arg3[%c1_84, %c0_85, %c0_86] : memref<2x128x512xbf16, #tpu.memory_space<vmem>>, vector<1x128x512xbf16>
    %266 = vector.shape_cast %265 : vector<1x128x512xbf16> to vector<128x512xbf16>
    %cst_87 = arith.constant 0.000000e+00 : f32
    %267 = vector.broadcast %cst_87 : f32 to vector<8x128xf32>
    %cst_88 = arith.constant 0.000000e+00 : f32
    %268 = vector.broadcast %cst_88 : f32 to vector<8x128xf32>
    %c0_89 = arith.constant 0 : index
    %c0_90 = arith.constant 0 : index
    %269 = vector.load %arg9[%c0_89, %c0_90] : memref<64x512xf32, #tpu.memory_space<vmem>>, vector<8x512xf32>
    %270 = arith.truncf %267 : vector<8x128xf32> to vector<8x128xbf16>
    %cst_91 = arith.constant dense<0.000000e+00> : vector<8x512xf32>
    %271 = tpu.matmul %270, %266, %cst_91 {dimension_numbers = #tpu.dot_dimension_numbers<[1], [0], [0], [1], [0, 0, 1, 1], [], []>} : vector<8x128xbf16>, vector<128x512xbf16>, vector<8x512xf32> -> vector<8x512xf32>
    %272 = arith.addf %269, %271 : vector<8x512xf32>
    %273 = vector.extract_strided_slice %272 {offsets = [0, 0], sizes = [8, 128], strides = [1, 1]} : vector<8x512xf32> to vector<8x128xf32>
    %274 = arith.negf %273 : vector<8x128xf32>
    %275 = math.exp %274 : vector<8x128xf32>
    %cst_92 = arith.constant 1.000000e+00 : f32
    %276 = vector.broadcast %cst_92 : f32 to vector<8x128xf32>
    %277 = arith.addf %276, %275 : vector<8x128xf32>
    %278 = arith.divf %276, %277 : vector<8x128xf32>
    %279 = vector.extract_strided_slice %272 {offsets = [0, 128], sizes = [8, 128], strides = [1, 1]} : vector<8x512xf32> to vector<8x128xf32>
    %280 = arith.negf %279 : vector<8x128xf32>
    %281 = math.exp %280 : vector<8x128xf32>
    %cst_93 = arith.constant 1.000000e+00 : f32
    %282 = vector.broadcast %cst_93 : f32 to vector<8x128xf32>
    %283 = arith.addf %282, %281 : vector<8x128xf32>
    %284 = arith.divf %282, %283 : vector<8x128xf32>
    %285 = vector.extract_strided_slice %272 {offsets = [0, 256], sizes = [8, 128], strides = [1, 1]} : vector<8x512xf32> to vector<8x128xf32>
    %286 = math.tanh %285 : vector<8x128xf32>
    %287 = vector.extract_strided_slice %272 {offsets = [0, 384], sizes = [8, 128], strides = [1, 1]} : vector<8x512xf32> to vector<8x128xf32>
    %288 = arith.negf %287 : vector<8x128xf32>
    %289 = math.exp %288 : vector<8x128xf32>
    %cst_94 = arith.constant 1.000000e+00 : f32
    %290 = vector.broadcast %cst_94 : f32 to vector<8x128xf32>
    %291 = arith.addf %290, %289 : vector<8x128xf32>
    %292 = arith.divf %290, %291 : vector<8x128xf32>
    %293 = arith.mulf %284, %268 : vector<8x128xf32>
    %294 = arith.mulf %278, %286 : vector<8x128xf32>
    %295 = arith.addf %293, %294 : vector<8x128xf32>
    %296 = math.tanh %295 : vector<8x128xf32>
    %297 = arith.mulf %292, %296 : vector<8x128xf32>
    %c8_95 = arith.constant 8 : index
    %c0_96 = arith.constant 0 : index
    %298 = vector.load %arg9[%c8_95, %c0_96] : memref<64x512xf32, #tpu.memory_space<vmem>>, vector<8x512xf32>
    %299 = arith.truncf %297 : vector<8x128xf32> to vector<8x128xbf16>
    %cst_97 = arith.constant dense<0.000000e+00> : vector<8x512xf32>
    %300 = tpu.matmul %299, %266, %cst_97 {dimension_numbers = #tpu.dot_dimension_numbers<[1], [0], [0], [1], [0, 0, 1, 1], [], []>} : vector<8x128xbf16>, vector<128x512xbf16>, vector<8x512xf32> -> vector<8x512xf32>
    %301 = arith.addf %298, %300 : vector<8x512xf32>
    %302 = vector.extract_strided_slice %301 {offsets = [0, 0], sizes = [8, 128], strides = [1, 1]} : vector<8x512xf32> to vector<8x128xf32>
    %303 = arith.negf %302 : vector<8x128xf32>
    %304 = math.exp %303 : vector<8x128xf32>
    %cst_98 = arith.constant 1.000000e+00 : f32
    %305 = vector.broadcast %cst_98 : f32 to vector<8x128xf32>
    %306 = arith.addf %305, %304 : vector<8x128xf32>
    %307 = arith.divf %305, %306 : vector<8x128xf32>
    %308 = vector.extract_strided_slice %301 {offsets = [0, 128], sizes = [8, 128], strides = [1, 1]} : vector<8x512xf32> to vector<8x128xf32>
    %309 = arith.negf %308 : vector<8x128xf32>
    %310 = math.exp %309 : vector<8x128xf32>
    %cst_99 = arith.constant 1.000000e+00 : f32
    %311 = vector.broadcast %cst_99 : f32 to vector<8x128xf32>
    %312 = arith.addf %311, %310 : vector<8x128xf32>
    %313 = arith.divf %311, %312 : vector<8x128xf32>
    %314 = vector.extract_strided_slice %301 {offsets = [0, 256], sizes = [8, 128], strides = [1, 1]} : vector<8x512xf32> to vector<8x128xf32>
    %315 = math.tanh %314 : vector<8x128xf32>
    %316 = vector.extract_strided_slice %301 {offsets = [0, 384], sizes = [8, 128], strides = [1, 1]} : vector<8x512xf32> to vector<8x128xf32>
    %317 = arith.negf %316 : vector<8x128xf32>
    %318 = math.exp %317 : vector<8x128xf32>
    %cst_100 = arith.constant 1.000000e+00 : f32
    %319 = vector.broadcast %cst_100 : f32 to vector<8x128xf32>
    %320 = arith.addf %319, %318 : vector<8x128xf32>
    %321 = arith.divf %319, %320 : vector<8x128xf32>
    %322 = arith.mulf %313, %295 : vector<8x128xf32>
    %323 = arith.mulf %307, %315 : vector<8x128xf32>
    %324 = arith.addf %322, %323 : vector<8x128xf32>
    %325 = math.tanh %324 : vector<8x128xf32>
    %326 = arith.mulf %321, %325 : vector<8x128xf32>
    %c16_101 = arith.constant 16 : index
    %c0_102 = arith.constant 0 : index
    %327 = vector.load %arg9[%c16_101, %c0_102] : memref<64x512xf32, #tpu.memory_space<vmem>>, vector<8x512xf32>
    %328 = arith.truncf %326 : vector<8x128xf32> to vector<8x128xbf16>
    %cst_103 = arith.constant dense<0.000000e+00> : vector<8x512xf32>
    %329 = tpu.matmul %328, %266, %cst_103 {dimension_numbers = #tpu.dot_dimension_numbers<[1], [0], [0], [1], [0, 0, 1, 1], [], []>} : vector<8x128xbf16>, vector<128x512xbf16>, vector<8x512xf32> -> vector<8x512xf32>
    %330 = arith.addf %327, %329 : vector<8x512xf32>
    %331 = vector.extract_strided_slice %330 {offsets = [0, 0], sizes = [8, 128], strides = [1, 1]} : vector<8x512xf32> to vector<8x128xf32>
    %332 = arith.negf %331 : vector<8x128xf32>
    %333 = math.exp %332 : vector<8x128xf32>
    %cst_104 = arith.constant 1.000000e+00 : f32
    %334 = vector.broadcast %cst_104 : f32 to vector<8x128xf32>
    %335 = arith.addf %334, %333 : vector<8x128xf32>
    %336 = arith.divf %334, %335 : vector<8x128xf32>
    %337 = vector.extract_strided_slice %330 {offsets = [0, 128], sizes = [8, 128], strides = [1, 1]} : vector<8x512xf32> to vector<8x128xf32>
    %338 = arith.negf %337 : vector<8x128xf32>
    %339 = math.exp %338 : vector<8x128xf32>
    %cst_105 = arith.constant 1.000000e+00 : f32
    %340 = vector.broadcast %cst_105 : f32 to vector<8x128xf32>
    %341 = arith.addf %340, %339 : vector<8x128xf32>
    %342 = arith.divf %340, %341 : vector<8x128xf32>
    %343 = vector.extract_strided_slice %330 {offsets = [0, 256], sizes = [8, 128], strides = [1, 1]} : vector<8x512xf32> to vector<8x128xf32>
    %344 = math.tanh %343 : vector<8x128xf32>
    %345 = vector.extract_strided_slice %330 {offsets = [0, 384], sizes = [8, 128], strides = [1, 1]} : vector<8x512xf32> to vector<8x128xf32>
    %346 = arith.negf %345 : vector<8x128xf32>
    %347 = math.exp %346 : vector<8x128xf32>
    %cst_106 = arith.constant 1.000000e+00 : f32
    %348 = vector.broadcast %cst_106 : f32 to vector<8x128xf32>
    %349 = arith.addf %348, %347 : vector<8x128xf32>
    %350 = arith.divf %348, %349 : vector<8x128xf32>
    %351 = arith.mulf %342, %324 : vector<8x128xf32>
    %352 = arith.mulf %336, %344 : vector<8x128xf32>
    %353 = arith.addf %351, %352 : vector<8x128xf32>
    %354 = math.tanh %353 : vector<8x128xf32>
    %355 = arith.mulf %350, %354 : vector<8x128xf32>
    %c24_107 = arith.constant 24 : index
    %c0_108 = arith.constant 0 : index
    %356 = vector.load %arg9[%c24_107, %c0_108] : memref<64x512xf32, #tpu.memory_space<vmem>>, vector<8x512xf32>
    %357 = arith.truncf %355 : vector<8x128xf32> to vector<8x128xbf16>
    %cst_109 = arith.constant dense<0.000000e+00> : vector<8x512xf32>
    %358 = tpu.matmul %357, %266, %cst_109 {dimension_numbers = #tpu.dot_dimension_numbers<[1], [0], [0], [1], [0, 0, 1, 1], [], []>} : vector<8x128xbf16>, vector<128x512xbf16>, vector<8x512xf32> -> vector<8x512xf32>
    %359 = arith.addf %356, %358 : vector<8x512xf32>
    %360 = vector.extract_strided_slice %359 {offsets = [0, 0], sizes = [8, 128], strides = [1, 1]} : vector<8x512xf32> to vector<8x128xf32>
    %361 = arith.negf %360 : vector<8x128xf32>
    %362 = math.exp %361 : vector<8x128xf32>
    %cst_110 = arith.constant 1.000000e+00 : f32
    %363 = vector.broadcast %cst_110 : f32 to vector<8x128xf32>
    %364 = arith.addf %363, %362 : vector<8x128xf32>
    %365 = arith.divf %363, %364 : vector<8x128xf32>
    %366 = vector.extract_strided_slice %359 {offsets = [0, 128], sizes = [8, 128], strides = [1, 1]} : vector<8x512xf32> to vector<8x128xf32>
    %367 = arith.negf %366 : vector<8x128xf32>
    %368 = math.exp %367 : vector<8x128xf32>
    %cst_111 = arith.constant 1.000000e+00 : f32
    %369 = vector.broadcast %cst_111 : f32 to vector<8x128xf32>
    %370 = arith.addf %369, %368 : vector<8x128xf32>
    %371 = arith.divf %369, %370 : vector<8x128xf32>
    %372 = vector.extract_strided_slice %359 {offsets = [0, 256], sizes = [8, 128], strides = [1, 1]} : vector<8x512xf32> to vector<8x128xf32>
    %373 = math.tanh %372 : vector<8x128xf32>
    %374 = vector.extract_strided_slice %359 {offsets = [0, 384], sizes = [8, 128], strides = [1, 1]} : vector<8x512xf32> to vector<8x128xf32>
    %375 = arith.negf %374 : vector<8x128xf32>
    %376 = math.exp %375 : vector<8x128xf32>
    %cst_112 = arith.constant 1.000000e+00 : f32
    %377 = vector.broadcast %cst_112 : f32 to vector<8x128xf32>
    %378 = arith.addf %377, %376 : vector<8x128xf32>
    %379 = arith.divf %377, %378 : vector<8x128xf32>
    %380 = arith.mulf %371, %353 : vector<8x128xf32>
    %381 = arith.mulf %365, %373 : vector<8x128xf32>
    %382 = arith.addf %380, %381 : vector<8x128xf32>
    %383 = math.tanh %382 : vector<8x128xf32>
    %384 = arith.mulf %379, %383 : vector<8x128xf32>
    %c32_113 = arith.constant 32 : index
    %c0_114 = arith.constant 0 : index
    %385 = vector.load %arg9[%c32_113, %c0_114] : memref<64x512xf32, #tpu.memory_space<vmem>>, vector<8x512xf32>
    %386 = arith.truncf %384 : vector<8x128xf32> to vector<8x128xbf16>
    %cst_115 = arith.constant dense<0.000000e+00> : vector<8x512xf32>
    %387 = tpu.matmul %386, %266, %cst_115 {dimension_numbers = #tpu.dot_dimension_numbers<[1], [0], [0], [1], [0, 0, 1, 1], [], []>} : vector<8x128xbf16>, vector<128x512xbf16>, vector<8x512xf32> -> vector<8x512xf32>
    %388 = arith.addf %385, %387 : vector<8x512xf32>
    %389 = vector.extract_strided_slice %388 {offsets = [0, 0], sizes = [8, 128], strides = [1, 1]} : vector<8x512xf32> to vector<8x128xf32>
    %390 = arith.negf %389 : vector<8x128xf32>
    %391 = math.exp %390 : vector<8x128xf32>
    %cst_116 = arith.constant 1.000000e+00 : f32
    %392 = vector.broadcast %cst_116 : f32 to vector<8x128xf32>
    %393 = arith.addf %392, %391 : vector<8x128xf32>
    %394 = arith.divf %392, %393 : vector<8x128xf32>
    %395 = vector.extract_strided_slice %388 {offsets = [0, 128], sizes = [8, 128], strides = [1, 1]} : vector<8x512xf32> to vector<8x128xf32>
    %396 = arith.negf %395 : vector<8x128xf32>
    %397 = math.exp %396 : vector<8x128xf32>
    %cst_117 = arith.constant 1.000000e+00 : f32
    %398 = vector.broadcast %cst_117 : f32 to vector<8x128xf32>
    %399 = arith.addf %398, %397 : vector<8x128xf32>
    %400 = arith.divf %398, %399 : vector<8x128xf32>
    %401 = vector.extract_strided_slice %388 {offsets = [0, 256], sizes = [8, 128], strides = [1, 1]} : vector<8x512xf32> to vector<8x128xf32>
    %402 = math.tanh %401 : vector<8x128xf32>
    %403 = vector.extract_strided_slice %388 {offsets = [0, 384], sizes = [8, 128], strides = [1, 1]} : vector<8x512xf32> to vector<8x128xf32>
    %404 = arith.negf %403 : vector<8x128xf32>
    %405 = math.exp %404 : vector<8x128xf32>
    %cst_118 = arith.constant 1.000000e+00 : f32
    %406 = vector.broadcast %cst_118 : f32 to vector<8x128xf32>
    %407 = arith.addf %406, %405 : vector<8x128xf32>
    %408 = arith.divf %406, %407 : vector<8x128xf32>
    %409 = arith.mulf %400, %382 : vector<8x128xf32>
    %410 = arith.mulf %394, %402 : vector<8x128xf32>
    %411 = arith.addf %409, %410 : vector<8x128xf32>
    %412 = math.tanh %411 : vector<8x128xf32>
    %413 = arith.mulf %408, %412 : vector<8x128xf32>
    %c40_119 = arith.constant 40 : index
    %c0_120 = arith.constant 0 : index
    %414 = vector.load %arg9[%c40_119, %c0_120] : memref<64x512xf32, #tpu.memory_space<vmem>>, vector<8x512xf32>
    %415 = arith.truncf %413 : vector<8x128xf32> to vector<8x128xbf16>
    %cst_121 = arith.constant dense<0.000000e+00> : vector<8x512xf32>
    %416 = tpu.matmul %415, %266, %cst_121 {dimension_numbers = #tpu.dot_dimension_numbers<[1], [0], [0], [1], [0, 0, 1, 1], [], []>} : vector<8x128xbf16>, vector<128x512xbf16>, vector<8x512xf32> -> vector<8x512xf32>
    %417 = arith.addf %414, %416 : vector<8x512xf32>
    %418 = vector.extract_strided_slice %417 {offsets = [0, 0], sizes = [8, 128], strides = [1, 1]} : vector<8x512xf32> to vector<8x128xf32>
    %419 = arith.negf %418 : vector<8x128xf32>
    %420 = math.exp %419 : vector<8x128xf32>
    %cst_122 = arith.constant 1.000000e+00 : f32
    %421 = vector.broadcast %cst_122 : f32 to vector<8x128xf32>
    %422 = arith.addf %421, %420 : vector<8x128xf32>
    %423 = arith.divf %421, %422 : vector<8x128xf32>
    %424 = vector.extract_strided_slice %417 {offsets = [0, 128], sizes = [8, 128], strides = [1, 1]} : vector<8x512xf32> to vector<8x128xf32>
    %425 = arith.negf %424 : vector<8x128xf32>
    %426 = math.exp %425 : vector<8x128xf32>
    %cst_123 = arith.constant 1.000000e+00 : f32
    %427 = vector.broadcast %cst_123 : f32 to vector<8x128xf32>
    %428 = arith.addf %427, %426 : vector<8x128xf32>
    %429 = arith.divf %427, %428 : vector<8x128xf32>
    %430 = vector.extract_strided_slice %417 {offsets = [0, 256], sizes = [8, 128], strides = [1, 1]} : vector<8x512xf32> to vector<8x128xf32>
    %431 = math.tanh %430 : vector<8x128xf32>
    %432 = vector.extract_strided_slice %417 {offsets = [0, 384], sizes = [8, 128], strides = [1, 1]} : vector<8x512xf32> to vector<8x128xf32>
    %433 = arith.negf %432 : vector<8x128xf32>
    %434 = math.exp %433 : vector<8x128xf32>
    %cst_124 = arith.constant 1.000000e+00 : f32
    %435 = vector.broadcast %cst_124 : f32 to vector<8x128xf32>
    %436 = arith.addf %435, %434 : vector<8x128xf32>
    %437 = arith.divf %435, %436 : vector<8x128xf32>
    %438 = arith.mulf %429, %411 : vector<8x128xf32>
    %439 = arith.mulf %423, %431 : vector<8x128xf32>
    %440 = arith.addf %438, %439 : vector<8x128xf32>
    %441 = math.tanh %440 : vector<8x128xf32>
    %442 = arith.mulf %437, %441 : vector<8x128xf32>
    %c48_125 = arith.constant 48 : index
    %c0_126 = arith.constant 0 : index
    %443 = vector.load %arg9[%c48_125, %c0_126] : memref<64x512xf32, #tpu.memory_space<vmem>>, vector<8x512xf32>
    %444 = arith.truncf %442 : vector<8x128xf32> to vector<8x128xbf16>
    %cst_127 = arith.constant dense<0.000000e+00> : vector<8x512xf32>
    %445 = tpu.matmul %444, %266, %cst_127 {dimension_numbers = #tpu.dot_dimension_numbers<[1], [0], [0], [1], [0, 0, 1, 1], [], []>} : vector<8x128xbf16>, vector<128x512xbf16>, vector<8x512xf32> -> vector<8x512xf32>
    %446 = arith.addf %443, %445 : vector<8x512xf32>
    %447 = vector.extract_strided_slice %446 {offsets = [0, 0], sizes = [8, 128], strides = [1, 1]} : vector<8x512xf32> to vector<8x128xf32>
    %448 = arith.negf %447 : vector<8x128xf32>
    %449 = math.exp %448 : vector<8x128xf32>
    %cst_128 = arith.constant 1.000000e+00 : f32
    %450 = vector.broadcast %cst_128 : f32 to vector<8x128xf32>
    %451 = arith.addf %450, %449 : vector<8x128xf32>
    %452 = arith.divf %450, %451 : vector<8x128xf32>
    %453 = vector.extract_strided_slice %446 {offsets = [0, 128], sizes = [8, 128], strides = [1, 1]} : vector<8x512xf32> to vector<8x128xf32>
    %454 = arith.negf %453 : vector<8x128xf32>
    %455 = math.exp %454 : vector<8x128xf32>
    %cst_129 = arith.constant 1.000000e+00 : f32
    %456 = vector.broadcast %cst_129 : f32 to vector<8x128xf32>
    %457 = arith.addf %456, %455 : vector<8x128xf32>
    %458 = arith.divf %456, %457 : vector<8x128xf32>
    %459 = vector.extract_strided_slice %446 {offsets = [0, 256], sizes = [8, 128], strides = [1, 1]} : vector<8x512xf32> to vector<8x128xf32>
    %460 = math.tanh %459 : vector<8x128xf32>
    %461 = vector.extract_strided_slice %446 {offsets = [0, 384], sizes = [8, 128], strides = [1, 1]} : vector<8x512xf32> to vector<8x128xf32>
    %462 = arith.negf %461 : vector<8x128xf32>
    %463 = math.exp %462 : vector<8x128xf32>
    %cst_130 = arith.constant 1.000000e+00 : f32
    %464 = vector.broadcast %cst_130 : f32 to vector<8x128xf32>
    %465 = arith.addf %464, %463 : vector<8x128xf32>
    %466 = arith.divf %464, %465 : vector<8x128xf32>
    %467 = arith.mulf %458, %440 : vector<8x128xf32>
    %468 = arith.mulf %452, %460 : vector<8x128xf32>
    %469 = arith.addf %467, %468 : vector<8x128xf32>
    %470 = math.tanh %469 : vector<8x128xf32>
    %471 = arith.mulf %466, %470 : vector<8x128xf32>
    %c56_131 = arith.constant 56 : index
    %c0_132 = arith.constant 0 : index
    %472 = vector.load %arg9[%c56_131, %c0_132] : memref<64x512xf32, #tpu.memory_space<vmem>>, vector<8x512xf32>
    %473 = arith.truncf %471 : vector<8x128xf32> to vector<8x128xbf16>
    %cst_133 = arith.constant dense<0.000000e+00> : vector<8x512xf32>
    %474 = tpu.matmul %473, %266, %cst_133 {dimension_numbers = #tpu.dot_dimension_numbers<[1], [0], [0], [1], [0, 0, 1, 1], [], []>} : vector<8x128xbf16>, vector<128x512xbf16>, vector<8x512xf32> -> vector<8x512xf32>
    %475 = arith.addf %472, %474 : vector<8x512xf32>
    %476 = vector.extract_strided_slice %475 {offsets = [0, 0], sizes = [8, 128], strides = [1, 1]} : vector<8x512xf32> to vector<8x128xf32>
    %477 = arith.negf %476 : vector<8x128xf32>
    %478 = math.exp %477 : vector<8x128xf32>
    %cst_134 = arith.constant 1.000000e+00 : f32
    %479 = vector.broadcast %cst_134 : f32 to vector<8x128xf32>
    %480 = arith.addf %479, %478 : vector<8x128xf32>
    %481 = arith.divf %479, %480 : vector<8x128xf32>
    %482 = vector.extract_strided_slice %475 {offsets = [0, 128], sizes = [8, 128], strides = [1, 1]} : vector<8x512xf32> to vector<8x128xf32>
    %483 = arith.negf %482 : vector<8x128xf32>
    %484 = math.exp %483 : vector<8x128xf32>
    %cst_135 = arith.constant 1.000000e+00 : f32
    %485 = vector.broadcast %cst_135 : f32 to vector<8x128xf32>
    %486 = arith.addf %485, %484 : vector<8x128xf32>
    %487 = arith.divf %485, %486 : vector<8x128xf32>
    %488 = vector.extract_strided_slice %475 {offsets = [0, 256], sizes = [8, 128], strides = [1, 1]} : vector<8x512xf32> to vector<8x128xf32>
    %489 = math.tanh %488 : vector<8x128xf32>
    %490 = vector.extract_strided_slice %475 {offsets = [0, 384], sizes = [8, 128], strides = [1, 1]} : vector<8x512xf32> to vector<8x128xf32>
    %491 = arith.negf %490 : vector<8x128xf32>
    %492 = math.exp %491 : vector<8x128xf32>
    %cst_136 = arith.constant 1.000000e+00 : f32
    %493 = vector.broadcast %cst_136 : f32 to vector<8x128xf32>
    %494 = arith.addf %493, %492 : vector<8x128xf32>
    %495 = arith.divf %493, %494 : vector<8x128xf32>
    %496 = arith.mulf %487, %469 : vector<8x128xf32>
    %497 = arith.mulf %481, %489 : vector<8x128xf32>
    %498 = arith.addf %496, %497 : vector<8x128xf32>
    %499 = math.tanh %498 : vector<8x128xf32>
    %500 = arith.mulf %495, %499 : vector<8x128xf32>
    %cst_137 = arith.constant 0.000000e+00 : f32
    %501 = vector.broadcast %cst_137 : f32 to vector<8x128xf32>
    %502 = arith.maximumf %500, %501 : vector<8x128xf32>
    %503 = arith.truncf %502 : vector<8x128xf32> to vector<8x128xbf16>
    %c0_138 = arith.constant 0 : index
    %c0_139 = arith.constant 0 : index
    %504 = vector.load %arg5[%c0_138, %c0_139] : memref<128x128xbf16, #tpu.memory_space<vmem>>, vector<128x128xbf16>
    %cst_140 = arith.constant dense<0.000000e+00> : vector<8x128xf32>
    %505 = tpu.matmul %503, %504, %cst_140 {dimension_numbers = #tpu.dot_dimension_numbers<[1], [0], [0], [1], [0, 0, 1, 1], [], []>} : vector<8x128xbf16>, vector<128x128xbf16>, vector<8x128xf32> -> vector<8x128xf32>
    %c0_141 = arith.constant 0 : index
    %c0_142 = arith.constant 0 : index
    %506 = vector.load %arg6[%c0_141, %c0_142] : memref<1x128xf32, #tpu.memory_space<vmem>>, vector<1x128xf32>
    %507 = vector.broadcast %506 : vector<1x128xf32> to vector<8x128xf32>
    %508 = arith.addf %505, %507 : vector<8x128xf32>
    %c0_143 = arith.constant 0 : index
    %c0_144 = arith.constant 0 : index
    %509 = vector.load %arg7[%c0_143, %c0_144] : memref<8x128xf32, #tpu.memory_space<vmem>>, vector<8x128xf32>
    tpu.vector_store %arg7[%c0_143, %c0_144], %508 {strides = array<i32>} : memref<8x128xf32, #tpu.memory_space<vmem>>, vector<8x128xf32>,
    return
  }
  func.func @transform_0(%arg0: i32) -> (i32, i32) {
    %c0_i32 = arith.constant 0 : i32
    %c0_i32_0 = arith.constant 0 : i32
    %c0_i32_1 = arith.constant 0 : i32
    return %c0_i32, %c0_i32_0 : i32, i32
  }
  func.func @transform_1(%arg0: i32) -> (i32, i32, i32) {
    %c0_i32 = arith.constant 0 : i32
    %c0_i32_0 = arith.constant 0 : i32
    %c0_i32_1 = arith.constant 0 : i32
    %c0_i32_2 = arith.constant 0 : i32
    return %c0_i32, %c0_i32_0, %c0_i32_1 : i32, i32, i32
  }
  func.func @transform_2(%arg0: i32) -> (i32, i32, i32) {
    %c0_i32 = arith.constant 0 : i32
    %c0_i32_0 = arith.constant 0 : i32
    %c0_i32_1 = arith.constant 0 : i32
    %c0_i32_2 = arith.constant 0 : i32
    return %c0_i32, %c0_i32_0, %c0_i32_1 : i32, i32, i32
  }
  func.func @transform_3(%arg0: i32) -> (i32, i32, i32) {
    %c0_i32 = arith.constant 0 : i32
    %c0_i32_0 = arith.constant 0 : i32
    %c0_i32_1 = arith.constant 0 : i32
    %c0_i32_2 = arith.constant 0 : i32
    return %c0_i32, %c0_i32_0, %c0_i32_1 : i32, i32, i32
  }
  func.func @transform_4(%arg0: i32) -> (i32, i32) {
    %c0_i32 = arith.constant 0 : i32
    %c0_i32_0 = arith.constant 0 : i32
    %c0_i32_1 = arith.constant 0 : i32
    return %c0_i32, %c0_i32_0 : i32, i32
  }
  func.func @transform_5(%arg0: i32) -> (i32, i32) {
    %c0_i32 = arith.constant 0 : i32
    %c0_i32_0 = arith.constant 0 : i32
    %c0_i32_1 = arith.constant 0 : i32
    return %c0_i32, %c0_i32_0 : i32, i32
  }
  func.func @transform_6(%arg0: i32) -> (i32, i32) {
    %c0_i32 = arith.constant 0 : i32
    %c0_i32_0 = arith.constant 0 : i32
    %c0_i32_1 = arith.constant 0 : i32
    return %c0_i32, %c0_i32_0 : i32, i32
  }
}

</mosaic_0001>

<bundles_post_ra>
// kernel: forward.1
= control target key start
LH: loop header
LB: loop body
LE: loop exit
PB: predicated region body
PF: predicated region fallthrough
CT: control target
= control target key end

     0   :  { %11 = vsyncpa [#allocation5], 0  ;;  %s5552_s0 = inlined_call_operand.vmem [shape: bf16[64,128], index: 0, kind: input, shape index: {}]   ;;  %s5553_s1 = inlined_call_operand.hbm [shape: bf16[2,128,512], index: 1, kind: input, shape index: {}]   ;;  %s5554_s2 = inlined_call_operand.hbm [shape: bf16[2,128,512], index: 2, kind: input, shape index: {}]   ;;  %s5555_s3 = inlined_call_operand.hbm [shape: f32[2,1,512], index: 3, kind: input, shape index: {}]   ;;  %s5556_s4 = inlined_call_operand.vmem [shape: bf16[128,128], index: 4, kind: input, shape index: {}]   ;;  %s5557_s5 = inlined_call_operand.vmem [shape: f32[1,128], index: 5, kind: input, shape index: {}]   ;;  %s5558_s6 = inlined_call_operand.vmem [shape: f32[8,128], index: 6, kind: output, shape index: {}]  }
   0x1   :  { %12 = vsyncpa [#allocation7], 0  ;;  %s32_s23 = sshll.u32 %s5554_s2, 4  ;;  %s4379_s24 = smov [#allocation6]   ;;  %s33_s23 = int_to_ptr.hbm [resolvable:$true] %s32_s23 }
   0x2   :  { %s34_s25 = sshll.u32 %s4379_s24, 4  ;;  %s19_s28 = sshll.u32 %s5553_s1, 4  ;;  %s35_s25 = int_to_ptr.vmem [resolvable:$true] %s34_s25  ;;  %s20_s28 = int_to_ptr.hbm [resolvable:$true] %s19_s28 }
   0x3   :  { %s4380_s29 = smov 256   ;;  %s4381_s30 = smov 16  }
   0x4   :  { %40 = dma.hbm_to_vmem [thread:$0]  %s33_s23, 8192, %s35_s25, [#allocation7], %s4380_s29, %s4380_s29, %s4381_s30  }
   0x5   :  { %s4382_s7 = smov [#allocation4]   ;;  %s45_s11 = sshll.u32 %s5555_s3, 4  ;;  %s46_s11 = int_to_ptr.hbm [resolvable:$true] %s45_s11 }
   0x6   :  { %s21_s8 = sshll.u32 %s4382_s7, 4  ;;  %s4383_s2 = smov [#allocation8]   ;;  %s22_s8 = int_to_ptr.vmem [resolvable:$true] %s21_s8 }
   0x7   :  { %27 = dma.hbm_to_vmem [thread:$0]  %s20_s28, 8192, %s22_s8, [#allocation5], %s4380_s29, %s4380_s29, %s4381_s30  }
   0x8   :  { %s47_s12 = sshll.u32 %s4383_s2, 4  ;;  %s4384_s13 = smov 64   ;;  %s48_s12 = int_to_ptr.vmem [resolvable:$true] %s47_s12 }
   0x9   :  { %s4385_s14 = smov 4  }
   0xa   :  { %53 = dma.hbm_to_vmem [thread:$0]  %s46_s11, 128, %s48_s12, [#allocation7], %s4384_s13, %s4384_s13, %s4385_s14  }
   0xb   :  { %4375 = dma.done.wait [#allocation5], 8192  }
   0xc   :  { %4376 = vsyncadd [#allocation5], 4294959104 }
   0xd   :  { %4377 = dma.done.wait [#allocation7], 8320  }
   0xe   :  { %4378 = vsyncadd [#allocation7], 4294958976  ;;  %v3420_v0 = vld [vmem:[#allocation4 + $0xe0] sm:$0xf]  ;;  %v3932_v1 = vld [vmem:[#allocation4 + $0xec] sm:$0xf0] }
   0xf   :  { %v3930_v2 = vld [vmem:[#allocation4 + $0xe4] sm:$0xf]  ;;  %v3421_v3 = vor.u32 %v3932_v1, %v3420_v0  ;;  %v3422_v4 = vld [vmem:[#allocation4 + $0xf0] sm:$0xf0]  ;;  %v3428_v5 = vld [vmem:[#allocation4 + $0xe8] sm:$0xf] }
  0x10   :  { %v3933_v6 = vld [vmem:[#allocation4 + $0xf4] sm:$0xf0]  ;;  %v3425_v7 = vor.u32 %v3930_v2, %v3422_v4  ;;  %v3931_v9 = vld [vmem:[#allocation4 + $0xec] sm:$0xf]  ;;  %v3430_v10 = vld [vmem:[#allocation4 + $0xf8] sm:$0xf0] }
  0x11   :  { %v3429_v8 = vor.u32 %v3933_v6, %v3428_v5  ;;  %v3404_v11 = vld [vmem:[#allocation4 + $0xc0] sm:$0xf]  ;;  %313 = vmatpush.bf16.msra.mxu0 %v3421_v3  ;;  %v3433_v12 = vor.u32 %v3931_v9, %v3430_v10  ;;  %v3928_v13 = vld [vmem:[#allocation4 + $0xcc] sm:$0xf0]  ;;  %v3926_v14 = vld [vmem:[#allocation4 + $0xc4] sm:$0xf] }
  0x12   :  { %v3406_v15 = vld [vmem:[#allocation4 + $0xd0] sm:$0xf0]  ;;  %342 = vmatpush.bf16.msra.mxu1 %v3425_v7  ;;  %v3405_v16 = vor.u32 %v3928_v13, %v3404_v11  ;;  %v3412_v18 = vld [vmem:[#allocation4 + $0xc8] sm:$0xf]  ;;  %v3929_v19 = vld [vmem:[#allocation4 + $0xd4] sm:$0xf0] }
  0x13   :  { %371 = vmatpush.bf16.msra.mxu2 %v3429_v8  ;;  %v3409_v17 = vor.u32 %v3926_v14, %v3406_v15  ;;  %v3927_v20 = vld [vmem:[#allocation4 + $0xcc] sm:$0xf]  ;;  %400 = vmatpush.bf16.msra.mxu3 %v3433_v12  ;;  %v3413_v21 = vor.u32 %v3929_v19, %v3412_v18  ;;  %v3414_v22 = vld [vmem:[#allocation4 + $0xd8] sm:$0xf0]  ;;  %v3388_v23 = vld [vmem:[#allocation4 + $0xa0] sm:$0xf] }
  0x14   :  { %v3924_v24 = vld [vmem:[#allocation4 + $0xac] sm:$0xf0]  ;;  %v3417_v25 = vor.u32 %v3927_v20, %v3414_v22  ;;  %v3922_v26 = vld [vmem:[#allocation4 + $0xa4] sm:$0xf]  ;;  %v3390_v27 = vld [vmem:[#allocation4 + $0xb0] sm:$0xf0] }
  0x15   :  { %v3396_v28 = vld [vmem:[#allocation4 + $0xa8] sm:$0xf]  ;;  %314 = vmatpush.bf16.msra.mxu0 %v3405_v16  ;;  %v3389_v29 = vor.u32 %v3924_v24, %v3388_v23  ;;  %v3925_v30 = vld [vmem:[#allocation4 + $0xb4] sm:$0xf0]  ;;  %v3923_v31 = vld [vmem:[#allocation4 + $0xac] sm:$0xf]  ;;  %v3393_v33 = vor.u32 %v3922_v26, %v3390_v27 }
  0x16   :  { %v3398_v32 = vld [vmem:[#allocation4 + $0xb8] sm:$0xf0]  ;;  %343 = vmatpush.bf16.msra.mxu1 %v3409_v17  ;;  %v3397_v34 = vor.u32 %v3925_v30, %v3396_v28  ;;  %v3372_v35 = vld [vmem:[#allocation4 + $0x80] sm:$0xf]  ;;  %v3920_v36 = vld [vmem:[#allocation4 + $0x8c] sm:$0xf0] }
  0x17   :  { %372 = vmatpush.bf16.msra.mxu2 %v3413_v21  ;;  %v3918_v37 = vld [vmem:[#allocation4 + $0x84] sm:$0xf]  ;;  %401 = vmatpush.bf16.msra.mxu3 %v3417_v25  ;;  %v3401_v38 = vor.u32 %v3923_v31, %v3398_v32  ;;  %v3374_v39 = vld [vmem:[#allocation4 + $0x90] sm:$0xf0]  ;;  %v3380_v40 = vld [vmem:[#allocation4 + $0x88] sm:$0xf]  ;;  %v3373_v44 = vor.u32 %v3920_v36, %v3372_v35 }
  0x18   :  { %v3921_v41 = vld [vmem:[#allocation4 + $0x94] sm:$0xf0]  ;;  %v3919_v42 = vld [vmem:[#allocation4 + $0x8c] sm:$0xf]  ;;  %v3382_v43 = vld [vmem:[#allocation4 + $0x98] sm:$0xf0]  ;;  %v3377_v45 = vor.u32 %v3918_v37, %v3374_v39 }
  0x19   :  { %315 = vmatpush.bf16.msra.mxu0 %v3389_v29  ;;  %v3381_v46 = vor.u32 %v3921_v41, %v3380_v40  ;;  %v3356_v47 = vld [vmem:[#allocation4 + $0x60] sm:$0xf]  ;;  %v3916_v48 = vld [vmem:[#allocation4 + $0x6c] sm:$0xf0]  ;;  %v3914_v49 = vld [vmem:[#allocation4 + $0x64] sm:$0xf]  ;;  %v3385_v50 = vor.u32 %v3919_v42, %v3382_v43 }
  0x1a   :  { %344 = vmatpush.bf16.msra.mxu1 %v3393_v33  ;;  %v3358_v51 = vld [vmem:[#allocation4 + $0x70] sm:$0xf0]  ;;  %v3364_v52 = vld [vmem:[#allocation4 + $0x68] sm:$0xf]  ;;  %v3917_v53 = vld [vmem:[#allocation4 + $0x74] sm:$0xf0]  ;;  %v3357_v56 = vor.u32 %v3916_v48, %v3356_v47 }
  0x1b   :  { %373 = vmatpush.bf16.msra.mxu2 %v3397_v34  ;;  %402 = vmatpush.bf16.msra.mxu3 %v3401_v38  ;;  %v3915_v54 = vld [vmem:[#allocation4 + $0x6c] sm:$0xf]  ;;  %v3366_v55 = vld [vmem:[#allocation4 + $0x78] sm:$0xf0]  ;;  %v3361_v57 = vor.u32 %v3914_v49, %v3358_v51  ;;  %v3365_v58 = vor.u32 %v3917_v53, %v3364_v52  ;;  %v3340_v59 = vld [vmem:[#allocation4 + $0x40] sm:$0xf] }
  0x1c   :  { %v3912_v60 = vld [vmem:[#allocation4 + $0x4c] sm:$0xf0]  ;;  %v3910_v61 = vld [vmem:[#allocation4 + $0x44] sm:$0xf]  ;;  %v3369_v62 = vor.u32 %v3915_v54, %v3366_v55  ;;  %v3342_v63 = vld [vmem:[#allocation4 + $0x50] sm:$0xf0] }
  0x1d   :  { %316 = vmatpush.bf16.msra.mxu0 %v3373_v44  ;;  %v3348_v0 = vld [vmem:[#allocation4 + $0x48] sm:$0xf]  ;;  %v3913_v1 = vld [vmem:[#allocation4 + $0x54] sm:$0xf0]  ;;  %v3911_v2 = vld [vmem:[#allocation4 + $0x4c] sm:$0xf]  ;;  %v3341_v4 = vor.u32 %v3912_v60, %v3340_v59  ;;  %v3345_v5 = vor.u32 %v3910_v61, %v3342_v63 }
  0x1e   :  { %345 = vmatpush.bf16.msra.mxu1 %v3377_v45  ;;  %v3350_v3 = vld [vmem:[#allocation4 + $0x58] sm:$0xf0]  ;;  %v3349_v6 = vor.u32 %v3913_v1, %v3348_v0  ;;  %v3324_v7 = vld [vmem:[#allocation4 + $0x20] sm:$0xf]  ;;  %v3908_v8 = vld [vmem:[#allocation4 + $0x2c] sm:$0xf0] }
  0x1f   :  { %374 = vmatpush.bf16.msra.mxu2 %v3381_v46  ;;  %403 = vmatpush.bf16.msra.mxu3 %v3385_v50  ;;  %v3906_v9 = vld [vmem:[#allocation4 + $0x24] sm:$0xf]  ;;  %v3353_v10 = vor.u32 %v3911_v2, %v3350_v3  ;;  %v3326_v11 = vld [vmem:[#allocation4 + $0x30] sm:$0xf0]  ;;  %v3332_v12 = vld [vmem:[#allocation4 + $0x28] sm:$0xf]  ;;  %v3325_v16 = vor.u32 %v3908_v8, %v3324_v7 }
  0x20   :  { %v3909_v13 = vld [vmem:[#allocation4 + $0x34] sm:$0xf0]  ;;  %v3907_v14 = vld [vmem:[#allocation4 + $0x2c] sm:$0xf]  ;;  %v3334_v15 = vld [vmem:[#allocation4 + $0x38] sm:$0xf0]  ;;  %v3329_v18 = vor.u32 %v3906_v9, %v3326_v11 }
  0x21   :  { %317 = vmatpush.bf16.msra.mxu0 %v3357_v56  ;;  %v3308_v17 = vld [vmem:[#allocation4] sm:$0xf]  ;;  %v3333_v19 = vor.u32 %v3909_v13, %v3332_v12  ;;  %v3904_v20 = vld [vmem:[#allocation4 + $0xc] sm:$0xf0]  ;;  %v3902_v21 = vld [vmem:[#allocation4 + $0x4] sm:$0xf]  ;;  %v3337_v23 = vor.u32 %v3907_v14, %v3334_v15 }
  0x22   :  { %346 = vmatpush.bf16.msra.mxu1 %v3361_v57  ;;  %v3310_v22 = vld [vmem:[#allocation4 + $0x10] sm:$0xf0]  ;;  %v3316_v24 = vld [vmem:[#allocation4 + $0x8] sm:$0xf]  ;;  %v3905_v25 = vld [vmem:[#allocation4 + $0x14] sm:$0xf0]  ;;  %v3309_v30 = vor.u32 %v3904_v20, %v3308_v17 }
  0x23   :  { %375 = vmatpush.bf16.msra.mxu2 %v3365_v58  ;;  %404 = vmatpush.bf16.msra.mxu3 %v3369_v62  ;;  %v3903_v26 = vld [vmem:[#allocation4 + $0xc] sm:$0xf]  ;;  %v3318_v27 = vld [vmem:[#allocation4 + $0x18] sm:$0xf0]  ;;  %v3548_v28 = vld [vmem:[#allocation6 + $0xe0] sm:$0xf]  ;;  %v3313_v33 = vor.u32 %v3902_v21, %v3310_v22  ;;  %v3317_v34 = vor.u32 %v3905_v25, %v3316_v24 }
  0x24   :  { %v3964_v29 = vld [vmem:[#allocation6 + $0xec] sm:$0xf0]  ;;  %v3962_v31 = vld [vmem:[#allocation6 + $0xe4] sm:$0xf]  ;;  %v3550_v32 = vld [vmem:[#allocation6 + $0xf0] sm:$0xf0]  ;;  %v3321_v36 = vor.u32 %v3903_v26, %v3318_v27 }
  0x25   :  { %318 = vmatpush.bf16.msra.mxu0 %v3341_v4  ;;  %v3898_v35 = vld [vmem:[%s5552_s0] sm:$0xff]  ;;  %v4434_v37 = vor.u32 %v3964_v29, %v3548_v28  ;;  %v3963_v38 = vld [vmem:[#allocation6 + $0xec] sm:$0xf]  ;;  %v3556_v39 = vld [vmem:[#allocation6 + $0xe8] sm:$0xf]  ;;  %v4436_v41 = vor.u32 %v3962_v31, %v3550_v32 }
  0x26   :  { %347 = vmatpush.bf16.msra.mxu1 %v3345_v5  ;;  %v3965_v40 = vld [vmem:[#allocation6 + $0xf4] sm:$0xf0]  ;;  %v3558_v42 = vld [vmem:[#allocation6 + $0xf8] sm:$0xf0]  ;;  %v3532_v43 = vld [vmem:[#allocation6 + $0xc0] sm:$0xf] }
  0x27   :  { %376 = vmatpush.bf16.msra.mxu2 %v3349_v6  ;;  %405 = vmatpush.bf16.msra.mxu3 %v3353_v10  ;;  %v3960_v44 = vld [vmem:[#allocation6 + $0xcc] sm:$0xf0]  ;;  %v3958_v45 = vld [vmem:[#allocation6 + $0xc4] sm:$0xf]  ;;  %v3534_v46 = vld [vmem:[#allocation6 + $0xd0] sm:$0xf0]  ;;  %v4438_v47 = vor.u32 %v3965_v40, %v3556_v39  ;;  %v4441_v48 = vor.u32 %v3963_v38, %v3558_v42 }
  0x28   :  { %v4443_v49 = vor.u32 %v3960_v44, %v3532_v43  ;;  %v3959_v50 = vld [vmem:[#allocation6 + $0xcc] sm:$0xf]  ;;  %v3540_v51 = vld [vmem:[#allocation6 + $0xc8] sm:$0xf]  ;;  %v3961_v52 = vld [vmem:[#allocation6 + $0xd4] sm:$0xf0]  ;;  %v4446_v53 = vor.u32 %v3958_v45, %v3534_v46 }
  0x29   :  { %319 = vmatpush.bf16.msra.mxu0 %v3325_v16  ;;  %v3542_v54 = vld [vmem:[#allocation6 + $0xd8] sm:$0xf0]  ;;  %v3516_v55 = vld [vmem:[#allocation6 + $0xa0] sm:$0xf]  ;;  %v3956_v56 = vld [vmem:[#allocation6 + $0xac] sm:$0xf0]  ;;  %v4449_v59 = vor.u32 %v3961_v52, %v3540_v51 }
  0x2a   :  { %348 = vmatpush.bf16.msra.mxu1 %v3329_v18  ;;  %v3954_v57 = vld [vmem:[#allocation6 + $0xa4] sm:$0xf]  ;;  %v3518_v58 = vld [vmem:[#allocation6 + $0xb0] sm:$0xf0]  ;;  %v4453_v60 = vor.u32 %v3959_v50, %v3542_v54  ;;  %v4455_v61 = vor.u32 %v3956_v56, %v3516_v55  ;;  %v3955_v62 = vld [vmem:[#allocation6 + $0xac] sm:$0xf] }
  0x2b   :  { %377 = vmatpush.bf16.msra.mxu2 %v3333_v19  ;;  %406 = vmatpush.bf16.msra.mxu3 %v3337_v23  ;;  %v3524_v63 = vld [vmem:[#allocation6 + $0xa8] sm:$0xf]  ;;  %v3957_v0 = vld [vmem:[#allocation6 + $0xb4] sm:$0xf0]  ;;  %v4458_v1 = vor.u32 %v3954_v57, %v3518_v58  ;;  %v3526_v2 = vld [vmem:[#allocation6 + $0xb8] sm:$0xf0] }
  0x2c   :  { %v3500_v3 = vld [vmem:[#allocation6 + $0x80] sm:$0xf]  ;;  %v3952_v4 = vld [vmem:[#allocation6 + $0x8c] sm:$0xf0]  ;;  %v3950_v5 = vld [vmem:[#allocation6 + $0x84] sm:$0xf]  ;;  %v4461_v7 = vor.u32 %v3957_v0, %v3524_v63  ;;  %v4465_v8 = vor.u32 %v3955_v62, %v3526_v2 }
  0x2d   :  { %320 = vmatpush.bf16.msra.mxu0 %v3309_v30  ;;  %v3502_v6 = vld [vmem:[#allocation6 + $0x90] sm:$0xf0]  ;;  %v4467_v9 = vor.u32 %v3952_v4, %v3500_v3  ;;  %v3951_v10 = vld [vmem:[#allocation6 + $0x8c] sm:$0xf]  ;;  %v3508_v11 = vld [vmem:[#allocation6 + $0x88] sm:$0xf] }
  0x2e   :  { %349 = vmatpush.bf16.msra.mxu1 %v3313_v33  ;;  %v3953_v12 = vld [vmem:[#allocation6 + $0x94] sm:$0xf0]  ;;  %v4470_v13 = vor.u32 %v3950_v5, %v3502_v6  ;;  %v3510_v14 = vld [vmem:[#allocation6 + $0x98] sm:$0xf0]  ;;  %v3484_v15 = vld [vmem:[#allocation6 + $0x60] sm:$0xf] }
  0x2f   :  { %378 = vmatpush.bf16.msra.mxu2 %v3317_v34  ;;  %407 = vmatpush.bf16.msra.mxu3 %v3321_v36  ;;  %v3948_v16 = vld [vmem:[#allocation6 + $0x6c] sm:$0xf0]  ;;  %v3946_v17 = vld [vmem:[#allocation6 + $0x64] sm:$0xf]  ;;  %v3486_v18 = vld [vmem:[#allocation6 + $0x70] sm:$0xf0]  ;;  %v4476_v20 = vor.u32 %v3953_v12, %v3508_v11  ;;  %v4480_v21 = vor.u32 %v3951_v10, %v3510_v14 }
  0x30   :  { %321 = vmatmul.bf16.vlgmr.msra.gmra.mxu0 %v3898_v35  ;;  %v3899_v19 = vld [vmem:[%s5552_s0 + $0x8] sm:$0xff]  ;;  %v4482_v22 = vor.u32 %v3948_v16, %v3484_v15  ;;  %v3949_v25 = vld [vmem:[#allocation6 + $0x74] sm:$0xf0]  ;;  %v4485_v26 = vor.u32 %v3946_v17, %v3486_v18  ;;  %v3494_v27 = vld [vmem:[#allocation6 + $0x78] sm:$0xf0]  ;;  %v5559_v18 = vmov 0  }
  0x31   :  { %657 = vmatpush.bf16.msrb.mxu0 %v4434_v37  ;;  %350 = vmatmul.bf16.vlgmr.msra.gmra.mxu1 %v3898_v35  ;;  %v3947_v23 = vld [vmem:[#allocation6 + $0x6c] sm:$0xf]  ;;  %v3492_v24 = vld [vmem:[#allocation6 + $0x68] sm:$0xf]  ;;  %v3468_v28 = vld [vmem:[#allocation6 + $0x40] sm:$0xf] }
  0x32   :  { %670 = vmatpush.bf16.msrb.mxu1 %v4436_v41  ;;  %379 = vmatmul.bf16.vlgmr.msra.gmra.mxu2 %v3898_v35  ;;  %v3944_v29 = vld [vmem:[#allocation6 + $0x4c] sm:$0xf0]  ;;  %v3942_v30 = vld [vmem:[#allocation6 + $0x44] sm:$0xf]  ;;  %v3470_v31 = vld [vmem:[#allocation6 + $0x50] sm:$0xf0]  ;;  %v4488_v32 = vor.u32 %v3949_v25, %v3492_v24  ;;  %v4492_v33 = vor.u32 %v3947_v23, %v3494_v27 }
  0x33   :  { %408 = vmatmul.bf16.vlgmr.msra.gmra.mxu3 %v3898_v35  ;;  %683 = vmatpush.bf16.msrb.mxu2 %v4438_v47  ;;  %v4494_v34 = vor.u32 %v3944_v29, %v3468_v28  ;;  %v4497_v35 = vor.u32 %v3942_v30, %v3470_v31  ;;  %v3943_v36 = vld [vmem:[#allocation6 + $0x4c] sm:$0xf]  ;;  %v3478_v38 = vld [vmem:[#allocation6 + $0x58] sm:$0xf0]  ;;  %v3452_v39 = vld [vmem:[#allocation6 + $0x20] sm:$0xf] }
  0x34   :  { %696 = vmatpush.bf16.msrb.mxu3 %v4441_v48  ;;  %v3940_v40 = vld [vmem:[#allocation6 + $0x2c] sm:$0xf0]  ;;  %v3938_v42 = vld [vmem:[#allocation6 + $0x24] sm:$0xf]  ;;  %v4502_v43 = vor.u32 %v3943_v36, %v3478_v38  ;;  %v3454_v45 = vld [vmem:[#allocation6 + $0x30] sm:$0xf0] }
  0x35   :  { %658 = vmatpush.bf16.msrb.mxu0 %v4443_v49  ;;  %v4504_v44 = vor.u32 %v3940_v40, %v3452_v39  ;;  %v3476_v46 = vld [vmem:[#allocation6 + $0x48] sm:$0xf]  ;;  %v3945_v50 = vld [vmem:[#allocation6 + $0x54] sm:$0xf0]  ;;  %v4507_v51 = vor.u32 %v3938_v42, %v3454_v45  ;;  %v3939_v54 = vld [vmem:[#allocation6 + $0x2c] sm:$0xf] }
  0x36   :  { %671 = vmatpush.bf16.msrb.mxu1 %v4446_v53  ;;  %v4509_v52 = vor.u32 %v3945_v50, %v3476_v46  ;;  %v3462_v55 = vld [vmem:[#allocation6 + $0x38] sm:$0xf0]  ;;  %v3436_v56 = vld [vmem:[#allocation6] sm:$0xf]  ;;  %v3936_v57 = vld [vmem:[#allocation6 + $0xc] sm:$0xf0] }
  0x37   :  { %684 = vmatpush.bf16.msrb.mxu2 %v4449_v59  ;;  %v3934_v58 = vld [vmem:[#allocation6 + $0x4] sm:$0xf]  ;;  %v3438_v62 = vld [vmem:[#allocation6 + $0x10] sm:$0xf0]  ;;  %v3460_v63 = vld [vmem:[#allocation6 + $0x28] sm:$0xf]  ;;  %v4514_v2 = vor.u32 %v3939_v54, %v3462_v55  ;;  %v4516_v3 = vor.u32 %v3936_v57, %v3436_v56 }
  0x38   :  { %697 = vmatpush.bf16.msrb.mxu3 %v4453_v60  ;;  %v3941_v0 = vld [vmem:[#allocation6 + $0x34] sm:$0xf0]  ;;  %v3444_v5 = vld [vmem:[#allocation6 + $0x8] sm:$0xf]  ;;  %v4521_v10 = vor.u32 %v3934_v58, %v3438_v62  ;;  %v3935_v11 = vld [vmem:[#allocation6 + $0xc] sm:$0xf] }
  0x39   :  { %659 = vmatpush.bf16.msrb.mxu0 %v4455_v61  ;;  %v4518_v4 = vor.u32 %v3941_v0, %v3460_v63  ;;  %v3937_v6 = vld [vmem:[#allocation6 + $0x14] sm:$0xf0]  ;;  %v3446_v12 = vld [vmem:[#allocation6 + $0x18] sm:$0xf0]  ;;  %v3900_v16 = vld [vmem:[%s5552_s0 + $0x10] sm:$0xff] }
  0x3a   :  { %672 = vmatpush.bf16.msrb.mxu1 %v4458_v1  ;;  %v4524_v14 = vor.u32 %v3937_v6, %v3444_v5  ;;  %v4528_v15 = vor.u32 %v3935_v11, %v3446_v12  ;;  %v3901_v17 = vld [vmem:[%s5552_s0 + $0x18] sm:$0xff]  ;;  %v119_v29 = vld [vmem:[#allocation8] sm:$0xf] }
  0x3b   :  { %685 = vmatpush.bf16.msrb.mxu2 %v4461_v7  ;;  %v4613_v30 = vperm.slane %v119_v29, 0  ;;  %v4617_v36 = vperm.slane %v119_v29, 1  ;;  %v4627_v46 = vperm.slane %v119_v29, 2  ;;  %v4629_v50 = vperm.slane %v119_v29, 3 }
  0x3c   :  { %698 = vmatpush.bf16.msrb.mxu3 %v4465_v8 }
  0x3d   :  { %660 = vmatpush.bf16.msrb.mxu0 %v4467_v9 }
  0x3e   :  { %673 = vmatpush.bf16.msrb.mxu1 %v4470_v13 }
  0x3f   :  { %686 = vmatpush.bf16.msrb.mxu2 %v4476_v20 }
  0x40   :  { %699 = vmatpush.bf16.msrb.mxu3 %v4480_v21  ;;  %326 = vmatmul.bf16.gmra.mxu0 %v3899_v19 }
  0x41   :  { %661 = vmatpush.bf16.msrb.mxu0 %v4482_v22  ;;  %355 = vmatmul.bf16.gmra.mxu1 %v3899_v19 }
  0x42   :  { %674 = vmatpush.bf16.msrb.mxu1 %v4485_v26  ;;  %384 = vmatmul.bf16.gmra.mxu2 %v3899_v19 }
  0x43   :  { %413 = vmatmul.bf16.gmra.mxu3 %v3899_v19  ;;  %687 = vmatpush.bf16.msrb.mxu2 %v4488_v32 }
  0x44   :  { %700 = vmatpush.bf16.msrb.mxu3 %v4492_v33 }
  0x45   :  { %662 = vmatpush.bf16.msrb.mxu0 %v4494_v34 }
  0x46   :  { %675 = vmatpush.bf16.msrb.mxu1 %v4497_v35 }
  0x47   :  { %688 = vmatpush.bf16.msrb.mxu2 %v4509_v52 }
  0x48   :  { %701 = vmatpush.bf16.msrb.mxu3 %v4502_v43 }
  0x49   :  { %663 = vmatpush.bf16.msrb.mxu0 %v4504_v44 }
  0x4a   :  { %676 = vmatpush.bf16.msrb.mxu1 %v4507_v51 }
  0x4b   :  { %689 = vmatpush.bf16.msrb.mxu2 %v4518_v4 }
  0x4c   :  { %702 = vmatpush.bf16.msrb.mxu3 %v4514_v2 }
  0x4d   :  { %664 = vmatpush.bf16.msrb.mxu0 %v4516_v3 }
  0x4e   :  { %677 = vmatpush.bf16.msrb.mxu1 %v4521_v10 }
  0x4f   :  { %690 = vmatpush.bf16.msrb.mxu2 %v4524_v14 }
  0x50   :  { %703 = vmatpush.bf16.msrb.mxu3 %v4528_v15  ;;  %331 = vmatmul.bf16.gmra.mxu0 %v3900_v16 }
  0x51   :  { %782 = vmatpush.bf16.msra.mxu0 %v4434_v37  ;;  %360 = vmatmul.bf16.gmra.mxu1 %v3900_v16 }
  0x52   :  { %795 = vmatpush.bf16.msra.mxu1 %v4436_v41  ;;  %389 = vmatmul.bf16.gmra.mxu2 %v3900_v16 }
  0x53   :  { %808 = vmatpush.bf16.msra.mxu2 %v4438_v47  ;;  %418 = vmatmul.bf16.gmra.mxu3 %v3900_v16 }
  0x54   :  { %821 = vmatpush.bf16.msra.mxu3 %v4441_v48 }
  0x55   :  { %783 = vmatpush.bf16.msra.mxu0 %v4443_v49 }
  0x56   :  { %796 = vmatpush.bf16.msra.mxu1 %v4446_v53 }
  0x57   :  { %809 = vmatpush.bf16.msra.mxu2 %v4449_v59 }
  0x58   :  { %822 = vmatpush.bf16.msra.mxu3 %v4453_v60 }
  0x59   :  { %784 = vmatpush.bf16.msra.mxu0 %v4455_v61 }
  0x5a   :  { %797 = vmatpush.bf16.msra.mxu1 %v4458_v1 }
  0x5b   :  { %810 = vmatpush.bf16.msra.mxu2 %v4461_v7 }
  0x5c   :  { %823 = vmatpush.bf16.msra.mxu3 %v4465_v8 }
  0x5d   :  { %785 = vmatpush.bf16.msra.mxu0 %v4467_v9 }
  0x5e   :  { %798 = vmatpush.bf16.msra.mxu1 %v4470_v13 }
  0x5f   :  { %811 = vmatpush.bf16.msra.mxu2 %v4476_v20 }
  0x60   :  { %824 = vmatpush.bf16.msra.mxu3 %v4480_v21  ;;  %336 = vmatmul.bf16.gmra.mxu0 %v3901_v17 }
  0x61   :  { %786 = vmatpush.bf16.msra.mxu0 %v4482_v22  ;;  %365 = vmatmul.bf16.gmra.mxu1 %v3901_v17 }
  0x62   :  { %799 = vmatpush.bf16.msra.mxu1 %v4485_v26  ;;  %394 = vmatmul.bf16.gmra.mxu2 %v3901_v17 }
  0x63   :  { %812 = vmatpush.bf16.msra.mxu2 %v4488_v32  ;;  %423 = vmatmul.bf16.gmra.mxu3 %v3901_v17 }
  0x64   :  { %825 = vmatpush.bf16.msra.mxu3 %v4492_v33 }
  0x65   :  { %787 = vmatpush.bf16.msra.mxu0 %v4494_v34 }
  0x66   :  { %800 = vmatpush.bf16.msra.mxu1 %v4497_v35 }
  0x67   :  { %813 = vmatpush.bf16.msra.mxu2 %v4509_v52 }
  0x68   :  { %826 = vmatpush.bf16.msra.mxu3 %v4502_v43 }
  0x69   :  { %788 = vmatpush.bf16.msra.mxu0 %v4504_v44 }
  0x6a   :  { %801 = vmatpush.bf16.msra.mxu1 %v4507_v51 }
  0x6b   :  { %814 = vmatpush.bf16.msra.mxu2 %v4518_v4 }
  0x6c   :  { %827 = vmatpush.bf16.msra.mxu3 %v4514_v2 }
  0x6d   :  { %789 = vmatpush.bf16.msra.mxu0 %v4516_v3 }
  0x6e   :  { %802 = vmatpush.bf16.msra.mxu1 %v4521_v10 }
  0x6f   :  { %815 = vmatpush.bf16.msra.mxu2 %v4524_v14 }
  0x70   :  { %828 = vmatpush.bf16.msra.mxu3 %v4528_v15  ;;  %665 = vmatmul.bf16.vlgmr.msrb.gmra.mxu0 %v5559_v18 }
  0x71   :  { %678 = vmatmul.bf16.vlgmr.msrb.gmra.mxu1 %v5559_v18  ;;  %907 = vmatpush.bf16.msrb.mxu0 %v4434_v37 }
  0x72   :  { %691 = vmatmul.bf16.vlgmr.msrb.gmra.mxu2 %v5559_v18  ;;  %920 = vmatpush.bf16.msrb.mxu1 %v4436_v41 }
  0x73   :  { %704 = vmatmul.bf16.vlgmr.msrb.gmra.mxu3 %v5559_v18  ;;  %933 = vmatpush.bf16.msrb.mxu2 %v4438_v47 }
  0x74   :  { %946 = vmatpush.bf16.msrb.mxu3 %v4441_v48 }
  0x75   :  { %908 = vmatpush.bf16.msrb.mxu0 %v4443_v49 }
  0x76   :  { %921 = vmatpush.bf16.msrb.mxu1 %v4446_v53 }
  0x77   :  { %934 = vmatpush.bf16.msrb.mxu2 %v4449_v59 }
  0x78   :  { %947 = vmatpush.bf16.msrb.mxu3 %v4453_v60 }
  0x79   :  { %909 = vmatpush.bf16.msrb.mxu0 %v4455_v61 }
  0x7a   :  { %922 = vmatpush.bf16.msrb.mxu1 %v4458_v1 }
  0x7b   :  { %935 = vmatpush.bf16.msrb.mxu2 %v4461_v7 }
  0x7c   :  { %948 = vmatpush.bf16.msrb.mxu3 %v4465_v8 }
  0x7d   :  { %910 = vmatpush.bf16.msrb.mxu0 %v4467_v9 }
  0x7e   :  { %923 = vmatpush.bf16.msrb.mxu1 %v4470_v13 }
  0x7f   :  { %936 = vmatpush.bf16.msrb.mxu2 %v4476_v20 }
  0x80   :  { %949 = vmatpush.bf16.msrb.mxu3 %v4480_v21 }
  0x81   :  { %911 = vmatpush.bf16.msrb.mxu0 %v4482_v22 }
  0x82   :  { %924 = vmatpush.bf16.msrb.mxu1 %v4485_v26 }
  0x83   :  { %937 = vmatpush.bf16.msrb.mxu2 %v4488_v32 }
  0x84   :  { %950 = vmatpush.bf16.msrb.mxu3 %v4492_v33 }
  0x85   :  { %912 = vmatpush.bf16.msrb.mxu0 %v4494_v34 }
  0x86   :  { %925 = vmatpush.bf16.msrb.mxu1 %v4497_v35 }
  0x87   :  { %938 = vmatpush.bf16.msrb.mxu2 %v4509_v52 }
  0x88   :  { %951 = vmatpush.bf16.msrb.mxu3 %v4502_v43 }
  0x89   :  { %913 = vmatpush.bf16.msrb.mxu0 %v4504_v44 }
  0x8a   :  { %926 = vmatpush.bf16.msrb.mxu1 %v4507_v51 }
  0x8b   :  { %939 = vmatpush.bf16.msrb.mxu2 %v4518_v4 }
  0x8c   :  { %952 = vmatpush.bf16.msrb.mxu3 %v4514_v2 }
  0x8d   :  { %914 = vmatpush.bf16.msrb.mxu0 %v4516_v3 }
  0x8e   :  { %927 = vmatpush.bf16.msrb.mxu1 %v4521_v10 }
  0x8f   :  { %940 = vmatpush.bf16.msrb.mxu2 %v4524_v14 }
  0x90   :  { %953 = vmatpush.bf16.msrb.mxu3 %v4528_v15 }
  0xad   :  { %v322_v19 = vpop.f32.mrf.mxu0 }
  0xae   :  { %v351_v23 = vpop.f32.mrf.mxu1 }
  0xb5   :  { %v4607_v24 = vpop.f32.mrf.mxu2  ;;  %v4609_v27 = vpop.f32.mrf.mxu0 }
  0xb6   :  { %v409_v25 = vpop.f32.mrf.mxu3  ;;  %v4611_v28 = vpop.f32.mrf.mxu1 }
  0xbd   :  { %v4615_v31 = vpop.f32.mrf.mxu2  ;;  %v327_v39 = vpop.f32.mrf.mxu0 }
  0xbe   :  { %5565 = vst [vmem:[#allocation11_spill] sm:$0xff] %v4615_v31  ;;  %v4619_v38 = vpop.f32.mrf.mxu3  ;;  %v4622_v40 = vadd.f32 %v327_v39, %v4613_v30  ;;  %v356_v42 = vpop.f32.mrf.mxu1 }
  0xbf   :  { %v4625_v45 = vadd.f32 %v356_v42, %v4617_v36 }
  0xc0   :  { %5566 = vst [vmem:[#allocation12_spill] sm:$0xff] %v4622_v40 }
  0xc1   :  { %5567 = vst [vmem:[#allocation13_spill] sm:$0xff] %v4625_v45 }
  0xc5   :  { %v385_v54 = vpop.f32.mrf.mxu2  ;;  %v4634_v57 = vpop.f32.mrf.mxu0 }
  0xc6   :  { %v4632_v55 = vadd.f32 %v385_v54, %v4627_v46  ;;  %v414_v56 = vpop.f32.mrf.mxu3  ;;  %5569 = vst [vmem:[#allocation15_spill] sm:$0xff] %v4634_v57  ;;  %v4639_v62 = vpop.f32.mrf.mxu1 }
  0xc7   :  { %v4637_v58 = vadd.f32 %v414_v56, %v4629_v50  ;;  %5571 = vst [vmem:[#allocation17_spill] sm:$0xff] %v4639_v62 }
  0xc8   :  { %5568 = vst [vmem:[#allocation14_spill] sm:$0xff] %v4632_v55 }
  0xc9   :  { %5570 = vst [vmem:[#allocation16_spill] sm:$0xff] %v4637_v58 }
  0xcd   :  { %v4641_v63 = vpop.f32.mrf.mxu2  ;;  %v332_v5 = vpop.f32.mrf.mxu0 }
  0xce   :  { %5572 = vst [vmem:[#allocation18_spill] sm:$0xff] %v4641_v63  ;;  %v4643_v0 = vpop.f32.mrf.mxu3  ;;  %v4646_v6 = vadd.f32 %v332_v5, %v4613_v30  ;;  %v361_v11 = vpop.f32.mrf.mxu1 }
  0xcf   :  { %5573 = vst [vmem:[#allocation19_spill] sm:$0xff] %v4643_v0  ;;  %v4649_v12 = vadd.f32 %v361_v11, %v4617_v36 }
  0xd0   :  { %5574 = vst [vmem:[#allocation20_spill] sm:$0xff] %v4646_v6 }
  0xd1   :  { %5575 = vst [vmem:[#allocation21_spill] sm:$0xff] %v4649_v12 }
  0xd5   :  { %v390_v16 = vpop.f32.mrf.mxu2  ;;  %v4654_v39 = vpop.f32.mrf.mxu0 }
  0xd6   :  { %v4652_v17 = vadd.f32 %v390_v16, %v4627_v46  ;;  %v419_v29 = vpop.f32.mrf.mxu3  ;;  %5577 = vst [vmem:[#allocation23_spill] sm:$0xff] %v4654_v39  ;;  %v4659_v54 = vpop.f32.mrf.mxu1 }
  0xd7   :  { %v4657_v42 = vadd.f32 %v419_v29, %v4629_v50  ;;  %5579 = vst [vmem:[#allocation25_spill] sm:$0xff] %v4659_v54 }
  0xd8   :  { %5576 = vst [vmem:[#allocation22_spill] sm:$0xff] %v4652_v17 }
  0xd9   :  { %5578 = vst [vmem:[#allocation24_spill] sm:$0xff] %v4657_v42 }
  0xdd   :  { %v4661_v56 = vpop.f32.mrf.mxu2  ;;  %v337_v18 = vpop.f32.mrf.mxu0 }
  0xde   :  { %5580 = vst [vmem:[#allocation26_spill] sm:$0xff] %v4661_v56  ;;  %v4663_v5 = vpop.f32.mrf.mxu3  ;;  %v4666_v11 = vadd.f32 %v337_v18, %v4613_v30  ;;  %v366_v12 = vpop.f32.mrf.mxu1 }
  0xdf   :  { %5581 = vst [vmem:[#allocation27_spill] sm:$0xff] %v4663_v5  ;;  %v4669_v16 = vadd.f32 %v366_v12, %v4617_v36  ;;  %v323_v5 = vadd.f32 %v322_v19, %v4613_v30 }
  0xe0   :  { %5582 = vst [vmem:[#allocation28_spill] sm:$0xff] %v4666_v11  ;;  %v352_v11 = vadd.f32 %v351_v23, %v4617_v36 }
  0xe1   :  { %5583 = vst [vmem:[#allocation29_spill] sm:$0xff] %v4669_v16 }
  0xe5   :  { %v395_v17 = vpop.f32.mrf.mxu2  ;;  %v4674_v42 = vpop.f32.mrf.mxu0 }
  0xe6   :  { %v4672_v39 = vadd.f32 %v395_v17, %v4627_v46  ;;  %v424_v29 = vpop.f32.mrf.mxu3  ;;  %5585 = vst [vmem:[#allocation31_spill] sm:$0xff] %v4674_v42  ;;  %v4679_v56 = vpop.f32.mrf.mxu1 }
  0xe7   :  { %v4677_v54 = vadd.f32 %v424_v29, %v4629_v50  ;;  %5587 = vst [vmem:[#allocation33_spill] sm:$0xff] %v4679_v56  ;;  %v410_v29 = vadd.f32 %v409_v25, %v4629_v50 }
  0xe8   :  { %5584 = vst [vmem:[#allocation30_spill] sm:$0xff] %v4672_v39 }
  0xe9   :  { %5586 = vst [vmem:[#allocation32_spill] sm:$0xff] %v4677_v54 }
  0xed   :  { %v4682_v18 = vpop.f32.mrf.mxu2  ;;  %v666_v16 = vpop.f32.mrf.mxu0 }
  0xee   :  { %5588 = vst [vmem:[#allocation34_spill] sm:$0xff] %v4682_v18  ;;  %v4685_v12 = vpop.f32.mrf.mxu3  ;;  %v709_v6 = vadd.f32 %v666_v16, %v323_v5  ;;  %v679_v17 = vpop.f32.mrf.mxu1 }
  0xef   :  { %5589 = vst [vmem:[#allocation35_spill] sm:$0xff] %v4685_v12  ;;  %v710_v39 = vadd.f32 %v679_v17, %v352_v11 }
  0xf0   :  { %v3562_v63 = vmul.f32 -1.442695, %v709_v6 }
  0xf1   :  { %v3563_v0 = vmul.f32 -1.442695, %v710_v39 }
  0xf2   :  { %4047 = vpow2.f32 %v3562_v63  ;;  %v381_v63 = vadd.f32 %v4607_v24, %v4627_v46 }
  0xf3   :  { %4049 = vpow2.f32 %v3563_v0 }
  0xf5   :  { %v692_v42 = vpop.f32.mrf.mxu2  ;;  %v668_v54 = vpop.f32.mrf.mxu0 }
  0xf6   :  { %v705_v56 = vpop.f32.mrf.mxu3  ;;  %v681_v62 = vpop.f32.mrf.mxu1  ;;  %v711_v39 = vadd.f32 %v692_v42, %v381_v63 }
  0xf7   :  { %v712_v19 = vadd.f32 %v705_v56, %v410_v29 }
  0xf8   :  { %v4048_v18 = vpop.eup %4047 }
  0xf9   :  { %v3564_v57 = vmul.f32 -1.442695, %v712_v19  ;;  %v4050_v23 = vpop.eup %4049  ;;  %v716_v55 = vadd.f32 1.0, %v4048_v18 }
  0xfa   :  { %v735_v12 = vadd.f32 1.0, %v4050_v23 }
  0xfb   :  { %4051 = vpow2.f32 %v3564_v57  ;;  %v728_v18 = vand.u32 2147483648, %v716_v55  ;;  %v726_v19 = vand.u32 2147483647, %v716_v55  ;;  %vm722_vm2 = vweird.f32 %v716_v55 }
  0xfc   :  { %4053 = vrcp.f32 %v716_v55  ;;  %v747_v57 = vand.u32 2147483648, %v735_v12  ;;  %vm741_vm3 = vweird.f32 %v735_v12 }
  0xfd   :  { %4055 = vrcp.f32 %v735_v12  ;;  %v694_v5 = vpop.f32.mrf.mxu2  ;;  %v729_v42 = vor.u32 1.1754944e-38, %v728_v18  ;;  %vm727_vm5 = vcmp.eq.f32.partialorder %v726_v19, 8.507059e+37 }
  0xfe   :  { %v707_v6 = vpop.f32.mrf.mxu3  ;;  %v745_v5 = vand.u32 2147483647, %v735_v12 }
 0x100   :  { %vm746_vm7 = vcmp.eq.f32.partialorder %v745_v5, 8.507059e+37 }
 0x101   :  { %v4052_v0 = vpop.eup %4051 }
 0x102   :  { %v4054_v25 = vpop.eup %4053  ;;  %v755_v11 = vadd.f32 1.0, %v4052_v0  ;;  %v748_v0 = vor.u32 1.1754944e-38, %v747_v57 }
 0x103   :  { %v4056_v54 = vpop.eup %4055  ;;  %v718_v56 = vmul.f32 %v4054_v25, %v716_v55  ;;  %vm723_vm0 = vweird.f32 %v4054_v25 }
 0x104   :  { %v737_v62 = vmul.f32 %v4056_v54, %v735_v12  ;;  %4057 = vrcp.f32 %v755_v11  ;;  %vm742_vm1 = vweird.f32 %v4056_v54  ;;  %vm724_vm4 = vmor %vm722_vm2, %vm723_vm0  ;;  %v767_v18 = vand.u32 2147483648, %v755_v11 }
 0x105   :  { %v719_v16 = vsub.f32 1.0, %v718_v56  ;;  %4059 = vtanh.f32 %v711_v39  ;;  %vm743_vm6 = vmor %vm741_vm3, %vm742_vm1  ;;  %vm761_vm9 = vweird.f32 %v755_v11 }
 0x106   :  { %v738_v17 = vsub.f32 1.0, %v737_v62  ;;  %v768_v19 = vor.u32 1.1754944e-38, %v767_v18 }
 0x107   :  { %v720_v29 = vmul.f32 %v4054_v25, %v719_v16 }
 0x108   :  { %v739_v23 = vmul.f32 %v4056_v54, %v738_v17 }
 0x109   :  { %v721_v24 = vadd.f32 %v4054_v25, %v720_v29 }
 0x10a   :  { %v4058_v6 = vpop.eup %4057  ;;  %v740_v63 = vadd.f32 %v4056_v54, %v739_v23 }
 0x10b   :  { %v725_v58 = vsel %vm724_vm4, %v4054_v25, %v721_v24  ;;  %v757_v56 = vmul.f32 %v4058_v6, %v755_v11  ;;  %v4060_v39 = vpop.eup %4059  ;;  %vm762_vm8 = vweird.f32 %v4058_v6  ;;  %v765_v25 = vand.u32 2147483647, %v755_v11 }
 0x10c   :  { %v730_v62 = vsel %vm727_vm5, %v729_v42, %v725_v58  ;;  %v744_v16 = vsel %vm743_vm6, %v4056_v54, %v740_v63  ;;  %vm763_vm10 = vmor %vm761_vm9, %vm762_vm8 }
 0x10d   :  { %v749_v45 = vsel %vm746_vm7, %v748_v0, %v744_v16  ;;  %v772_v17 = vmul.f32 %v4060_v39, %v730_v62  ;;  %v758_v40 = vsub.f32 1.0, %v757_v56  ;;  %vm766_vm11 = vcmp.eq.f32.partialorder %v765_v25, 8.507059e+37 }
 0x10e   :  { %v771_v31 = vmul.f32 0.0, %v749_v45  ;;  %v354_v45 = vadd.f32 %v4611_v28, %v4617_v36  ;;  %v412_v0 = vadd.f32 %v4619_v38, %v4629_v50 }
 0x10f   :  { %v759_v29 = vmul.f32 %v4058_v6, %v758_v40 }
 0x110   :  { %v4690_v55 = vadd.f32 %v772_v17, %v771_v31  ;;  %v325_v31 = vadd.f32 %v4609_v27, %v4613_v30 }
 0x111   :  { %v760_v12 = vadd.f32 %v4058_v6, %v759_v29 }
 0x112   :  { %4061 = vtanh.f32 %v4690_v55 }
 0x113   :  { %v764_v57 = vsel %vm763_vm10, %v4058_v6, %v760_v12 }
 0x114   :  { %v769_v54 = vsel %vm766_vm11, %v768_v19, %v764_v57 }
 0x118   :  { %v4062_v58 = vpop.eup %4061 }
 0x119   :  { %v4693_v23 = vmul.f32 %v4062_v58, %v769_v54  ;;  %v5590_v58 = vld [vmem:[#allocation11_spill] sm:$0xff] }
 0x11a   :  { %v383_v38 = vadd.f32 %v5590_v58, %v4627_v46 }
 0x11b   :  { %v781_v40 = vpack.c.bf16 %v4693_v23, %v4693_v23 }
 0x11d   :  { %790 = vmatmul.bf16.vlgmr.msra.gmra.mxu0 %v781_v40  ;;  %803 = vmatmul.bf16.vlgmr.msra.gmra.mxu1 %v781_v40 }
 0x11e   :  { %816 = vmatmul.bf16.vlgmr.msra.gmra.mxu2 %v781_v40  ;;  %829 = vmatmul.bf16.vlgmr.msra.gmra.mxu3 %v781_v40 }
 0x11f   :  { %1032 = vmatpush.bf16.msra.mxu0 %v4434_v37  ;;  %1045 = vmatpush.bf16.msra.mxu1 %v4436_v41 }
 0x120   :  { %1058 = vmatpush.bf16.msra.mxu2 %v4438_v47  ;;  %1071 = vmatpush.bf16.msra.mxu3 %v4441_v48 }
 0x123   :  { %1033 = vmatpush.bf16.msra.mxu0 %v4443_v49  ;;  %1046 = vmatpush.bf16.msra.mxu1 %v4446_v53 }
 0x124   :  { %1059 = vmatpush.bf16.msra.mxu2 %v4449_v59  ;;  %1072 = vmatpush.bf16.msra.mxu3 %v4453_v60 }
 0x127   :  { %1034 = vmatpush.bf16.msra.mxu0 %v4455_v61  ;;  %1047 = vmatpush.bf16.msra.mxu1 %v4458_v1 }
 0x128   :  { %1060 = vmatpush.bf16.msra.mxu2 %v4461_v7  ;;  %1073 = vmatpush.bf16.msra.mxu3 %v4465_v8 }
 0x12b   :  { %1035 = vmatpush.bf16.msra.mxu0 %v4467_v9  ;;  %1048 = vmatpush.bf16.msra.mxu1 %v4470_v13 }
 0x12c   :  { %1061 = vmatpush.bf16.msra.mxu2 %v4476_v20  ;;  %1074 = vmatpush.bf16.msra.mxu3 %v4480_v21 }
 0x12f   :  { %1036 = vmatpush.bf16.msra.mxu0 %v4482_v22  ;;  %1049 = vmatpush.bf16.msra.mxu1 %v4485_v26 }
 0x130   :  { %1062 = vmatpush.bf16.msra.mxu2 %v4488_v32  ;;  %1075 = vmatpush.bf16.msra.mxu3 %v4492_v33 }
 0x133   :  { %1037 = vmatpush.bf16.msra.mxu0 %v4494_v34  ;;  %1050 = vmatpush.bf16.msra.mxu1 %v4497_v35 }
 0x134   :  { %1063 = vmatpush.bf16.msra.mxu2 %v4509_v52  ;;  %1076 = vmatpush.bf16.msra.mxu3 %v4502_v43 }
 0x137   :  { %1038 = vmatpush.bf16.msra.mxu0 %v4504_v44  ;;  %1051 = vmatpush.bf16.msra.mxu1 %v4507_v51 }
 0x138   :  { %1064 = vmatpush.bf16.msra.mxu2 %v4518_v4  ;;  %1077 = vmatpush.bf16.msra.mxu3 %v4514_v2 }
 0x13b   :  { %1039 = vmatpush.bf16.msra.mxu0 %v4516_v3  ;;  %1052 = vmatpush.bf16.msra.mxu1 %v4521_v10 }
 0x13c   :  { %1065 = vmatpush.bf16.msra.mxu2 %v4524_v14  ;;  %1078 = vmatpush.bf16.msra.mxu3 %v4528_v15 }
 0x19a   :  { %v791_v11 = vpop.f32.mrf.mxu0  ;;  %v804_v5 = vpop.f32.mrf.mxu1 }
 0x19b   :  { %v834_v24 = vadd.f32 %v791_v11, %v325_v31  ;;  %v835_v6 = vadd.f32 %v804_v5, %v354_v45 }
 0x19d   :  { %v3565_v42 = vmul.f32 -1.442695, %v834_v24  ;;  %v3566_v63 = vmul.f32 -1.442695, %v835_v6 }
 0x19f   :  { %4063 = vpow2.f32 %v3565_v42 }
 0x1a0   :  { %4065 = vpow2.f32 %v3566_v63 }
 0x1a1   :  { %v817_v56 = vpop.f32.mrf.mxu2  ;;  %v830_v39 = vpop.f32.mrf.mxu3 }
 0x1a2   :  { %v837_v62 = vadd.f32 %v830_v39, %v412_v0  ;;  %v793_v16 = vpop.f32.mrf.mxu0  ;;  %v806_v17 = vpop.f32.mrf.mxu1  ;;  %v836_v31 = vadd.f32 %v817_v56, %v383_v38 }
 0x1a4   :  { %v3567_v27 = vmul.f32 -1.442695, %v837_v62 }
 0x1a5   :  { %v4064_v29 = vpop.eup %4063 }
 0x1a6   :  { %v4066_v12 = vpop.eup %4065  ;;  %v841_v28 = vadd.f32 1.0, %v4064_v29  ;;  %4067 = vpow2.f32 %v3567_v27 }
 0x1a7   :  { %v860_v18 = vadd.f32 1.0, %v4066_v12 }
 0x1a8   :  { %4069 = vrcp.f32 %v841_v28  ;;  %v853_v42 = vand.u32 2147483648, %v841_v28  ;;  %v851_v39 = vand.u32 2147483647, %v841_v28  ;;  %vm847_vm14 = vweird.f32 %v841_v28 }
 0x1a9   :  { %4071 = vrcp.f32 %v860_v18  ;;  %v819_v25 = vpop.f32.mrf.mxu2  ;;  %v832_v57 = vpop.f32.mrf.mxu3  ;;  %v872_v63 = vand.u32 2147483648, %v860_v18  ;;  %v870_v16 = vand.u32 2147483647, %v860_v18  ;;  %vm866_vm15 = vweird.f32 %v860_v18 }
 0x1aa   :  { %v854_v56 = vor.u32 1.1754944e-38, %v853_v42  ;;  %vm852_vm2 = vcmp.eq.f32.partialorder %v851_v39, 8.507059e+37 }
 0x1ab   :  { %v873_v25 = vor.u32 1.1754944e-38, %v872_v63  ;;  %vm871_vm3 = vcmp.eq.f32.partialorder %v870_v16, 8.507059e+37 }
 0x1ac   :  { %v4068_v19 = vpop.eup %4067 }
 0x1ad   :  { %v880_v54 = vadd.f32 1.0, %v4068_v19 }
 0x1ae   :  { %v4070_v40 = vpop.eup %4069 }
 0x1af   :  { %v4072_v45 = vpop.eup %4071  ;;  %v843_v11 = vmul.f32 %v4070_v40, %v841_v28  ;;  %4073 = vrcp.f32 %v880_v54  ;;  %vm848_vm12 = vweird.f32 %v4070_v40  ;;  %v892_v42 = vand.u32 2147483648, %v880_v54 }
 0x1b0   :  { %v862_v5 = vmul.f32 %v4072_v45, %v860_v18  ;;  %4075 = vtanh.f32 %v836_v31  ;;  %vm867_vm13 = vweird.f32 %v4072_v45  ;;  %vm849_vm0 = vmor %vm847_vm14, %vm848_vm12  ;;  %vm886_vm5 = vweird.f32 %v880_v54 }
 0x1b1   :  { %v844_v24 = vsub.f32 1.0, %v843_v11  ;;  %vm868_vm1 = vmor %vm866_vm15, %vm867_vm13 }
 0x1b2   :  { %v863_v6 = vsub.f32 1.0, %v862_v5 }
 0x1b3   :  { %v845_v0 = vmul.f32 %v4070_v40, %v844_v24 }
 0x1b4   :  { %v864_v62 = vmul.f32 %v4072_v45, %v863_v6 }
 0x1b5   :  { %v4074_v17 = vpop.eup %4073  ;;  %v846_v27 = vadd.f32 %v4070_v40, %v845_v0  ;;  %v893_v0 = vor.u32 1.1754944e-38, %v892_v42 }
 0x1b6   :  { %v865_v29 = vadd.f32 %v4072_v45, %v864_v62  ;;  %v882_v12 = vmul.f32 %v4074_v17, %v880_v54  ;;  %v4076_v19 = vpop.eup %4075  ;;  %vm887_vm4 = vweird.f32 %v4074_v17 }
 0x1b7   :  { %v850_v57 = vsel %vm849_vm0, %v4070_v40, %v846_v27  ;;  %v890_v40 = vand.u32 2147483647, %v880_v54  ;;  %vm888_vm6 = vmor %vm886_vm5, %vm887_vm4 }
 0x1b8   :  { %v855_v58 = vsel %vm852_vm2, %v854_v56, %v850_v57  ;;  %v869_v38 = vsel %vm868_vm1, %v4072_v45, %v865_v29  ;;  %v883_v31 = vsub.f32 1.0, %v882_v12  ;;  %v5592_v56 = vld [vmem:[#allocation13_spill] sm:$0xff] }
 0x1b9   :  { %v874_v11 = vsel %vm871_vm3, %v873_v25, %v869_v38  ;;  %v897_v5 = vmul.f32 %v4076_v19, %v855_v58  ;;  %vm891_vm7 = vcmp.eq.f32.partialorder %v890_v40, 8.507059e+37  ;;  %v5593_v58 = vld [vmem:[#allocation16_spill] sm:$0xff] }
 0x1ba   :  { %v896_v24 = vmul.f32 %v874_v11, %v4690_v55  ;;  %v884_v6 = vmul.f32 %v4074_v17, %v883_v31 }
 0x1bc   :  { %v4738_v28 = vadd.f32 %v897_v5, %v896_v24  ;;  %v885_v18 = vadd.f32 %v4074_v17, %v884_v6 }
 0x1be   :  { %4077 = vtanh.f32 %v4738_v28  ;;  %v889_v63 = vsel %vm888_vm6, %v4074_v17, %v885_v18  ;;  %v5591_v17 = vld [vmem:[#allocation12_spill] sm:$0xff] }
 0x1bf   :  { %v894_v39 = vsel %vm891_vm7, %v893_v0, %v889_v63 }
 0x1c4   :  { %v4078_v45 = vpop.eup %4077 }
 0x1c5   :  { %v4741_v62 = vmul.f32 %v4078_v45, %v894_v39 }
 0x1c7   :  { %v906_v55 = vpack.c.bf16 %v4741_v62, %v4741_v62 }
 0x1c9   :  { %915 = vmatmul.bf16.vlgmr.msrb.gmra.mxu0 %v906_v55  ;;  %928 = vmatmul.bf16.vlgmr.msrb.gmra.mxu1 %v906_v55 }
 0x1ca   :  { %941 = vmatmul.bf16.vlgmr.msrb.gmra.mxu2 %v906_v55  ;;  %954 = vmatmul.bf16.vlgmr.msrb.gmra.mxu3 %v906_v55  ;;  %v5594_v55 = vld [vmem:[#allocation14_spill] sm:$0xff] }
 0x1cb   :  { %1157 = vmatpush.bf16.msrb.mxu0 %v4434_v37  ;;  %1170 = vmatpush.bf16.msrb.mxu1 %v4436_v41 }
 0x1cc   :  { %1183 = vmatpush.bf16.msrb.mxu2 %v4438_v47  ;;  %1196 = vmatpush.bf16.msrb.mxu3 %v4441_v48 }
 0x1cf   :  { %1158 = vmatpush.bf16.msrb.mxu0 %v4443_v49  ;;  %1171 = vmatpush.bf16.msrb.mxu1 %v4446_v53 }
 0x1d0   :  { %1184 = vmatpush.bf16.msrb.mxu2 %v4449_v59  ;;  %1197 = vmatpush.bf16.msrb.mxu3 %v4453_v60 }
 0x1d3   :  { %1159 = vmatpush.bf16.msrb.mxu0 %v4455_v61  ;;  %1172 = vmatpush.bf16.msrb.mxu1 %v4458_v1 }
 0x1d4   :  { %1185 = vmatpush.bf16.msrb.mxu2 %v4461_v7  ;;  %1198 = vmatpush.bf16.msrb.mxu3 %v4465_v8 }
 0x1d7   :  { %1160 = vmatpush.bf16.msrb.mxu0 %v4467_v9  ;;  %1173 = vmatpush.bf16.msrb.mxu1 %v4470_v13 }
 0x1d8   :  { %1186 = vmatpush.bf16.msrb.mxu2 %v4476_v20  ;;  %1199 = vmatpush.bf16.msrb.mxu3 %v4480_v21 }
 0x1db   :  { %1161 = vmatpush.bf16.msrb.mxu0 %v4482_v22  ;;  %1174 = vmatpush.bf16.msrb.mxu1 %v4485_v26 }
 0x1dc   :  { %1187 = vmatpush.bf16.msrb.mxu2 %v4488_v32  ;;  %1200 = vmatpush.bf16.msrb.mxu3 %v4492_v33 }
 0x1df   :  { %1162 = vmatpush.bf16.msrb.mxu0 %v4494_v34  ;;  %1175 = vmatpush.bf16.msrb.mxu1 %v4497_v35 }
 0x1e0   :  { %1188 = vmatpush.bf16.msrb.mxu2 %v4509_v52  ;;  %1201 = vmatpush.bf16.msrb.mxu3 %v4502_v43 }
 0x1e3   :  { %1163 = vmatpush.bf16.msrb.mxu0 %v4504_v44  ;;  %1176 = vmatpush.bf16.msrb.mxu1 %v4507_v51 }
 0x1e4   :  { %1189 = vmatpush.bf16.msrb.mxu2 %v4518_v4  ;;  %1202 = vmatpush.bf16.msrb.mxu3 %v4514_v2 }
 0x1e7   :  { %1164 = vmatpush.bf16.msrb.mxu0 %v4516_v3  ;;  %1177 = vmatpush.bf16.msrb.mxu1 %v4521_v10 }
 0x1e8   :  { %1190 = vmatpush.bf16.msrb.mxu2 %v4524_v14  ;;  %1203 = vmatpush.bf16.msrb.mxu3 %v4528_v15 }
 0x246   :  { %v916_v54 = vpop.f32.mrf.mxu0  ;;  %v929_v16 = vpop.f32.mrf.mxu1 }
 0x247   :  { %v959_v27 = vadd.f32 %v916_v54, %v5591_v17  ;;  %v960_v29 = vadd.f32 %v929_v16, %v5592_v56 }
 0x249   :  { %v3568_v12 = vmul.f32 -1.442695, %v959_v27  ;;  %v3569_v25 = vmul.f32 -1.442695, %v960_v29 }
 0x24b   :  { %4079 = vpow2.f32 %v3568_v12 }
 0x24c   :  { %4081 = vpow2.f32 %v3569_v25 }
 0x24d   :  { %v942_v57 = vpop.f32.mrf.mxu2  ;;  %v955_v19 = vpop.f32.mrf.mxu3 }
 0x24e   :  { %v962_v38 = vadd.f32 %v955_v19, %v5593_v58  ;;  %v918_v31 = vpop.f32.mrf.mxu0  ;;  %v931_v11 = vpop.f32.mrf.mxu1  ;;  %v961_v54 = vadd.f32 %v942_v57, %v5594_v55 }
 0x250   :  { %v3570_v5 = vmul.f32 -1.442695, %v962_v38 }
 0x251   :  { %v4080_v24 = vpop.eup %4079 }
 0x252   :  { %v4082_v6 = vpop.eup %4081  ;;  %v966_v18 = vadd.f32 1.0, %v4080_v24  ;;  %4083 = vpow2.f32 %v3570_v5 }
 0x253   :  { %v985_v42 = vadd.f32 1.0, %v4082_v6 }
 0x254   :  { %4085 = vrcp.f32 %v966_v18  ;;  %v978_v12 = vand.u32 2147483648, %v966_v18  ;;  %v976_v58 = vand.u32 2147483647, %v966_v18  ;;  %vm972_vm10 = vweird.f32 %v966_v18 }
 0x255   :  { %4087 = vrcp.f32 %v985_v42  ;;  %v944_v40 = vpop.f32.mrf.mxu2  ;;  %v957_v63 = vpop.f32.mrf.mxu3  ;;  %v997_v25 = vand.u32 2147483648, %v985_v42  ;;  %v995_v31 = vand.u32 2147483647, %v985_v42  ;;  %vm991_vm11 = vweird.f32 %v985_v42 }
 0x256   :  { %v979_v57 = vor.u32 1.1754944e-38, %v978_v12  ;;  %vm977_vm14 = vcmp.eq.f32.partialorder %v976_v58, 8.507059e+37 }
 0x257   :  { %v998_v40 = vor.u32 1.1754944e-38, %v997_v25  ;;  %vm996_vm15 = vcmp.eq.f32.partialorder %v995_v31, 8.507059e+37 }
 0x258   :  { %v4084_v0 = vpop.eup %4083 }
 0x259   :  { %v1005_v45 = vadd.f32 1.0, %v4084_v0 }
 0x25a   :  { %v4086_v39 = vpop.eup %4085 }
 0x25b   :  { %v4088_v16 = vpop.eup %4087  ;;  %v968_v17 = vmul.f32 %v4086_v39, %v966_v18  ;;  %4089 = vrcp.f32 %v1005_v45  ;;  %vm973_vm8 = vweird.f32 %v4086_v39  ;;  %v1017_v12 = vand.u32 2147483648, %v1005_v45 }
 0x25c   :  { %v987_v27 = vmul.f32 %v4088_v16, %v985_v42  ;;  %4091 = vtanh.f32 %v961_v54  ;;  %vm992_vm9 = vweird.f32 %v4088_v16  ;;  %vm974_vm12 = vmor %vm972_vm10, %vm973_vm8  ;;  %vm1011_vm1 = vweird.f32 %v1005_v45 }
 0x25d   :  { %v969_v56 = vsub.f32 1.0, %v968_v17  ;;  %vm993_vm13 = vmor %vm991_vm11, %vm992_vm9  ;;  %v1018_v58 = vor.u32 1.1754944e-38, %v1017_v12 }
 0x25e   :  { %v988_v29 = vsub.f32 1.0, %v987_v27 }
 0x25f   :  { %v970_v19 = vmul.f32 %v4086_v39, %v969_v56 }
 0x260   :  { %v989_v38 = vmul.f32 %v4088_v16, %v988_v29 }
 0x261   :  { %v4090_v11 = vpop.eup %4089  ;;  %v971_v5 = vadd.f32 %v4086_v39, %v970_v19 }
 0x262   :  { %v990_v24 = vadd.f32 %v4088_v16, %v989_v38  ;;  %v1007_v6 = vmul.f32 %v4090_v11, %v1005_v45  ;;  %v4092_v0 = vpop.eup %4091  ;;  %vm1012_vm0 = vweird.f32 %v4090_v11 }
 0x263   :  { %v975_v63 = vsel %vm974_vm12, %v4086_v39, %v971_v5  ;;  %v1015_v39 = vand.u32 2147483647, %v1005_v45  ;;  %vm1013_vm2 = vmor %vm1011_vm1, %vm1012_vm0  ;;  %v5596_v45 = vld [vmem:[#allocation15_spill] sm:$0xff]  ;;  %v5597_v5 = vld [vmem:[#allocation17_spill] sm:$0xff] }
 0x264   :  { %v980_v55 = vsel %vm977_vm14, %v979_v57, %v975_v63  ;;  %v994_v54 = vsel %vm993_vm13, %v4088_v16, %v990_v24  ;;  %v1008_v17 = vsub.f32 1.0, %v1007_v6  ;;  %v359_v57 = vadd.f32 %v5597_v5, %v4617_v36 }
 0x265   :  { %v999_v27 = vsel %vm996_vm15, %v998_v40, %v994_v54  ;;  %v1022_v56 = vmul.f32 %v4092_v0, %v980_v55  ;;  %vm1016_vm3 = vcmp.eq.f32.partialorder %v1015_v39, 8.507059e+37  ;;  %v5598_v54 = vld [vmem:[#allocation19_spill] sm:$0xff] }
 0x266   :  { %v1021_v29 = vmul.f32 %v999_v27, %v4738_v28  ;;  %v1009_v19 = vmul.f32 %v4090_v11, %v1008_v17  ;;  %v417_v17 = vadd.f32 %v5598_v54, %v4629_v50 }
 0x268   :  { %v4782_v18 = vadd.f32 %v1022_v56, %v1021_v29  ;;  %v1010_v42 = vadd.f32 %v4090_v11, %v1009_v19 }
 0x26a   :  { %4093 = vtanh.f32 %v4782_v18  ;;  %v1014_v25 = vsel %vm1013_vm2, %v4090_v11, %v1010_v42  ;;  %v330_v11 = vadd.f32 %v5596_v45, %v4613_v30 }
 0x26b   :  { %v1019_v38 = vsel %vm1016_vm3, %v1018_v58, %v1014_v25 }
 0x270   :  { %v4094_v16 = vpop.eup %4093 }
 0x271   :  { %v4785_v31 = vmul.f32 %v4094_v16, %v1019_v38 }
 0x273   :  { %5595 = vst [vmem:[#allocation11_spill] sm:$0xff] %v4785_v31  ;;  %v1031_v28 = vpack.c.bf16 %v4785_v31, %v4785_v31 }
 0x275   :  { %1040 = vmatmul.bf16.vlgmr.msra.gmra.mxu0 %v1031_v28  ;;  %1053 = vmatmul.bf16.vlgmr.msra.gmra.mxu1 %v1031_v28 }
 0x276   :  { %1066 = vmatmul.bf16.vlgmr.msra.gmra.mxu2 %v1031_v28  ;;  %1079 = vmatmul.bf16.vlgmr.msra.gmra.mxu3 %v1031_v28 }
 0x277   :  { %1282 = vmatpush.bf16.msra.mxu0 %v4434_v37  ;;  %1295 = vmatpush.bf16.msra.mxu1 %v4436_v41 }
 0x278   :  { %1308 = vmatpush.bf16.msra.mxu2 %v4438_v47  ;;  %1321 = vmatpush.bf16.msra.mxu3 %v4441_v48 }
 0x27b   :  { %1283 = vmatpush.bf16.msra.mxu0 %v4443_v49  ;;  %1296 = vmatpush.bf16.msra.mxu1 %v4446_v53 }
 0x27c   :  { %1309 = vmatpush.bf16.msra.mxu2 %v4449_v59  ;;  %1322 = vmatpush.bf16.msra.mxu3 %v4453_v60 }
 0x27f   :  { %1284 = vmatpush.bf16.msra.mxu0 %v4455_v61  ;;  %1297 = vmatpush.bf16.msra.mxu1 %v4458_v1 }
 0x280   :  { %1310 = vmatpush.bf16.msra.mxu2 %v4461_v7  ;;  %1323 = vmatpush.bf16.msra.mxu3 %v4465_v8 }
 0x283   :  { %1285 = vmatpush.bf16.msra.mxu0 %v4467_v9  ;;  %1298 = vmatpush.bf16.msra.mxu1 %v4470_v13 }
 0x284   :  { %1311 = vmatpush.bf16.msra.mxu2 %v4476_v20  ;;  %1324 = vmatpush.bf16.msra.mxu3 %v4480_v21 }
 0x287   :  { %1286 = vmatpush.bf16.msra.mxu0 %v4482_v22  ;;  %1299 = vmatpush.bf16.msra.mxu1 %v4485_v26 }
 0x288   :  { %1312 = vmatpush.bf16.msra.mxu2 %v4488_v32  ;;  %1325 = vmatpush.bf16.msra.mxu3 %v4492_v33 }
 0x28b   :  { %1287 = vmatpush.bf16.msra.mxu0 %v4494_v34  ;;  %1300 = vmatpush.bf16.msra.mxu1 %v4497_v35 }
 0x28c   :  { %1313 = vmatpush.bf16.msra.mxu2 %v4509_v52  ;;  %1326 = vmatpush.bf16.msra.mxu3 %v4502_v43 }
 0x28f   :  { %1288 = vmatpush.bf16.msra.mxu0 %v4504_v44  ;;  %1301 = vmatpush.bf16.msra.mxu1 %v4507_v51 }
 0x290   :  { %1314 = vmatpush.bf16.msra.mxu2 %v4518_v4  ;;  %1327 = vmatpush.bf16.msra.mxu3 %v4514_v2 }
 0x293   :  { %1289 = vmatpush.bf16.msra.mxu0 %v4516_v3  ;;  %1302 = vmatpush.bf16.msra.mxu1 %v4521_v10 }
 0x294   :  { %1315 = vmatpush.bf16.msra.mxu2 %v4524_v14  ;;  %1328 = vmatpush.bf16.msra.mxu3 %v4528_v15 }
 0x2f2   :  { %v1041_v24 = vpop.f32.mrf.mxu0  ;;  %v1054_v6 = vpop.f32.mrf.mxu1 }
 0x2f3   :  { %v1084_v40 = vadd.f32 %v1041_v24, %v330_v11  ;;  %v1085_v63 = vadd.f32 %v1054_v6, %v359_v57  ;;  %v5599_v11 = vld [vmem:[#allocation18_spill] sm:$0xff] }
 0x2f4   :  { %v388_v5 = vadd.f32 %v5599_v11, %v4627_v46 }
 0x2f5   :  { %v3571_v0 = vmul.f32 -1.442695, %v1084_v40  ;;  %v3572_v55 = vmul.f32 -1.442695, %v1085_v63 }
 0x2f7   :  { %4095 = vpow2.f32 %v3571_v0 }
 0x2f8   :  { %4097 = vpow2.f32 %v3572_v55 }
 0x2f9   :  { %v1067_v27 = vpop.f32.mrf.mxu2  ;;  %v1080_v56 = vpop.f32.mrf.mxu3 }
 0x2fa   :  { %v1087_v29 = vadd.f32 %v1080_v56, %v417_v17  ;;  %v1043_v19 = vpop.f32.mrf.mxu0  ;;  %v1056_v42 = vpop.f32.mrf.mxu1  ;;  %v1086_v6 = vadd.f32 %v1067_v27, %v388_v5 }
 0x2fc   :  { %v3573_v12 = vmul.f32 -1.442695, %v1087_v29 }
 0x2fd   :  { %v4096_v39 = vpop.eup %4095 }
 0x2fe   :  { %v4098_v25 = vpop.eup %4097  ;;  %v1091_v58 = vadd.f32 1.0, %v4096_v39  ;;  %4099 = vpow2.f32 %v3573_v12 }
 0x2ff   :  { %v1110_v16 = vadd.f32 1.0, %v4098_v25 }
 0x300   :  { %4101 = vrcp.f32 %v1091_v58  ;;  %v1103_v17 = vand.u32 2147483648, %v1091_v58  ;;  %v1101_v19 = vand.u32 2147483647, %v1091_v58  ;;  %vm1097_vm6 = vweird.f32 %v1091_v58 }
 0x301   :  { %4103 = vrcp.f32 %v1110_v16  ;;  %v1069_v38 = vpop.f32.mrf.mxu2  ;;  %v1082_v28 = vpop.f32.mrf.mxu3  ;;  %v1122_v56 = vand.u32 2147483648, %v1110_v16  ;;  %v1120_v12 = vand.u32 2147483647, %v1110_v16  ;;  %vm1116_vm7 = vweird.f32 %v1110_v16 }
 0x302   :  { %v1104_v27 = vor.u32 1.1754944e-38, %v1103_v17  ;;  %vm1102_vm10 = vcmp.eq.f32.partialorder %v1101_v19, 8.507059e+37 }
 0x303   :  { %vm1121_vm11 = vcmp.eq.f32.partialorder %v1120_v12, 8.507059e+37 }
 0x304   :  { %v4100_v45 = vpop.eup %4099 }
 0x305   :  { %v1130_v57 = vadd.f32 1.0, %v4100_v45  ;;  %v1123_v45 = vor.u32 1.1754944e-38, %v1122_v56 }
 0x306   :  { %v4102_v24 = vpop.eup %4101 }
 0x307   :  { %v4104_v40 = vpop.eup %4103  ;;  %v1093_v63 = vmul.f32 %v4102_v24, %v1091_v58  ;;  %4105 = vrcp.f32 %v1130_v57  ;;  %vm1098_vm4 = vweird.f32 %v4102_v24  ;;  %v1142_v17 = vand.u32 2147483648, %v1130_v57 }
 0x308   :  { %v1112_v0 = vmul.f32 %v4104_v40, %v1110_v16  ;;  %4107 = vtanh.f32 %v1086_v6  ;;  %vm1117_vm5 = vweird.f32 %v4104_v40  ;;  %vm1099_vm8 = vmor %vm1097_vm6, %vm1098_vm4  ;;  %vm1136_vm13 = vweird.f32 %v1130_v57 }
 0x309   :  { %v1094_v55 = vsub.f32 1.0, %v1093_v63  ;;  %vm1118_vm9 = vmor %vm1116_vm7, %vm1117_vm5  ;;  %v1143_v19 = vor.u32 1.1754944e-38, %v1142_v17 }
 0x30a   :  { %v1113_v54 = vsub.f32 1.0, %v1112_v0 }
 0x30b   :  { %v1095_v29 = vmul.f32 %v4102_v24, %v1094_v55 }
 0x30c   :  { %v1114_v42 = vmul.f32 %v4104_v40, %v1113_v54 }
 0x30d   :  { %v4106_v39 = vpop.eup %4105  ;;  %v1096_v25 = vadd.f32 %v4102_v24, %v1095_v29 }
 0x30e   :  { %v1115_v38 = vadd.f32 %v4104_v40, %v1114_v42  ;;  %v1132_v28 = vmul.f32 %v4106_v39, %v1130_v57  ;;  %v4108_v5 = vpop.eup %4107  ;;  %vm1137_vm12 = vweird.f32 %v4106_v39 }
 0x30f   :  { %v1100_v11 = vsel %vm1099_vm8, %v4102_v24, %v1096_v25  ;;  %v1140_v24 = vand.u32 2147483647, %v1130_v57  ;;  %vm1138_vm14 = vmor %vm1136_vm13, %vm1137_vm12 }
 0x310   :  { %v1105_v6 = vsel %vm1102_vm10, %v1104_v27, %v1100_v11  ;;  %v1119_v63 = vsel %vm1118_vm9, %v4104_v40, %v1115_v38  ;;  %v1133_v0 = vsub.f32 1.0, %v1132_v28  ;;  %v5602_v27 = vld [vmem:[#allocation21_spill] sm:$0xff] }
 0x311   :  { %v1124_v55 = vsel %vm1121_vm11, %v1123_v45, %v1119_v63  ;;  %v1147_v54 = vmul.f32 %v4108_v5, %v1105_v6  ;;  %vm1141_vm15 = vcmp.eq.f32.partialorder %v1140_v24, 8.507059e+37  ;;  %v5603_v6 = vld [vmem:[#allocation24_spill] sm:$0xff] }
 0x312   :  { %v1146_v31 = vmul.f32 %v1124_v55, %v4782_v18  ;;  %v1134_v29 = vmul.f32 %v4106_v39, %v1133_v0 }
 0x314   :  { %v4830_v58 = vadd.f32 %v1147_v54, %v1146_v31  ;;  %v1135_v16 = vadd.f32 %v4106_v39, %v1134_v29 }
 0x316   :  { %4109 = vtanh.f32 %v4830_v58  ;;  %v1139_v56 = vsel %vm1138_vm14, %v4106_v39, %v1135_v16  ;;  %v5601_v39 = vld [vmem:[#allocation20_spill] sm:$0xff] }
 0x317   :  { %v1144_v42 = vsel %vm1141_vm15, %v1143_v19, %v1139_v56 }
 0x31c   :  { %v4110_v40 = vpop.eup %4109 }
 0x31d   :  { %v4833_v12 = vmul.f32 %v4110_v40, %v1144_v42 }
 0x31f   :  { %5600 = vst [vmem:[#allocation12_spill] sm:$0xff] %v4833_v12  ;;  %v1156_v18 = vpack.c.bf16 %v4833_v12, %v4833_v12 }
 0x321   :  { %1165 = vmatmul.bf16.vlgmr.msrb.gmra.mxu0 %v1156_v18  ;;  %1178 = vmatmul.bf16.vlgmr.msrb.gmra.mxu1 %v1156_v18 }
 0x322   :  { %1191 = vmatmul.bf16.vlgmr.msrb.gmra.mxu2 %v1156_v18  ;;  %1204 = vmatmul.bf16.vlgmr.msrb.gmra.mxu3 %v1156_v18 }
 0x323   :  { %1407 = vmatpush.bf16.msrb.mxu0 %v4434_v37  ;;  %1420 = vmatpush.bf16.msrb.mxu1 %v4436_v41 }
 0x324   :  { %1433 = vmatpush.bf16.msrb.mxu2 %v4438_v47  ;;  %1446 = vmatpush.bf16.msrb.mxu3 %v4441_v48 }
 0x327   :  { %1408 = vmatpush.bf16.msrb.mxu0 %v4443_v49  ;;  %1421 = vmatpush.bf16.msrb.mxu1 %v4446_v53 }
 0x328   :  { %1434 = vmatpush.bf16.msrb.mxu2 %v4449_v59  ;;  %1447 = vmatpush.bf16.msrb.mxu3 %v4453_v60 }
 0x32b   :  { %1409 = vmatpush.bf16.msrb.mxu0 %v4455_v61  ;;  %1422 = vmatpush.bf16.msrb.mxu1 %v4458_v1 }
 0x32c   :  { %1435 = vmatpush.bf16.msrb.mxu2 %v4461_v7  ;;  %1448 = vmatpush.bf16.msrb.mxu3 %v4465_v8 }
 0x32f   :  { %1410 = vmatpush.bf16.msrb.mxu0 %v4467_v9  ;;  %1423 = vmatpush.bf16.msrb.mxu1 %v4470_v13 }
 0x330   :  { %1436 = vmatpush.bf16.msrb.mxu2 %v4476_v20  ;;  %1449 = vmatpush.bf16.msrb.mxu3 %v4480_v21 }
 0x333   :  { %1411 = vmatpush.bf16.msrb.mxu0 %v4482_v22  ;;  %1424 = vmatpush.bf16.msrb.mxu1 %v4485_v26 }
 0x334   :  { %1437 = vmatpush.bf16.msrb.mxu2 %v4488_v32  ;;  %1450 = vmatpush.bf16.msrb.mxu3 %v4492_v33 }
 0x337   :  { %1412 = vmatpush.bf16.msrb.mxu0 %v4494_v34  ;;  %1425 = vmatpush.bf16.msrb.mxu1 %v4497_v35 }
 0x338   :  { %1438 = vmatpush.bf16.msrb.mxu2 %v4509_v52  ;;  %1451 = vmatpush.bf16.msrb.mxu3 %v4502_v43 }
 0x33b   :  { %1413 = vmatpush.bf16.msrb.mxu0 %v4504_v44  ;;  %1426 = vmatpush.bf16.msrb.mxu1 %v4507_v51 }
 0x33c   :  { %1439 = vmatpush.bf16.msrb.mxu2 %v4518_v4  ;;  %1452 = vmatpush.bf16.msrb.mxu3 %v4514_v2 }
 0x33f   :  { %1414 = vmatpush.bf16.msrb.mxu0 %v4516_v3  ;;  %1427 = vmatpush.bf16.msrb.mxu1 %v4521_v10 }
 0x340   :  { %1440 = vmatpush.bf16.msrb.mxu2 %v4524_v14  ;;  %1453 = vmatpush.bf16.msrb.mxu3 %v4528_v15 }
 0x39e   :  { %v1166_v31 = vpop.f32.mrf.mxu0  ;;  %v1179_v57 = vpop.f32.mrf.mxu1 }
 0x39f   :  { %v1209_v25 = vadd.f32 %v1166_v31, %v5601_v39  ;;  %v1210_v38 = vadd.f32 %v1179_v57, %v5602_v27  ;;  %v5604_v31 = vld [vmem:[#allocation22_spill] sm:$0xff] }
 0x3a1   :  { %v3574_v28 = vmul.f32 -1.442695, %v1209_v25  ;;  %v3575_v45 = vmul.f32 -1.442695, %v1210_v38 }
 0x3a3   :  { %4111 = vpow2.f32 %v3574_v28 }
 0x3a4   :  { %4113 = vpow2.f32 %v3575_v45 }
 0x3a5   :  { %v1192_v11 = vpop.f32.mrf.mxu2  ;;  %v1205_v5 = vpop.f32.mrf.mxu3 }
 0x3a6   :  { %v1212_v63 = vadd.f32 %v1205_v5, %v5603_v6  ;;  %v1168_v0 = vpop.f32.mrf.mxu0  ;;  %v1181_v55 = vpop.f32.mrf.mxu1  ;;  %v1211_v57 = vadd.f32 %v1192_v11, %v5604_v31 }
 0x3a8   :  { %v3576_v54 = vmul.f32 -1.442695, %v1212_v63 }
 0x3a9   :  { %v4112_v29 = vpop.eup %4111 }
 0x3aa   :  { %v4114_v16 = vpop.eup %4113  ;;  %v1216_v17 = vadd.f32 1.0, %v4112_v29  ;;  %4115 = vpow2.f32 %v3576_v54 }
 0x3ab   :  { %v1235_v24 = vadd.f32 1.0, %v4114_v16 }
 0x3ac   :  { %4117 = vrcp.f32 %v1216_v17  ;;  %v1228_v45 = vand.u32 2147483648, %v1216_v17  ;;  %v1226_v63 = vand.u32 2147483647, %v1216_v17  ;;  %vm1222_vm2 = vweird.f32 %v1216_v17 }
 0x3ad   :  { %4119 = vrcp.f32 %v1235_v24  ;;  %v1194_v56 = vpop.f32.mrf.mxu2  ;;  %v1207_v19 = vpop.f32.mrf.mxu3  ;;  %v1247_v5 = vand.u32 2147483648, %v1235_v24  ;;  %v1245_v55 = vand.u32 2147483647, %v1235_v24  ;;  %vm1241_vm3 = vweird.f32 %v1235_v24 }
 0x3ae   :  { %v1229_v11 = vor.u32 1.1754944e-38, %v1228_v45  ;;  %vm1227_vm6 = vcmp.eq.f32.partialorder %v1226_v63, 8.507059e+37 }
 0x3af   :  { %v1248_v19 = vor.u32 1.1754944e-38, %v1247_v5  ;;  %vm1246_vm7 = vcmp.eq.f32.partialorder %v1245_v55, 8.507059e+37 }
 0x3b0   :  { %v4116_v40 = vpop.eup %4115 }
 0x3b1   :  { %v1255_v42 = vadd.f32 1.0, %v4116_v40 }
 0x3b2   :  { %v4118_v18 = vpop.eup %4117 }
 0x3b3   :  { %v4120_v39 = vpop.eup %4119  ;;  %v1218_v25 = vmul.f32 %v4118_v18, %v1216_v17  ;;  %4121 = vrcp.f32 %v1255_v42  ;;  %vm1223_vm0 = vweird.f32 %v4118_v18  ;;  %v1267_v45 = vand.u32 2147483648, %v1255_v42 }
 0x3b4   :  { %v1237_v27 = vmul.f32 %v4120_v39, %v1235_v24  ;;  %4123 = vtanh.f32 %v1211_v57  ;;  %vm1242_vm1 = vweird.f32 %v4120_v39  ;;  %vm1224_vm4 = vmor %vm1222_vm2, %vm1223_vm0  ;;  %vm1261_vm9 = vweird.f32 %v1255_v42 }
 0x3b5   :  { %v1219_v38 = vsub.f32 1.0, %v1218_v25  ;;  %vm1243_vm5 = vmor %vm1241_vm3, %vm1242_vm1  ;;  %v1268_v63 = vor.u32 1.1754944e-38, %v1267_v45 }
 0x3b6   :  { %v1238_v28 = vsub.f32 1.0, %v1237_v27 }
 0x3b7   :  { %v1220_v6 = vmul.f32 %v4118_v18, %v1219_v38 }
 0x3b8   :  { %v1239_v0 = vmul.f32 %v4120_v39, %v1238_v28 }
 0x3b9   :  { %v4122_v54 = vpop.eup %4121  ;;  %v1221_v29 = vadd.f32 %v4118_v18, %v1220_v6 }
 0x3ba   :  { %v1240_v16 = vadd.f32 %v4120_v39, %v1239_v0  ;;  %v1257_v56 = vmul.f32 %v4122_v54, %v1255_v42  ;;  %v4124_v31 = vpop.eup %4123  ;;  %vm1262_vm8 = vweird.f32 %v4122_v54 }
 0x3bb   :  { %v1225_v40 = vsel %vm1224_vm4, %v4118_v18, %v1221_v29  ;;  %v1265_v18 = vand.u32 2147483647, %v1255_v42  ;;  %vm1263_vm10 = vmor %vm1261_vm9, %vm1262_vm8 }
 0x3bc   :  { %v1230_v57 = vsel %vm1227_vm6, %v1229_v11, %v1225_v40  ;;  %v1244_v25 = vsel %vm1243_vm5, %v4120_v39, %v1240_v16  ;;  %v1258_v27 = vsub.f32 1.0, %v1257_v56 }
 0x3bd   :  { %v1249_v38 = vsel %vm1246_vm7, %v1248_v19, %v1244_v25  ;;  %v1272_v28 = vmul.f32 %v4124_v31, %v1230_v57  ;;  %vm1266_vm11 = vcmp.eq.f32.partialorder %v1265_v18, 8.507059e+37 }
 0x3be   :  { %v1271_v12 = vmul.f32 %v1249_v38, %v4830_v58  ;;  %v1259_v6 = vmul.f32 %v4122_v54, %v1258_v27 }
 0x3c0   :  { %v4874_v17 = vadd.f32 %v1272_v28, %v1271_v12  ;;  %v1260_v24 = vadd.f32 %v4122_v54, %v1259_v6 }
 0x3c2   :  { %4125 = vtanh.f32 %v4874_v17  ;;  %v1264_v5 = vsel %vm1263_vm10, %v4122_v54, %v1260_v24 }
 0x3c3   :  { %v1269_v0 = vsel %vm1266_vm11, %v1268_v63, %v1264_v5 }
 0x3c8   :  { %v4126_v39 = vpop.eup %4125 }
 0x3c9   :  { %v4877_v55 = vmul.f32 %v4126_v39, %v1269_v0 }
 0x3cb   :  { %v1281_v58 = vpack.c.bf16 %v4877_v55, %v4877_v55 }
 0x3cd   :  { %1290 = vmatmul.bf16.vlgmr.msra.gmra.mxu0 %v1281_v58  ;;  %1303 = vmatmul.bf16.vlgmr.msra.gmra.mxu1 %v1281_v58 }
 0x3ce   :  { %1316 = vmatmul.bf16.vlgmr.msra.gmra.mxu2 %v1281_v58  ;;  %1329 = vmatmul.bf16.vlgmr.msra.gmra.mxu3 %v1281_v58 }
 0x3cf   :  { %1532 = vmatpush.bf16.msra.mxu0 %v4434_v37  ;;  %1545 = vmatpush.bf16.msra.mxu1 %v4436_v41  ;;  %v5605_v37 = vld [vmem:[#allocation23_spill] sm:$0xff] }
 0x3d0   :  { %1558 = vmatpush.bf16.msra.mxu2 %v4438_v47  ;;  %1571 = vmatpush.bf16.msra.mxu3 %v4441_v48  ;;  %v335_v41 = vadd.f32 %v5605_v37, %v4613_v30  ;;  %v5606_v47 = vld [vmem:[#allocation25_spill] sm:$0xff] }
 0x3d1   :  { %v364_v48 = vadd.f32 %v5606_v47, %v4617_v36 }
 0x3d3   :  { %1533 = vmatpush.bf16.msra.mxu0 %v4443_v49  ;;  %1546 = vmatpush.bf16.msra.mxu1 %v4446_v53 }
 0x3d4   :  { %1559 = vmatpush.bf16.msra.mxu2 %v4449_v59  ;;  %1572 = vmatpush.bf16.msra.mxu3 %v4453_v60 }
 0x3d7   :  { %1534 = vmatpush.bf16.msra.mxu0 %v4455_v61  ;;  %1547 = vmatpush.bf16.msra.mxu1 %v4458_v1 }
 0x3d8   :  { %1560 = vmatpush.bf16.msra.mxu2 %v4461_v7  ;;  %1573 = vmatpush.bf16.msra.mxu3 %v4465_v8  ;;  %v5607_v7 = vld [vmem:[#allocation27_spill] sm:$0xff] }
 0x3d9   :  { %v422_v8 = vadd.f32 %v5607_v7, %v4629_v50  ;;  %v3996_v7 = vld [vmem:[#allocation4 + $0x1ec] sm:$0xf0] }
 0x3db   :  { %1535 = vmatpush.bf16.msra.mxu0 %v4467_v9  ;;  %1548 = vmatpush.bf16.msra.mxu1 %v4470_v13 }
 0x3dc   :  { %1561 = vmatpush.bf16.msra.mxu2 %v4476_v20  ;;  %1574 = vmatpush.bf16.msra.mxu3 %v4480_v21 }
 0x3df   :  { %1536 = vmatpush.bf16.msra.mxu0 %v4482_v22  ;;  %1549 = vmatpush.bf16.msra.mxu1 %v4485_v26 }
 0x3e0   :  { %1562 = vmatpush.bf16.msra.mxu2 %v4488_v32  ;;  %1575 = vmatpush.bf16.msra.mxu3 %v4492_v33 }
 0x3e3   :  { %1537 = vmatpush.bf16.msra.mxu0 %v4494_v34  ;;  %1550 = vmatpush.bf16.msra.mxu1 %v4497_v35 }
 0x3e4   :  { %1563 = vmatpush.bf16.msra.mxu2 %v4509_v52  ;;  %1576 = vmatpush.bf16.msra.mxu3 %v4502_v43  ;;  %v5608_v52 = vld [vmem:[#allocation26_spill] sm:$0xff] }
 0x3e7   :  { %1538 = vmatpush.bf16.msra.mxu0 %v4504_v44  ;;  %1551 = vmatpush.bf16.msra.mxu1 %v4507_v51 }
 0x3e8   :  { %1564 = vmatpush.bf16.msra.mxu2 %v4518_v4  ;;  %1577 = vmatpush.bf16.msra.mxu3 %v4514_v2  ;;  %v393_v2 = vadd.f32 %v5608_v52, %v4627_v46  ;;  %v5610_v52 = vld [vmem:[#allocation29_spill] sm:$0xff] }
 0x3eb   :  { %1539 = vmatpush.bf16.msra.mxu0 %v4516_v3  ;;  %1552 = vmatpush.bf16.msra.mxu1 %v4521_v10 }
 0x3ec   :  { %1565 = vmatpush.bf16.msra.mxu2 %v4524_v14  ;;  %1578 = vmatpush.bf16.msra.mxu3 %v4528_v15 }
 0x44a   :  { %v1291_v49 = vpop.f32.mrf.mxu0  ;;  %v1304_v53 = vpop.f32.mrf.mxu1 }
 0x44b   :  { %v1334_v59 = vadd.f32 %v1291_v49, %v335_v41  ;;  %v1335_v60 = vadd.f32 %v1304_v53, %v364_v48 }
 0x44d   :  { %v3577_v61 = vmul.f32 -1.442695, %v1334_v59  ;;  %v3578_v1 = vmul.f32 -1.442695, %v1335_v60 }
 0x44f   :  { %4127 = vpow2.f32 %v3577_v61 }
 0x450   :  { %4129 = vpow2.f32 %v3578_v1  ;;  %v3700_v1 = vld [vmem:[#allocation4 + $0x1e0] sm:$0xf] }
 0x451   :  { %v1317_v9 = vpop.f32.mrf.mxu2  ;;  %v1330_v13 = vpop.f32.mrf.mxu3 }
 0x452   :  { %v1337_v20 = vadd.f32 %v1330_v13, %v422_v8  ;;  %v1293_v21 = vpop.f32.mrf.mxu0  ;;  %v1306_v22 = vpop.f32.mrf.mxu1  ;;  %v1336_v10 = vadd.f32 %v1317_v9, %v393_v2  ;;  %v3994_v8 = vld [vmem:[#allocation4 + $0x1e4] sm:$0xf]  ;;  %v3701_v9 = vor.u32 %v3996_v7, %v3700_v1  ;;  %v3702_v13 = vld [vmem:[#allocation4 + $0x1f0] sm:$0xf0]  ;;  %v3660_v1 = vld [vmem:[#allocation4 + $0x188] sm:$0xf] }
 0x453   :  { %v3997_v21 = vld [vmem:[#allocation4 + $0x1f4] sm:$0xf0]  ;;  %v3705_v22 = vor.u32 %v3994_v8, %v3702_v13  ;;  %v3983_v13 = vld [vmem:[#allocation4 + $0x18c] sm:$0xf] }
 0x454   :  { %v3579_v26 = vmul.f32 -1.442695, %v1337_v20  ;;  %v3708_v20 = vld [vmem:[#allocation4 + $0x1e8] sm:$0xf]  ;;  %v3985_v7 = vld [vmem:[#allocation4 + $0x194] sm:$0xf0] }
 0x455   :  { %v4128_v32 = vpop.eup %4127 }
 0x456   :  { %v4130_v33 = vpop.eup %4129  ;;  %v1341_v34 = vadd.f32 1.0, %v4128_v32  ;;  %4131 = vpow2.f32 %v3579_v26  ;;  %v3709_v26 = vor.u32 %v3997_v21, %v3708_v20  ;;  %v3995_v32 = vld [vmem:[#allocation4 + $0x1ec] sm:$0xf]  ;;  %v3662_v20 = vld [vmem:[#allocation4 + $0x198] sm:$0xf0] }
 0x457   :  { %v1360_v35 = vadd.f32 1.0, %v4130_v33  ;;  %v3710_v33 = vld [vmem:[#allocation4 + $0x1f8] sm:$0xf0] }
 0x458   :  { %4133 = vrcp.f32 %v1341_v34  ;;  %v1353_v29 = vand.u32 2147483648, %v1341_v34  ;;  %v1351_v56 = vand.u32 2147483647, %v1341_v34  ;;  %vm1347_vm14 = vweird.f32 %v1341_v34 }
 0x459   :  { %4135 = vrcp.f32 %v1360_v35  ;;  %v1319_v43 = vpop.f32.mrf.mxu2  ;;  %v1332_v44 = vpop.f32.mrf.mxu3  ;;  %v1372_v11 = vand.u32 2147483648, %v1360_v35  ;;  %v1370_v40 = vand.u32 2147483647, %v1360_v35  ;;  %vm1366_vm15 = vweird.f32 %v1360_v35 }
 0x45a   :  { %v1354_v25 = vor.u32 1.1754944e-38, %v1353_v29  ;;  %vm1352_vm2 = vcmp.eq.f32.partialorder %v1351_v56, 8.507059e+37  ;;  %v3713_v43 = vor.u32 %v3995_v32, %v3710_v33  ;;  %v5609_v44 = vld [vmem:[#allocation28_spill] sm:$0xff]  ;;  %v3991_v56 = vld [vmem:[#allocation4 + $0x1cc] sm:$0xf] }
 0x45b   :  { %v1373_v28 = vor.u32 1.1754944e-38, %v1372_v11  ;;  %vm1371_vm3 = vcmp.eq.f32.partialorder %v1370_v40, 8.507059e+37  ;;  %v3668_v40 = vld [vmem:[#allocation4 + $0x1a0] sm:$0xf] }
 0x45c   :  { %v4132_v51 = vpop.eup %4131 }
 0x45d   :  { %v1380_v3 = vadd.f32 1.0, %v4132_v51 }
 0x45e   :  { %v4134_v4 = vpop.eup %4133 }
 0x45f   :  { %v4136_v14 = vpop.eup %4135  ;;  %v1343_v15 = vmul.f32 %v4134_v4, %v1341_v34  ;;  %4137 = vrcp.f32 %v1380_v3  ;;  %vm1348_vm12 = vweird.f32 %v4134_v4  ;;  %v1392_v47 = vand.u32 2147483648, %v1380_v3 }
 0x460   :  { %v1362_v12 = vmul.f32 %v4136_v14, %v1360_v35  ;;  %4139 = vtanh.f32 %v1336_v10  ;;  %vm1367_vm13 = vweird.f32 %v4136_v14  ;;  %vm1349_vm0 = vmor %vm1347_vm14, %vm1348_vm12  ;;  %vm1386_vm5 = vweird.f32 %v1380_v3  ;;  %v3990_v10 = vld [vmem:[#allocation4 + $0x1c4] sm:$0xf] }
 0x461   :  { %v1344_v42 = vsub.f32 1.0, %v1343_v15  ;;  %vm1368_vm1 = vmor %vm1366_vm15, %vm1367_vm13  ;;  %v1390_v48 = vand.u32 2147483647, %v1380_v3  ;;  %v1393_v53 = vor.u32 1.1754944e-38, %v1392_v47  ;;  %v3686_v15 = vld [vmem:[#allocation4 + $0x1d0] sm:$0xf0] }
 0x462   :  { %v1363_v54 = vsub.f32 1.0, %v1362_v12  ;;  %v3692_v12 = vld [vmem:[#allocation4 + $0x1c8] sm:$0xf]  ;;  %v3689_v11 = vor.u32 %v3990_v10, %v3686_v15  ;;  %v3982_v47 = vld [vmem:[#allocation4 + $0x184] sm:$0xf] }
 0x463   :  { %v1345_v16 = vmul.f32 %v4134_v4, %v1344_v42  ;;  %vm1391_vm7 = vcmp.eq.f32.partialorder %v1390_v48, 8.507059e+37  ;;  %v3993_v42 = vld [vmem:[#allocation4 + $0x1d4] sm:$0xf0]  ;;  %v5611_v48 = vld [vmem:[#allocation32_spill] sm:$0xff] }
 0x464   :  { %v1364_v19 = vmul.f32 %v4136_v14, %v1363_v54  ;;  %v3981_v15 = vld [vmem:[#allocation4 + $0x174] sm:$0xf0] }
 0x465   :  { %v4138_v31 = vpop.eup %4137  ;;  %v1346_v57 = vadd.f32 %v4134_v4, %v1345_v16  ;;  %v3693_v16 = vor.u32 %v3993_v42, %v3692_v12  ;;  %v5612_v42 = vld [vmem:[#allocation30_spill] sm:$0xff] }
 0x466   :  { %v1365_v27 = vadd.f32 %v4136_v14, %v1364_v19  ;;  %v1382_v38 = vmul.f32 %v4138_v31, %v1380_v3  ;;  %v4140_v24 = vpop.eup %4139  ;;  %vm1387_vm4 = vweird.f32 %v4138_v31  ;;  %v3684_v3 = vld [vmem:[#allocation4 + $0x1c0] sm:$0xf]  ;;  %v3694_v19 = vld [vmem:[#allocation4 + $0x1d8] sm:$0xf0] }
 0x467   :  { %v1350_v6 = vsel %vm1349_vm0, %v4134_v4, %v1346_v57  ;;  %vm1388_vm6 = vmor %vm1386_vm5, %vm1387_vm4  ;;  %v3992_v4 = vld [vmem:[#allocation4 + $0x1cc] sm:$0xf0]  ;;  %v3697_v57 = vor.u32 %v3991_v56, %v3694_v19  ;;  %v3620_v56 = vld [vmem:[#allocation4 + $0x140] sm:$0xf] }
 0x468   :  { %v1355_v45 = vsel %vm1352_vm2, %v1354_v25, %v1350_v6  ;;  %v1369_v18 = vsel %vm1368_vm1, %v4136_v14, %v1365_v27  ;;  %v1383_v5 = vsub.f32 1.0, %v1382_v38  ;;  %v3685_v14 = vor.u32 %v3992_v4, %v3684_v3  ;;  %v3986_v27 = vld [vmem:[#allocation4 + $0x1a4] sm:$0xf]  ;;  %v3670_v38 = vld [vmem:[#allocation4 + $0x1b0] sm:$0xf0] }
 0x469   :  { %v1374_v63 = vsel %vm1371_vm3, %v1373_v28, %v1369_v18  ;;  %v1397_v39 = vmul.f32 %v4140_v24, %v1355_v45  ;;  %v3676_v28 = vld [vmem:[#allocation4 + $0x1a8] sm:$0xf]  ;;  %v3673_v6 = vor.u32 %v3986_v27, %v3670_v38  ;;  %v3989_v24 = vld [vmem:[#allocation4 + $0x1b4] sm:$0xf0]  ;;  %v3987_v45 = vld [vmem:[#allocation4 + $0x1ac] sm:$0xf] }
 0x46a   :  { %v1396_v0 = vmul.f32 %v1374_v63, %v4874_v17  ;;  %v1384_v58 = vmul.f32 %v4138_v31, %v1383_v5  ;;  %v3678_v18 = vld [vmem:[#allocation4 + $0x1b8] sm:$0xf0]  ;;  %v3638_v3 = vld [vmem:[#allocation4 + $0x170] sm:$0xf0] }
 0x46b   :  { %v3622_v38 = vld [vmem:[#allocation4 + $0x150] sm:$0xf0] }
 0x46c   :  { %v4922_v37 = vadd.f32 %v1397_v39, %v1396_v0  ;;  %v1385_v41 = vadd.f32 %v4138_v31, %v1384_v58  ;;  %v3677_v39 = vor.u32 %v3989_v24, %v3676_v28  ;;  %v3681_v0 = vor.u32 %v3987_v45, %v3678_v18  ;;  %v3652_v58 = vld [vmem:[#allocation4 + $0x180] sm:$0xf]  ;;  %v3628_v28 = vld [vmem:[#allocation4 + $0x148] sm:$0xf]  ;;  %v3975_v18 = vld [vmem:[#allocation4 + $0x14c] sm:$0xf] }
 0x46e   :  { %4141 = vtanh.f32 %v4922_v37  ;;  %v1389_v49 = vsel %vm1388_vm6, %v4138_v31, %v1385_v41  ;;  %v3988_v31 = vld [vmem:[#allocation4 + $0x1ac] sm:$0xf0] }
 0x46f   :  { %v1394_v60 = vsel %vm1391_vm7, %v1393_v53, %v1389_v49  ;;  %v3669_v25 = vor.u32 %v3988_v31, %v3668_v40  ;;  %v3984_v41 = vld [vmem:[#allocation4 + $0x18c] sm:$0xf0] }
 0x470   :  { %v3976_v31 = vld [vmem:[#allocation4 + $0x14c] sm:$0xf0] }
 0x471   :  { %v3621_v27 = vor.u32 %v3976_v31, %v3620_v56  ;;  %v3598_v56 = vld [vmem:[#allocation4 + $0x118] sm:$0xf0] }
 0x474   :  { %v4142_v59 = vpop.eup %4141 }
 0x475   :  { %v4925_v61 = vmul.f32 %v4142_v59, %v1394_v60  ;;  %v3653_v60 = vor.u32 %v3984_v41, %v3652_v58  ;;  %v3972_v41 = vld [vmem:[#allocation4 + $0x12c] sm:$0xf0] }
 0x477   :  { %v1406_v17 = vpack.c.bf16 %v4925_v61, %v4925_v61 }
 0x479   :  { %1415 = vmatmul.bf16.vlgmr.msrb.gmra.mxu0 %v1406_v17  ;;  %1428 = vmatmul.bf16.vlgmr.msrb.gmra.mxu1 %v1406_v17 }
 0x47a   :  { %1441 = vmatmul.bf16.vlgmr.msrb.gmra.mxu2 %v1406_v17  ;;  %1454 = vmatmul.bf16.vlgmr.msrb.gmra.mxu3 %v1406_v17  ;;  %v3654_v17 = vld [vmem:[#allocation4 + $0x190] sm:$0xf0] }
 0x47b   :  { %1868 = vmatpush.bf16.msrb.mxu0 %v3701_v9  ;;  %1897 = vmatpush.bf16.msrb.mxu1 %v3705_v22  ;;  %v3657_v8 = vor.u32 %v3982_v47, %v3654_v17  ;;  %v3661_v9 = vor.u32 %v3985_v7, %v3660_v1  ;;  %v5615_v1 = vld [vmem:[#allocation11_spill] sm:$0xff] }
 0x47c   :  { %1926 = vmatpush.bf16.msrb.mxu2 %v3709_v26  ;;  %1955 = vmatpush.bf16.msrb.mxu3 %v3713_v43  ;;  %v3665_v26 = vor.u32 %v3983_v13, %v3662_v20 }
 0x47f   :  { %1869 = vmatpush.bf16.msrb.mxu0 %v3685_v14  ;;  %1898 = vmatpush.bf16.msrb.mxu1 %v3689_v11  ;;  %v3644_v14 = vld [vmem:[#allocation4 + $0x168] sm:$0xf]  ;;  %v3979_v11 = vld [vmem:[#allocation4 + $0x16c] sm:$0xf] }
 0x480   :  { %1927 = vmatpush.bf16.msrb.mxu2 %v3693_v16  ;;  %1956 = vmatpush.bf16.msrb.mxu3 %v3697_v57  ;;  %v3646_v16 = vld [vmem:[#allocation4 + $0x178] sm:$0xf0]  ;;  %v3974_v57 = vld [vmem:[#allocation4 + $0x144] sm:$0xf] }
 0x481   :  { %v3649_v40 = vor.u32 %v3979_v11, %v3646_v16  ;;  %v3967_v16 = vld [vmem:[#allocation4 + $0x10c] sm:$0xf] }
 0x483   :  { %1870 = vmatpush.bf16.msrb.mxu0 %v3669_v25  ;;  %1899 = vmatpush.bf16.msrb.mxu1 %v3673_v6  ;;  %v3977_v6 = vld [vmem:[#allocation4 + $0x154] sm:$0xf0] }
 0x484   :  { %1928 = vmatpush.bf16.msrb.mxu2 %v3677_v39  ;;  %1957 = vmatpush.bf16.msrb.mxu3 %v3681_v0 }
 0x487   :  { %1871 = vmatpush.bf16.msrb.mxu0 %v3653_v60  ;;  %1900 = vmatpush.bf16.msrb.mxu1 %v3657_v8  ;;  %v3606_v60 = vld [vmem:[#allocation4 + $0x130] sm:$0xf0] }
 0x488   :  { %1929 = vmatpush.bf16.msrb.mxu2 %v3661_v9  ;;  %1958 = vmatpush.bf16.msrb.mxu3 %v3665_v26  ;;  %v3612_v9 = vld [vmem:[#allocation4 + $0x128] sm:$0xf]  ;;  %v3614_v26 = vld [vmem:[#allocation4 + $0x138] sm:$0xf0] }
 0x48c   :  { %1959 = vmatpush.bf16.msrb.mxu3 %v3649_v40 }
 0x4f6   :  { %v1416_v34 = vpop.f32.mrf.mxu0  ;;  %v1429_v35 = vpop.f32.mrf.mxu1 }
 0x4f7   :  { %v1459_v51 = vadd.f32 %v1416_v34, %v5609_v44  ;;  %v1460_v2 = vadd.f32 %v1429_v35, %v5610_v52  ;;  %v3636_v35 = vld [vmem:[#allocation4 + $0x160] sm:$0xf] }
 0x4f9   :  { %v3580_v54 = vmul.f32 -1.442695, %v1459_v51  ;;  %v3581_v29 = vmul.f32 -1.442695, %v1460_v2  ;;  %v3980_v51 = vld [vmem:[#allocation4 + $0x16c] sm:$0xf0] }
 0x4fa   :  { %v3637_v52 = vor.u32 %v3980_v51, %v3636_v35  ;;  %v3978_v2 = vld [vmem:[#allocation4 + $0x164] sm:$0xf]  ;;  %v3968_v51 = vld [vmem:[#allocation4 + $0x10c] sm:$0xf0] }
 0x4fb   :  { %4143 = vpow2.f32 %v3580_v54  ;;  %v3641_v10 = vor.u32 %v3978_v2, %v3638_v3 }
 0x4fc   :  { %4145 = vpow2.f32 %v3581_v29  ;;  %1872 = vmatpush.bf16.msrb.mxu0 %v3637_v52  ;;  %v3645_v29 = vor.u32 %v3981_v15, %v3644_v14  ;;  %v3966_v52 = vld [vmem:[#allocation4 + $0x104] sm:$0xf]  ;;  %v3596_v14 = vld [vmem:[#allocation4 + $0x108] sm:$0xf]  ;;  %v3969_v15 = vld [vmem:[#allocation4 + $0x114] sm:$0xf0] }
 0x4fd   :  { %v1442_v5 = vpop.f32.mrf.mxu2  ;;  %v1455_v63 = vpop.f32.mrf.mxu3  ;;  %1901 = vmatpush.bf16.msrb.mxu1 %v3641_v10  ;;  %v3590_v10 = vld [vmem:[#allocation4 + $0x110] sm:$0xf0]  ;;  %v3597_v31 = vor.u32 %v3969_v15, %v3596_v14  ;;  %v4023_v14 = vld [vmem:[#allocation6 + $0x1cc] sm:$0xf]  ;;  %v3822_v15 = vld [vmem:[#allocation6 + $0x1d8] sm:$0xf0] }
 0x4fe   :  { %v1462_v49 = vadd.f32 %v1455_v63, %v5611_v48  ;;  %v1418_v53 = vpop.f32.mrf.mxu0  ;;  %v1431_v59 = vpop.f32.mrf.mxu1  ;;  %v1461_v54 = vadd.f32 %v1442_v5, %v5612_v42  ;;  %1930 = vmatpush.bf16.msrb.mxu2 %v3645_v29  ;;  %v3630_v5 = vld [vmem:[#allocation4 + $0x158] sm:$0xf0]  ;;  %v3604_v63 = vld [vmem:[#allocation4 + $0x120] sm:$0xf]  ;;  %v3625_v48 = vor.u32 %v3974_v57, %v3622_v38  ;;  %v3593_v40 = vor.u32 %v3966_v52, %v3590_v10  ;;  %v3814_v10 = vld [vmem:[#allocation6 + $0x1d0] sm:$0xf0] }
 0x4ff   :  { %v3633_v53 = vor.u32 %v3975_v18, %v3630_v5  ;;  %v3970_v59 = vld [vmem:[#allocation4 + $0x124] sm:$0xf]  ;;  %v3605_v8 = vor.u32 %v3972_v41, %v3604_v63  ;;  %v3812_v52 = vld [vmem:[#allocation6 + $0x1c0] sm:$0xf] }
 0x500   :  { %v3582_v21 = vmul.f32 -1.442695, %v1462_v49  ;;  %1873 = vmatpush.bf16.msrb.mxu0 %v3621_v27  ;;  %v3629_v49 = vor.u32 %v3977_v6, %v3628_v28  ;;  %v3609_v20 = vor.u32 %v3970_v59, %v3606_v60  ;;  %v3601_v28 = vor.u32 %v3967_v16, %v3598_v56  ;;  %v3830_v60 = vld [vmem:[#allocation6 + $0x1f0] sm:$0xf0]  ;;  %v4018_v16 = vld [vmem:[#allocation6 + $0x1a4] sm:$0xf] }
 0x501   :  { %v4144_v22 = vpop.eup %4143  ;;  %1902 = vmatpush.bf16.msrb.mxu1 %v3625_v48  ;;  %1960 = vmatpush.bf16.msrb.mxu3 %v3633_v53  ;;  %v1660_v48 = vpack.c.bf16 %v4741_v62, %v4693_v23  ;;  %v4026_v53 = vld [vmem:[#allocation6 + $0x1e4] sm:$0xf]  ;;  %v1662_v23 = vpack.c.bf16 %v4925_v61, %v4877_v55  ;;  %v4027_v62 = vld [vmem:[#allocation6 + $0x1ec] sm:$0xf] }
 0x502   :  { %v4146_v32 = vpop.eup %4145  ;;  %v4932_v33 = vadd.f32 1.0, %v4144_v22  ;;  %4147 = vpow2.f32 %v3582_v21  ;;  %1931 = vmatpush.bf16.msrb.mxu2 %v3629_v49  ;;  %v3973_v21 = vld [vmem:[#allocation4 + $0x134] sm:$0xf0]  ;;  %v3971_v22 = vld [vmem:[#allocation4 + $0x12c] sm:$0xf] }
 0x503   :  { %v4934_v34 = vadd.f32 1.0, %v4146_v32  ;;  %v3613_v35 = vor.u32 %v3973_v21, %v3612_v9  ;;  %v4028_v49 = vld [vmem:[#allocation6 + $0x1ec] sm:$0xf0]  ;;  %v3838_v9 = vld [vmem:[#allocation6 + $0x1f8] sm:$0xf0] }
 0x504   :  { %4149 = vrcp.f32 %v4932_v33  ;;  %v1476_v4 = vand.u32 2147483647, %v4932_v33  ;;  %v1478_v58 = vand.u32 2147483648, %v4932_v33  ;;  %1874 = vmatpush.bf16.msrb.mxu0 %v3605_v8  ;;  %vm1472_vm12 = vweird.f32 %v4932_v33  ;;  %v4029_v21 = vld [vmem:[#allocation6 + $0x1f4] sm:$0xf0] }
 0x505   :  { %4151 = vrcp.f32 %v4934_v34  ;;  %v1444_v43 = vpop.f32.mrf.mxu2  ;;  %v1457_v44 = vpop.f32.mrf.mxu3  ;;  %v1497_v0 = vand.u32 2147483648, %v4934_v34  ;;  %v1495_v7 = vand.u32 2147483647, %v4934_v34  ;;  %vm1491_vm11 = vweird.f32 %v4934_v34  ;;  %1903 = vmatpush.bf16.msrb.mxu1 %v3609_v20  ;;  %v3836_v20 = vld [vmem:[#allocation6 + $0x1e8] sm:$0xf] }
 0x506   :  { %vm4953_vm8 = vcmp.eq.f32.partialorder %v1476_v4, 8.507059e+37  ;;  %v3617_v43 = vor.u32 %v3971_v22, %v3614_v26  ;;  %v3588_v44 = vld [vmem:[#allocation4 + $0x100] sm:$0xf]  ;;  %1932 = vmatpush.bf16.msrb.mxu2 %v3613_v35  ;;  %v5003_v22 = vor.u32 %v4029_v21, %v3836_v20  ;;  %v5617_v26 = vld [vmem:[#allocation31_spill] sm:$0xff]  ;;  %v5618_v35 = vld [vmem:[#allocation33_spill] sm:$0xff] }
 0x507   :  { %v3589_v4 = vor.u32 %v3968_v51, %v3588_v44  ;;  %v1498_v42 = vor.u32 1.1754944e-38, %v1497_v0  ;;  %vm1496_vm15 = vcmp.eq.f32.partialorder %v1495_v7, 8.507059e+37  ;;  %v5616_v7 = vld [vmem:[#allocation12_spill] sm:$0xff]  ;;  %v369_v55 = vadd.f32 %v5618_v35, %v4617_v36  ;;  %v3820_v36 = vld [vmem:[#allocation6 + $0x1c8] sm:$0xf] }
 0x508   :  { %v4148_v12 = vpop.eup %4147  ;;  %1961 = vmatpush.bf16.msrb.mxu3 %v3617_v43  ;;  %v1661_v8 = vpack.c.bf16 %v5616_v7, %v5615_v1  ;;  %v3764_v1 = vld [vmem:[#allocation6 + $0x160] sm:$0xf]  ;;  %v4012_v7 = vld [vmem:[#allocation6 + $0x16c] sm:$0xf0]  ;;  %v4011_v20 = vld [vmem:[#allocation6 + $0x16c] sm:$0xf] }
 0x509   :  { %v4940_v19 = vadd.f32 1.0, %v4148_v12  ;;  %1875 = vmatpush.bf16.msrb.mxu0 %v3589_v4  ;;  %1904 = vmatpush.bf16.msrb.mxu1 %v3593_v40  ;;  %v4019_v40 = vld [vmem:[#allocation6 + $0x1ac] sm:$0xf]  ;;  %v4017_v35 = vld [vmem:[#allocation6 + $0x194] sm:$0xf0] }
 0x50a   :  { %v4942_v25 = vpop.eup %4149  ;;  %1933 = vmatpush.bf16.msrb.mxu2 %v3597_v31  ;;  %v3806_v31 = vld [vmem:[#allocation6 + $0x1b8] sm:$0xf0] }
 0x50b   :  { %v4944_v24 = vpop.eup %4151  ;;  %v1468_v45 = vmul.f32 %v4942_v25, %v4932_v33  ;;  %4153 = vrcp.f32 %v4940_v19  ;;  %vm1473_vm9 = vweird.f32 %v4942_v25  ;;  %vm1511_vm1 = vweird.f32 %v4940_v19 }
 0x50c   :  { %v1487_v39 = vmul.f32 %v4944_v24, %v4934_v34  ;;  %4155 = vtanh.f32 %v1461_v54  ;;  %vm1492_vm10 = vweird.f32 %v4944_v24  ;;  %vm1474_vm13 = vmor %vm1472_vm12, %vm1473_vm9  ;;  %v1479_v54 = vor.u32 1.1754944e-38, %v1478_v58  ;;  %1962 = vmatpush.bf16.msrb.mxu3 %v3601_v28 }
 0x50d   :  { %v1469_v47 = vsub.f32 1.0, %v1468_v45  ;;  %vm1493_vm14 = vmor %vm1491_vm11, %vm1492_vm10  ;;  %v1515_v63 = vand.u32 2147483647, %v4940_v19  ;;  %v5025_v28 = vor.u32 %v4019_v40, %v3806_v31 }
 0x50e   :  { %v1488_v17 = vsub.f32 1.0, %v1487_v39 }
 0x50f   :  { %v1470_v13 = vmul.f32 %v4942_v25, %v1469_v47  ;;  %vm1516_vm3 = vcmp.eq.f32.partialorder %v1515_v63, 8.507059e+37  ;;  %v4014_v63 = vld [vmem:[#allocation6 + $0x184] sm:$0xf] }
 0x510   :  { %v1489_v32 = vmul.f32 %v4944_v24, %v1488_v17  ;;  %v4992_v17 = vor.u32 %v4026_v53, %v3830_v60 }
 0x511   :  { %v4154_v2 = vpop.eup %4153  ;;  %v1471_v3 = vadd.f32 %v4942_v25, %v1470_v13  ;;  %v5000_v13 = vor.u32 %v4027_v62, %v3838_v9  ;;  %v3766_v9 = vld [vmem:[#allocation6 + $0x170] sm:$0xf0] }
 0x512   :  { %v4156_v12 = vpop.eup %4155  ;;  %v1490_v29 = vadd.f32 %v4944_v24, %v1489_v32  ;;  %v1507_v11 = vmul.f32 %v4154_v2, %v4940_v19  ;;  %vm1512_vm0 = vweird.f32 %v4154_v2  ;;  %v340_v32 = vadd.f32 %v5617_v26, %v4613_v30  ;;  %v3774_v26 = vld [vmem:[#allocation6 + $0x178] sm:$0xf0] }
 0x513   :  { %v1475_v33 = vsel %vm1474_vm13, %v4942_v25, %v1471_v3  ;;  %vm1513_vm2 = vmor %vm1511_vm1, %vm1512_vm0  ;;  %v4022_v3 = vld [vmem:[#allocation6 + $0x1c4] sm:$0xf] }
 0x514   :  { %v1480_v57 = vsel %vm4953_vm8, %v1479_v54, %v1475_v33  ;;  %v1494_v27 = vsel %vm1493_vm14, %v4944_v24, %v1490_v29  ;;  %v1508_v38 = vsub.f32 1.0, %v1507_v11  ;;  %v1517_v24 = vand.u32 2147483648, %v4940_v19  ;;  %v3828_v19 = vld [vmem:[#allocation6 + $0x1e0] sm:$0xf]  ;;  %v4020_v11 = vld [vmem:[#allocation6 + $0x1ac] sm:$0xf0] }
 0x515   :  { %v1499_v6 = vsel %vm1496_vm15, %v1498_v42, %v1494_v27  ;;  %v1522_v45 = vmul.f32 %v4156_v12, %v1480_v57  ;;  %v4990_v59 = vor.u32 %v4028_v49, %v3828_v19  ;;  %v5012_v30 = vor.u32 %v4022_v3, %v3814_v10  ;;  %v3796_v29 = vld [vmem:[#allocation6 + $0x1a0] sm:$0xf]  ;;  %v3798_v33 = vld [vmem:[#allocation6 + $0x1b0] sm:$0xf0]  ;;  %v5619_v57 = vld [vmem:[#allocation35_spill] sm:$0xff] }
 0x516   :  { %v1521_v34 = vmul.f32 %v1499_v6, %v4922_v37  ;;  %v1509_v18 = vmul.f32 %v4154_v2, %v1508_v38  ;;  %v1518_v0 = vor.u32 1.1754944e-38, %v1517_v24  ;;  %v5014_v54 = vor.u32 %v4023_v14, %v3822_v15  ;;  %v4025_v6 = vld [vmem:[#allocation6 + $0x1d4] sm:$0xf0]  ;;  %v3804_v19 = vld [vmem:[#allocation6 + $0x1a8] sm:$0xf] }
 0x517   :  { %v5019_v56 = vor.u32 %v4020_v11, %v3796_v29  ;;  %v427_v27 = vadd.f32 %v5619_v57, %v4629_v50  ;;  %v5023_v38 = vor.u32 %v4018_v16, %v3798_v33  ;;  %v5029_v24 = vor.u32 %v4025_v6, %v3820_v36  ;;  %v4021_v49 = vld [vmem:[#allocation6 + $0x1b4] sm:$0xf0]  ;;  %v4008_v3 = vld [vmem:[#allocation6 + $0x14c] sm:$0xf0]  ;;  %v4006_v14 = vld [vmem:[#allocation6 + $0x144] sm:$0xf] }
 0x518   :  { %v4978_v25 = vadd.f32 %v1522_v45, %v1521_v34  ;;  %v1510_v5 = vadd.f32 %v4154_v2, %v1509_v18  ;;  %v3780_v45 = vld [vmem:[#allocation6 + $0x180] sm:$0xf]  ;;  %v4016_v34 = vld [vmem:[#allocation6 + $0x18c] sm:$0xf0]  ;;  %v5041_v62 = vor.u32 %v4021_v49, %v3804_v19  ;;  %v3750_v15 = vld [vmem:[#allocation6 + $0x150] sm:$0xf0] }
 0x519   :  { %v5032_v50 = vor.u32 %v4016_v34, %v3780_v45  ;;  %v3758_v29 = vld [vmem:[#allocation6 + $0x158] sm:$0xf0]  ;;  %v3772_v16 = vld [vmem:[#allocation6 + $0x168] sm:$0xf]  ;;  %v4013_v33 = vld [vmem:[#allocation6 + $0x174] sm:$0xf0]  ;;  %v5066_v40 = vor.u32 %v4006_v14, %v3750_v15 }
 0x51a   :  { %4157 = vtanh.f32 %v4978_v25  ;;  %v1514_v39 = vsel %vm1513_vm2, %v4154_v2, %v1510_v5  ;;  %v4024_v2 = vld [vmem:[#allocation6 + $0x1cc] sm:$0xf0]  ;;  %v3732_v57 = vld [vmem:[#allocation6 + $0x120] sm:$0xf]  ;;  %v4003_v49 = vld [vmem:[#allocation6 + $0x12c] sm:$0xf] }
 0x51b   :  { %v1519_v58 = vsel %vm1516_vm3, %v1518_v0, %v1514_v39  ;;  %v5010_v4 = vor.u32 %v4024_v2, %v3812_v52  ;;  %v3782_v39 = vld [vmem:[#allocation6 + $0x190] sm:$0xf0]  ;;  %v4015_v0 = vld [vmem:[#allocation6 + $0x18c] sm:$0xf]  ;;  %v5054_v52 = vor.u32 %v4011_v20, %v3774_v26  ;;  %v3748_v2 = vld [vmem:[#allocation6 + $0x140] sm:$0xf] }
 0x51c   :  { %v5036_v53 = vor.u32 %v4014_v63, %v3782_v39  ;;  %v5062_v11 = vor.u32 %v4008_v3, %v3748_v2  ;;  %v5620_v45 = vld [vmem:[#allocation34_spill] sm:$0xff]  ;;  %v3734_v39 = vld [vmem:[#allocation6 + $0x130] sm:$0xf0]  ;;  %v4000_v14 = vld [vmem:[#allocation6 + $0x10c] sm:$0xf0] }
 0x51d   :  { %v398_v34 = vadd.f32 %v5620_v45, %v4627_v46  ;;  %v4002_v63 = vld [vmem:[#allocation6 + $0x124] sm:$0xf]  ;;  %v3742_v46 = vld [vmem:[#allocation6 + $0x138] sm:$0xf0]  ;;  %v3716_v3 = vld [vmem:[#allocation6 + $0x100] sm:$0xf] }
 0x51e   :  { %v5099_v26 = vor.u32 %v4003_v49, %v3742_v46 }
 0x520   :  { %v4158_v37 = vpop.eup %4157 }
 0x521   :  { %v4984_v41 = vmul.f32 %v4158_v37, %v1519_v58 }
 0x523   :  { %v1531_v47 = vpack.c.bf16 %v4984_v41, %v4984_v41 }
 0x525   :  { %1540 = vmatmul.bf16.vlgmr.msra.gmra.mxu0 %v1531_v47  ;;  %1553 = vmatmul.bf16.vlgmr.msra.gmra.mxu1 %v1531_v47 }
 0x526   :  { %1566 = vmatmul.bf16.vlgmr.msra.gmra.mxu2 %v1531_v47  ;;  %1579 = vmatmul.bf16.vlgmr.msra.gmra.mxu3 %v1531_v47 }
 0x527   :  { %2213 = vmatpush.bf16.msra.mxu0 %v4990_v59  ;;  %2226 = vmatpush.bf16.msra.mxu1 %v4992_v17 }
 0x528   :  { %2252 = vmatpush.bf16.msra.mxu3 %v5000_v13  ;;  %2239 = vmatpush.bf16.msra.mxu2 %v5003_v22 }
 0x52b   :  { %2214 = vmatpush.bf16.msra.mxu0 %v5010_v4  ;;  %2227 = vmatpush.bf16.msra.mxu1 %v5012_v30 }
 0x52c   :  { %2253 = vmatpush.bf16.msra.mxu3 %v5014_v54  ;;  %2240 = vmatpush.bf16.msra.mxu2 %v5029_v24 }
 0x52f   :  { %2215 = vmatpush.bf16.msra.mxu0 %v5019_v56  ;;  %2228 = vmatpush.bf16.msra.mxu1 %v5023_v38 }
 0x530   :  { %2254 = vmatpush.bf16.msra.mxu3 %v5025_v28  ;;  %2241 = vmatpush.bf16.msra.mxu2 %v5041_v62 }
 0x533   :  { %2216 = vmatpush.bf16.msra.mxu0 %v5032_v50  ;;  %2229 = vmatpush.bf16.msra.mxu1 %v5036_v53 }
 0x535   :  { %1876 = vmatmul.bf16.vlgmr.msrb.gmra.mxu0 %v1660_v48  ;;  %1905 = vmatmul.bf16.vlgmr.msrb.gmra.mxu1 %v1660_v48 }
 0x536   :  { %1934 = vmatmul.bf16.vlgmr.msrb.gmra.mxu2 %v1660_v48  ;;  %1963 = vmatmul.bf16.vlgmr.msrb.gmra.mxu3 %v1660_v48  ;;  %v3790_v48 = vld [vmem:[#allocation6 + $0x198] sm:$0xf0] }
 0x537   :  { %v5038_v60 = vor.u32 %v4015_v0, %v3790_v48 }
 0x539   :  { %2255 = vmatpush.bf16.msra.mxu3 %v5038_v60 }
 0x53d   :  { %2256 = vmatpush.bf16.msra.mxu3 %v5054_v52 }
 0x545   :  { %1881 = vmatmul.bf16.gmra.mxu0 %v1661_v8  ;;  %1910 = vmatmul.bf16.gmra.mxu1 %v1661_v8 }
 0x546   :  { %1939 = vmatmul.bf16.gmra.mxu2 %v1661_v8  ;;  %1968 = vmatmul.bf16.gmra.mxu3 %v1661_v8  ;;  %v4010_v8 = vld [vmem:[#allocation6 + $0x164] sm:$0xf] }
 0x555   :  { %1886 = vmatmul.bf16.gmra.mxu0 %v1662_v23  ;;  %1915 = vmatmul.bf16.gmra.mxu1 %v1662_v23 }
 0x556   :  { %1944 = vmatmul.bf16.gmra.mxu2 %v1662_v23  ;;  %1973 = vmatmul.bf16.gmra.mxu3 %v1662_v23 }
 0x5a2   :  { %v1541_v61 = vpop.f32.mrf.mxu0  ;;  %v1554_v43 = vpop.f32.mrf.mxu1 }
 0x5a3   :  { %v1584_v44 = vadd.f32 %v1541_v61, %v340_v32  ;;  %v1585_v51 = vadd.f32 %v1554_v43, %v369_v55  ;;  %v3788_v32 = vld [vmem:[#allocation6 + $0x188] sm:$0xf]  ;;  %v5046_v43 = vor.u32 %v4012_v7, %v3764_v1 }
 0x5a4   :  { %v5058_v10 = vor.u32 %v4017_v35, %v3788_v32  ;;  %v3740_v32 = vld [vmem:[#allocation6 + $0x128] sm:$0xf]  ;;  %v4005_v35 = vld [vmem:[#allocation6 + $0x134] sm:$0xf0] }
 0x5a5   :  { %v3583_v12 = vmul.f32 -1.442695, %v1584_v44  ;;  %v3584_v42 = vmul.f32 -1.442695, %v1585_v51  ;;  %v5052_v51 = vor.u32 %v4010_v8, %v3766_v9  ;;  %2217 = vmatpush.bf16.msra.mxu0 %v5046_v43  ;;  %v5090_v8 = vor.u32 %v4002_v63, %v3734_v39  ;;  %v4001_v63 = vld [vmem:[#allocation6 + $0x114] sm:$0xf0] }
 0x5a6   :  { %2242 = vmatpush.bf16.msra.mxu2 %v5058_v10  ;;  %v3726_v39 = vld [vmem:[#allocation6 + $0x118] sm:$0xf0] }
 0x5a7   :  { %4159 = vpow2.f32 %v3583_v12  ;;  %v4007_v12 = vld [vmem:[#allocation6 + $0x14c] sm:$0xf]  ;;  %2230 = vmatpush.bf16.msra.mxu1 %v5052_v51 }
 0x5a8   :  { %4161 = vpow2.f32 %v3584_v42  ;;  %v5068_v31 = vor.u32 %v4007_v12, %v3758_v29 }
 0x5a9   :  { %v5027_v18 = vpop.f32.mrf.mxu2  ;;  %v1580_v5 = vpop.f32.mrf.mxu3  ;;  %2218 = vmatpush.bf16.msra.mxu0 %v5062_v11 }
 0x5aa   :  { %v1587_v37 = vadd.f32 %v1580_v5, %v427_v27  ;;  %v1543_v58 = vpop.f32.mrf.mxu0  ;;  %v1556_v47 = vpop.f32.mrf.mxu1  ;;  %v4004_v27 = vld [vmem:[#allocation6 + $0x12c] sm:$0xf0]  ;;  %v5073_v5 = vor.u32 %v4013_v33, %v3772_v16  ;;  %v1586_v48 = vadd.f32 %v5027_v18, %v398_v34  ;;  %2257 = vmatpush.bf16.msra.mxu3 %v5068_v31  ;;  %v5111_v16 = vor.u32 %v4000_v14, %v3716_v3  ;;  %v3724_v34 = vld [vmem:[#allocation6 + $0x108] sm:$0xf] }
 0x5ab   :  { %v4009_v58 = vld [vmem:[#allocation6 + $0x154] sm:$0xf0]  ;;  %v5081_v19 = vor.u32 %v4004_v27, %v3732_v57  ;;  %2231 = vmatpush.bf16.msra.mxu1 %v5066_v40  ;;  %v5115_v57 = vor.u32 %v4005_v35, %v3740_v32  ;;  %v3999_v27 = vld [vmem:[#allocation6 + $0x10c] sm:$0xf] }
 0x5ac   :  { %v3585_v23 = vmul.f32 -1.442695, %v1587_v37  ;;  %v3756_v37 = vld [vmem:[#allocation6 + $0x148] sm:$0xf]  ;;  %2243 = vmatpush.bf16.msra.mxu2 %v5073_v5  ;;  %v5125_v49 = vor.u32 %v3999_v27, %v3726_v39 }
 0x5ad   :  { %v4160_v21 = vpop.eup %4159  ;;  %v5096_v9 = vor.u32 %v4009_v58, %v3756_v37  ;;  %2219 = vmatpush.bf16.msra.mxu0 %v5081_v19 }
 0x5ae   :  { %v4162_v55 = vpop.eup %4161  ;;  %v5043_v61 = vadd.f32 1.0, %v4160_v21  ;;  %4163 = vpow2.f32 %v3585_v23  ;;  %2258 = vmatpush.bf16.msra.mxu3 %v5099_v26 }
 0x5af   :  { %v5048_v44 = vadd.f32 1.0, %v4162_v55  ;;  %2232 = vmatpush.bf16.msra.mxu1 %v5090_v8 }
 0x5b0   :  { %4165 = vrcp.f32 %v5043_v61  ;;  %v1601_v23 = vand.u32 2147483647, %v5043_v61  ;;  %v1603_v21 = vand.u32 2147483648, %v5043_v61  ;;  %2244 = vmatpush.bf16.msra.mxu2 %v5096_v9  ;;  %vm1597_vm7 = vweird.f32 %v5043_v61 }
 0x5b1   :  { %4167 = vrcp.f32 %v5048_v44  ;;  %v1569_v42 = vpop.f32.mrf.mxu2  ;;  %v1582_v36 = vpop.f32.mrf.mxu3  ;;  %v1622_v2 = vand.u32 2147483648, %v5048_v44  ;;  %v1620_v12 = vand.u32 2147483647, %v5048_v44  ;;  %vm1616_vm6 = vweird.f32 %v5048_v44  ;;  %2220 = vmatpush.bf16.msra.mxu0 %v5111_v16 }
 0x5b2   :  { %v3998_v42 = vld [vmem:[#allocation6 + $0x104] sm:$0xf]  ;;  %v3718_v36 = vld [vmem:[#allocation6 + $0x110] sm:$0xf0]  ;;  %v1604_v37 = vor.u32 1.1754944e-38, %v1603_v21  ;;  %vm1602_vm10 = vcmp.eq.f32.partialorder %v1601_v23, 8.507059e+37  ;;  %v5134_v21 = vor.u32 %v4001_v63, %v3724_v34  ;;  %2259 = vmatpush.bf16.msra.mxu3 %v5125_v49 }
 0x5b3   :  { %v5113_v33 = vor.u32 %v3998_v42, %v3718_v36  ;;  %vm1621_vm11 = vcmp.eq.f32.partialorder %v1620_v12, 8.507059e+37  ;;  %v1877_v36 = vpop.f32.mrf.mxu0 }
 0x5b4   :  { %v4164_v6 = vpop.eup %4163  ;;  %2245 = vmatpush.bf16.msra.mxu2 %v5115_v57 }
 0x5b5   :  { %v5075_v0 = vadd.f32 1.0, %v4164_v6  ;;  %2233 = vmatpush.bf16.msra.mxu1 %v5113_v33  ;;  %2337 = vmatpush.bf16.msrb.mxu0 %v4990_v59 }
 0x5b6   :  { %v5077_v47 = vpop.eup %4165  ;;  %2376 = vmatpush.bf16.msrb.mxu3 %v5000_v13 }
 0x5b7   :  { %v5083_v1 = vpop.eup %4167  ;;  %v1593_v7 = vmul.f32 %v5077_v47, %v5043_v61  ;;  %4169 = vrcp.f32 %v5075_v0  ;;  %vm1598_vm5 = vweird.f32 %v5077_v47  ;;  %vm1636_vm13 = vweird.f32 %v5075_v0 }
 0x5b8   :  { %v1612_v18 = vmul.f32 %v5083_v1, %v5048_v44  ;;  %4171 = vtanh.f32 %v1586_v48  ;;  %vm1617_vm4 = vweird.f32 %v5083_v1  ;;  %vm1599_vm8 = vmor %vm1597_vm7, %vm1598_vm5  ;;  %v1623_v44 = vor.u32 1.1754944e-38, %v1622_v2  ;;  %2246 = vmatpush.bf16.msra.mxu2 %v5134_v21 }
 0x5b9   :  { %v1594_v20 = vsub.f32 1.0, %v1593_v7  ;;  %vm1618_vm9 = vmor %vm1616_vm6, %vm1617_vm4  ;;  %2350 = vmatpush.bf16.msrb.mxu1 %v4992_v17  ;;  %2338 = vmatpush.bf16.msrb.mxu0 %v5010_v4  ;;  %v1642_v2 = vand.u32 2147483648, %v5075_v0  ;;  %v1935_v27 = vpop.f32.mrf.mxu2 }
 0x5ba   :  { %v1613_v55 = vsub.f32 1.0, %v1612_v18  ;;  %2377 = vmatpush.bf16.msrb.mxu3 %v5014_v54 }
 0x5bb   :  { %v1595_v15 = vmul.f32 %v5077_v47, %v1594_v20  ;;  %v1643_v14 = vor.u32 1.1754944e-38, %v1642_v2 }
 0x5bc   :  { %v1614_v29 = vmul.f32 %v5083_v1, %v1613_v55  ;;  %2363 = vmatpush.bf16.msrb.mxu2 %v5003_v22 }
 0x5bd   :  { %v4170_v6 = vpop.eup %4169  ;;  %v1596_v45 = vadd.f32 %v5077_v47, %v1595_v15  ;;  %2351 = vmatpush.bf16.msrb.mxu1 %v5012_v30  ;;  %2339 = vmatpush.bf16.msrb.mxu0 %v5019_v56 }
 0x5be   :  { %v1615_v58 = vadd.f32 %v5083_v1, %v1614_v29  ;;  %v1632_v48 = vmul.f32 %v4170_v6, %v5075_v0  ;;  %v4172_v46 = vpop.eup %4171  ;;  %vm1637_vm12 = vweird.f32 %v4170_v6  ;;  %2378 = vmatpush.bf16.msrb.mxu3 %v5025_v28  ;;  %v1906_v29 = vpop.f32.mrf.mxu1 }
 0x5bf   :  { %v1600_v61 = vsel %vm1599_vm8, %v5077_v47, %v1596_v45  ;;  %vm1638_vm14 = vmor %vm1636_vm13, %vm1637_vm12  ;;  %v5210_v45 = vpop.f32.mrf.mxu0 }
 0x5c0   :  { %v1605_v7 = vsel %vm1602_vm10, %v1604_v37, %v1600_v61  ;;  %v1619_v18 = vsel %vm1618_vm9, %v5083_v1, %v1615_v58  ;;  %v1633_v20 = vsub.f32 1.0, %v1632_v48  ;;  %2364 = vmatpush.bf16.msrb.mxu2 %v5029_v24 }
 0x5c1   :  { %v1624_v32 = vsel %vm1621_vm11, %v1623_v44, %v1619_v18  ;;  %v1647_v35 = vmul.f32 %v4172_v46, %v1605_v7  ;;  %2352 = vmatpush.bf16.msrb.mxu1 %v5023_v38  ;;  %2340 = vmatpush.bf16.msrb.mxu0 %v5032_v50  ;;  %v5214_v63 = vpop.f32.mrf.mxu2 }
 0x5c2   :  { %v1646_v47 = vmul.f32 %v1624_v32, %v4978_v25  ;;  %v1634_v23 = vmul.f32 %v4170_v6, %v1633_v20  ;;  %v1640_v25 = vand.u32 2147483647, %v5075_v0  ;;  %2379 = vmatpush.bf16.msrb.mxu3 %v5038_v60  ;;  %5622 = vst [vmem:[#allocation13_spill] sm:$0xff] %v5214_v63 }
 0x5c4   :  { %v1648_v55 = vadd.f32 %v1647_v35, %v1646_v47  ;;  %v1635_v1 = vadd.f32 %v4170_v6, %v1634_v23  ;;  %vm1641_vm15 = vcmp.eq.f32.partialorder %v1640_v25, 8.507059e+37  ;;  %2365 = vmatpush.bf16.msrb.mxu2 %v5041_v62 }
 0x5c5   :  { %2353 = vmatpush.bf16.msrb.mxu1 %v5036_v53  ;;  %2341 = vmatpush.bf16.msrb.mxu0 %v5046_v43 }
 0x5c6   :  { %4173 = vtanh.f32 %v1648_v55  ;;  %v1639_v3 = vsel %vm1638_vm14, %v4170_v6, %v1635_v1  ;;  %2380 = vmatpush.bf16.msrb.mxu3 %v5054_v52  ;;  %v1964_v6 = vpop.f32.mrf.mxu3  ;;  %v5212_v34 = vpop.f32.mrf.mxu1 }
 0x5c7   :  { %v1644_v12 = vsel %vm1641_vm15, %v1643_v14, %v1639_v3  ;;  %v5218_v37 = vpop.f32.mrf.mxu0 }
 0x5c8   :  { %2366 = vmatpush.bf16.msrb.mxu2 %v5058_v10  ;;  %5623 = vst [vmem:[#allocation16_spill] sm:$0xff] %v5218_v37 }
 0x5c9   :  { %2354 = vmatpush.bf16.msrb.mxu1 %v5052_v51  ;;  %2342 = vmatpush.bf16.msrb.mxu0 %v5062_v11  ;;  %v5222_v48 = vpop.f32.mrf.mxu2 }
 0x5ca   :  { %2381 = vmatpush.bf16.msrb.mxu3 %v5068_v31  ;;  %5625 = vst [vmem:[#allocation15_spill] sm:$0xff] %v5222_v48 }
 0x5cc   :  { %v4174_v15 = vpop.eup %4173  ;;  %2367 = vmatpush.bf16.msrb.mxu2 %v5073_v5 }
 0x5cd   :  { %v1650_v42 = vmul.f32 %v4174_v15, %v1644_v12  ;;  %2355 = vmatpush.bf16.msrb.mxu1 %v5066_v40  ;;  %2343 = vmatpush.bf16.msrb.mxu0 %v5081_v19  ;;  %v1698_v12 = vld [vmem:[#allocation8 + $0x4] sm:$0xf] }
 0x5ce   :  { %2382 = vmatpush.bf16.msrb.mxu3 %v5099_v26  ;;  %v5216_v39 = vpop.f32.mrf.mxu3  ;;  %v5220_v58 = vpop.f32.mrf.mxu1 }
 0x5cf   :  { %v1663_v0 = vpack.c.bf16 %v1650_v42, %v4984_v41  ;;  %v5621_v41 = vmov 0   ;;  %5624 = vst [vmem:[#allocation14_spill] sm:$0xff] %v5220_v58  ;;  %v5226_v61 = vpop.f32.mrf.mxu0 }
 0x5d0   :  { %2368 = vmatpush.bf16.msrb.mxu2 %v5096_v9  ;;  %5627 = vst [vmem:[#allocation19_spill] sm:$0xff] %v5226_v61 }
 0x5d1   :  { %1891 = vmatmul.bf16.gmra.mxu0 %v1663_v0  ;;  %1920 = vmatmul.bf16.gmra.mxu1 %v1663_v0  ;;  %v5230_v7 = vpop.f32.mrf.mxu2 }
 0x5d2   :  { %1949 = vmatmul.bf16.gmra.mxu2 %v1663_v0  ;;  %1978 = vmatmul.bf16.gmra.mxu3 %v1663_v0  ;;  %5629 = vst [vmem:[#allocation20_spill] sm:$0xff] %v5230_v7 }
 0x5d3   :  { %2356 = vmatpush.bf16.msrb.mxu1 %v5090_v8  ;;  %2344 = vmatpush.bf16.msrb.mxu0 %v5111_v16 }
 0x5d4   :  { %2369 = vmatpush.bf16.msrb.mxu2 %v5115_v57  ;;  %2383 = vmatpush.bf16.msrb.mxu3 %v5125_v49 }
 0x5d6   :  { %v5224_v44 = vpop.f32.mrf.mxu3  ;;  %v5228_v46 = vpop.f32.mrf.mxu1 }
 0x5d7   :  { %2357 = vmatpush.bf16.msrb.mxu1 %v5113_v33  ;;  %5626 = vst [vmem:[#allocation17_spill] sm:$0xff] %v5224_v44  ;;  %v5234_v20 = vpop.f32.mrf.mxu0 }
 0x5d8   :  { %2370 = vmatpush.bf16.msrb.mxu2 %v5134_v21  ;;  %5628 = vst [vmem:[#allocation18_spill] sm:$0xff] %v5228_v46 }
 0x5d9   :  { %5631 = vst [vmem:[#allocation24_spill] sm:$0xff] %v5234_v20  ;;  %v5238_v35 = vpop.f32.mrf.mxu2 }
 0x5da   :  { %5633 = vst [vmem:[#allocation23_spill] sm:$0xff] %v5238_v35 }
 0x5de   :  { %v5232_v18 = vpop.f32.mrf.mxu3  ;;  %v5236_v32 = vpop.f32.mrf.mxu1 }
 0x5df   :  { %5630 = vst [vmem:[#allocation21_spill] sm:$0xff] %v5232_v18  ;;  %v5242_v23 = vpop.f32.mrf.mxu0 }
 0x5e0   :  { %5632 = vst [vmem:[#allocation22_spill] sm:$0xff] %v5236_v32 }
 0x5e1   :  { %2221 = vmatmul.bf16.vlgmr.msra.gmra.mxu0 %v5621_v41  ;;  %2234 = vmatmul.bf16.vlgmr.msra.gmra.mxu1 %v5621_v41  ;;  %5635 = vst [vmem:[#allocation27_spill] sm:$0xff] %v5242_v23  ;;  %v5246_v1 = vpop.f32.mrf.mxu2 }
 0x5e2   :  { %2247 = vmatmul.bf16.vlgmr.msra.gmra.mxu2 %v5621_v41  ;;  %2260 = vmatmul.bf16.vlgmr.msra.gmra.mxu3 %v5621_v41  ;;  %5637 = vst [vmem:[#allocation28_spill] sm:$0xff] %v5246_v1  ;;  %v5262_v41 = vperm.slane %v1698_v12, 0 }
 0x5e3   :  { %2461 = vmatpush.bf16.msra.mxu0 %v4990_v59  ;;  %2474 = vmatpush.bf16.msra.mxu1 %v4992_v17 }
 0x5e4   :  { %2487 = vmatpush.bf16.msra.mxu2 %v5003_v22  ;;  %2500 = vmatpush.bf16.msra.mxu3 %v5000_v13  ;;  %v1878_v1 = vadd.f32 %v1877_v36, %v5262_v41 }
 0x5e6   :  { %v5240_v47 = vpop.f32.mrf.mxu3  ;;  %v5244_v55 = vpop.f32.mrf.mxu1 }
 0x5e7   :  { %2462 = vmatpush.bf16.msra.mxu0 %v5010_v4  ;;  %2475 = vmatpush.bf16.msra.mxu1 %v5012_v30  ;;  %5634 = vst [vmem:[#allocation25_spill] sm:$0xff] %v5240_v47  ;;  %v5272_v47 = vperm.slane %v1698_v12, 3 }
 0x5e8   :  { %2488 = vmatpush.bf16.msra.mxu2 %v5029_v24  ;;  %2501 = vmatpush.bf16.msra.mxu3 %v5014_v54  ;;  %5636 = vst [vmem:[#allocation26_spill] sm:$0xff] %v5244_v55  ;;  %v5264_v55 = vperm.slane %v1698_v12, 1 }
 0x5e9   :  { %v1965_v32 = vadd.f32 %v1964_v6, %v5272_v47 }
 0x5eb   :  { %2463 = vmatpush.bf16.msra.mxu0 %v5019_v56  ;;  %2476 = vmatpush.bf16.msra.mxu1 %v5023_v38 }
 0x5ec   :  { %2489 = vmatpush.bf16.msra.mxu2 %v5041_v62  ;;  %2502 = vmatpush.bf16.msra.mxu3 %v5025_v28 }
 0x5ee   :  { %v5248_v2 = vpop.f32.mrf.mxu3 }
 0x5ef   :  { %2464 = vmatpush.bf16.msra.mxu0 %v5032_v50  ;;  %2477 = vmatpush.bf16.msra.mxu1 %v5036_v53  ;;  %5638 = vst [vmem:[#allocation29_spill] sm:$0xff] %v5248_v2  ;;  %v1907_v2 = vadd.f32 %v1906_v29, %v5264_v55 }
 0x5f0   :  { %2490 = vmatpush.bf16.msra.mxu2 %v5058_v10  ;;  %2503 = vmatpush.bf16.msra.mxu3 %v5038_v60 }
 0x5f3   :  { %2465 = vmatpush.bf16.msra.mxu0 %v5046_v43  ;;  %2478 = vmatpush.bf16.msra.mxu1 %v5052_v51 }
 0x5f4   :  { %2491 = vmatpush.bf16.msra.mxu2 %v5073_v5  ;;  %2504 = vmatpush.bf16.msra.mxu3 %v5054_v52 }
 0x5f7   :  { %2466 = vmatpush.bf16.msra.mxu0 %v5062_v11  ;;  %2479 = vmatpush.bf16.msra.mxu1 %v5066_v40 }
 0x5f8   :  { %2492 = vmatpush.bf16.msra.mxu2 %v5096_v9  ;;  %2505 = vmatpush.bf16.msra.mxu3 %v5068_v31 }
 0x5fb   :  { %2467 = vmatpush.bf16.msra.mxu0 %v5081_v19  ;;  %2480 = vmatpush.bf16.msra.mxu1 %v5090_v8 }
 0x5fc   :  { %2493 = vmatpush.bf16.msra.mxu2 %v5115_v57  ;;  %2506 = vmatpush.bf16.msra.mxu3 %v5099_v26 }
 0x5ff   :  { %2468 = vmatpush.bf16.msra.mxu0 %v5111_v16  ;;  %2481 = vmatpush.bf16.msra.mxu1 %v5113_v33 }
 0x600   :  { %2494 = vmatpush.bf16.msra.mxu2 %v5134_v21  ;;  %2507 = vmatpush.bf16.msra.mxu3 %v5125_v49 }
 0x64e   :  { %v5250_v25 = vpop.f32.mrf.mxu0  ;;  %v5252_v3 = vpop.f32.mrf.mxu1 }
 0x64f   :  { %5639 = vst [vmem:[#allocation32_spill] sm:$0xff] %v5250_v25 }
 0x650   :  { %5640 = vst [vmem:[#allocation30_spill] sm:$0xff] %v5252_v3 }
 0x655   :  { %v5254_v14 = vpop.f32.mrf.mxu2  ;;  %v5256_v15 = vpop.f32.mrf.mxu3 }
 0x656   :  { %5641 = vst [vmem:[#allocation11_spill] sm:$0xff] %v5254_v14  ;;  %v5258_v42 = vpop.f32.mrf.mxu0  ;;  %v5260_v0 = vpop.f32.mrf.mxu1 }
 0x657   :  { %5642 = vst [vmem:[#allocation12_spill] sm:$0xff] %v5256_v15 }
 0x658   :  { %5643 = vst [vmem:[#allocation31_spill] sm:$0xff] %v5258_v42 }
 0x659   :  { %5644 = vst [vmem:[#allocation33_spill] sm:$0xff] %v5260_v0 }
 0x65d   :  { %v5268_v25 = vpop.f32.mrf.mxu2  ;;  %v5270_v3 = vpop.f32.mrf.mxu3 }
 0x65e   :  { %5645 = vst [vmem:[#allocation35_spill] sm:$0xff] %v5268_v25  ;;  %v2222_v14 = vpop.f32.mrf.mxu0  ;;  %v2235_v23 = vpop.f32.mrf.mxu1 }
 0x65f   :  { %5646 = vst [vmem:[#allocation34_spill] sm:$0xff] %v5270_v3  ;;  %v2265_v15 = vadd.f32 %v2222_v14, %v1878_v1  ;;  %v2266_v35 = vadd.f32 %v2235_v23, %v1907_v2  ;;  %v5275_v23 = vperm.slane %v1698_v12, 2 }
 0x661   :  { %v3842_v42 = vmul.f32 -1.442695, %v2265_v15  ;;  %v3843_v0 = vmul.f32 -1.442695, %v2266_v35  ;;  %5647 = vst [vmem:[#allocation36_spill] sm:$0xff] %v5275_v23  ;;  %v1936_v6 = vadd.f32 %v1935_v27, %v5275_v23 }
 0x663   :  { %4175 = vpow2.f32 %v3842_v42 }
 0x664   :  { %4177 = vpow2.f32 %v3843_v0 }
 0x665   :  { %v2248_v20 = vpop.f32.mrf.mxu2  ;;  %v2261_v36 = vpop.f32.mrf.mxu3 }
 0x666   :  { %v2268_v7 = vadd.f32 %v2261_v36, %v1965_v32  ;;  %v2224_v29 = vpop.f32.mrf.mxu0  ;;  %v2237_v18 = vpop.f32.mrf.mxu1  ;;  %v2267_v32 = vadd.f32 %v2248_v20, %v1936_v6 }
 0x668   :  { %v3844_v25 = vmul.f32 -1.442695, %v2268_v7 }
 0x669   :  { %v4176_v46 = vpop.eup %4175 }
 0x66a   :  { %v4178_v3 = vpop.eup %4177  ;;  %v2272_v61 = vadd.f32 1.0, %v4176_v46  ;;  %4179 = vpow2.f32 %v3844_v25 }
 0x66b   :  { %v2291_v1 = vadd.f32 1.0, %v4178_v3 }
 0x66c   :  { %4181 = vrcp.f32 %v2272_v61  ;;  %v2284_v25 = vand.u32 2147483648, %v2272_v61  ;;  %v2282_v29 = vand.u32 2147483647, %v2272_v61  ;;  %vm2278_vm2 = vweird.f32 %v2272_v61 }
 0x66d   :  { %4183 = vrcp.f32 %v2291_v1  ;;  %v2263_v35 = vpop.f32.mrf.mxu3  ;;  %v2250_v2 = vpop.f32.mrf.mxu2  ;;  %v2303_v3 = vand.u32 2147483648, %v2291_v1  ;;  %vm2297_vm3 = vweird.f32 %v2291_v1 }
 0x66e   :  { %v2301_v2 = vand.u32 2147483647, %v2291_v1  ;;  %v2285_v20 = vor.u32 1.1754944e-38, %v2284_v25  ;;  %vm2283_vm5 = vcmp.eq.f32.partialorder %v2282_v29, 8.507059e+37 }
 0x66f   :  { %v2304_v44 = vor.u32 1.1754944e-38, %v2303_v3 }
 0x670   :  { %v4180_v14 = vpop.eup %4179  ;;  %vm2302_vm7 = vcmp.eq.f32.partialorder %v2301_v2, 8.507059e+37 }
 0x671   :  { %v2311_v15 = vadd.f32 1.0, %v4180_v14 }
 0x672   :  { %v4182_v42 = vpop.eup %4181 }
 0x673   :  { %v4184_v0 = vpop.eup %4183  ;;  %v2274_v18 = vmul.f32 %v4182_v42, %v2272_v61  ;;  %4185 = vrcp.f32 %v2311_v15  ;;  %vm2279_vm0 = vweird.f32 %v4182_v42  ;;  %vm2317_vm9 = vweird.f32 %v2311_v15 }
 0x674   :  { %v2293_v7 = vmul.f32 %v4184_v0, %v2291_v1  ;;  %4187 = vtanh.f32 %v2267_v32  ;;  %vm2298_vm1 = vweird.f32 %v4184_v0  ;;  %vm2280_vm4 = vmor %vm2278_vm2, %vm2279_vm0  ;;  %v2323_v1 = vand.u32 2147483648, %v2311_v15 }
 0x675   :  { %v2275_v36 = vsub.f32 1.0, %v2274_v18  ;;  %vm2299_vm6 = vmor %vm2297_vm3, %vm2298_vm1 }
 0x676   :  { %v2294_v46 = vsub.f32 1.0, %v2293_v7  ;;  %v2324_v3 = vor.u32 1.1754944e-38, %v2323_v1 }
 0x677   :  { %v2276_v12 = vmul.f32 %v4182_v42, %v2275_v36 }
 0x678   :  { %v2295_v35 = vmul.f32 %v4184_v0, %v2294_v46 }
 0x679   :  { %v4186_v48 = vpop.eup %4185  ;;  %v2277_v27 = vadd.f32 %v4182_v42, %v2276_v12 }
 0x67a   :  { %v2296_v14 = vadd.f32 %v4184_v0, %v2295_v35  ;;  %v2313_v6 = vmul.f32 %v4186_v48, %v2311_v15  ;;  %v4188_v32 = vpop.eup %4187  ;;  %vm2318_vm8 = vweird.f32 %v4186_v48 }
 0x67b   :  { %v2281_v18 = vsel %vm2280_vm4, %v4182_v42, %v2277_v27  ;;  %v2321_v42 = vand.u32 2147483647, %v2311_v15  ;;  %vm2319_vm10 = vmor %vm2317_vm9, %vm2318_vm8 }
 0x67c   :  { %v2286_v7 = vsel %vm2283_vm5, %v2285_v20, %v2281_v18  ;;  %v2300_v36 = vsel %vm2299_vm6, %v4184_v0, %v2296_v14  ;;  %v2314_v58 = vsub.f32 1.0, %v2313_v6  ;;  %v1967_v20 = vadd.f32 %v5216_v39, %v5272_v47 }
 0x67d   :  { %v2305_v46 = vsel %vm2302_vm7, %v2304_v44, %v2300_v36  ;;  %v2328_v37 = vmul.f32 %v4188_v32, %v2286_v7  ;;  %vm2322_vm11 = vcmp.eq.f32.partialorder %v2321_v42, 8.507059e+37 }
 0x67e   :  { %v2327_v63 = vmul.f32 0.0, %v2305_v46  ;;  %v2315_v23 = vmul.f32 %v4186_v48, %v2314_v58 }
 0x680   :  { %v5278_v12 = vadd.f32 %v2328_v37, %v2327_v63  ;;  %v2316_v61 = vadd.f32 %v4186_v48, %v2315_v23  ;;  %v1880_v63 = vadd.f32 %v5210_v45, %v5262_v41  ;;  %v1909_v37 = vadd.f32 %v5212_v34, %v5264_v55 }
 0x682   :  { %4189 = vtanh.f32 %v5278_v12  ;;  %v2320_v25 = vsel %vm2319_vm10, %v4186_v48, %v2316_v61 }
 0x683   :  { %v2325_v29 = vsel %vm2322_vm11, %v2324_v3, %v2320_v25  ;;  %v5648_v3 = vld [vmem:[#allocation36_spill] sm:$0xff] }
 0x688   :  { %v4190_v0 = vpop.eup %4189 }
 0x689   :  { %v2331_v35 = vmul.f32 %v4190_v0, %v2325_v29  ;;  %v5649_v0 = vld [vmem:[#allocation13_spill] sm:$0xff] }
 0x68a   :  { %v1938_v39 = vadd.f32 %v5649_v0, %v5648_v3 }
 0x68b   :  { %v2336_v44 = vpack.c.bf16 %v2331_v35, %v2331_v35 }
 0x68d   :  { %2345 = vmatmul.bf16.vlgmr.msrb.gmra.mxu0 %v2336_v44  ;;  %2358 = vmatmul.bf16.vlgmr.msrb.gmra.mxu1 %v2336_v44 }
 0x68e   :  { %2371 = vmatmul.bf16.vlgmr.msrb.gmra.mxu2 %v2336_v44  ;;  %2384 = vmatmul.bf16.vlgmr.msrb.gmra.mxu3 %v2336_v44 }
 0x68f   :  { %2585 = vmatpush.bf16.msrb.mxu0 %v4990_v59  ;;  %2598 = vmatpush.bf16.msrb.mxu1 %v4992_v17 }
 0x690   :  { %2611 = vmatpush.bf16.msrb.mxu2 %v5003_v22  ;;  %2624 = vmatpush.bf16.msrb.mxu3 %v5000_v13 }
 0x693   :  { %2586 = vmatpush.bf16.msrb.mxu0 %v5010_v4  ;;  %2599 = vmatpush.bf16.msrb.mxu1 %v5012_v30 }
 0x694   :  { %2612 = vmatpush.bf16.msrb.mxu2 %v5029_v24  ;;  %2625 = vmatpush.bf16.msrb.mxu3 %v5014_v54 }
 0x697   :  { %2587 = vmatpush.bf16.msrb.mxu0 %v5019_v56  ;;  %2600 = vmatpush.bf16.msrb.mxu1 %v5023_v38 }
 0x698   :  { %2613 = vmatpush.bf16.msrb.mxu2 %v5041_v62  ;;  %2626 = vmatpush.bf16.msrb.mxu3 %v5025_v28 }
 0x69b   :  { %2588 = vmatpush.bf16.msrb.mxu0 %v5032_v50  ;;  %2601 = vmatpush.bf16.msrb.mxu1 %v5036_v53 }
 0x69c   :  { %2614 = vmatpush.bf16.msrb.mxu2 %v5058_v10  ;;  %2627 = vmatpush.bf16.msrb.mxu3 %v5038_v60 }
 0x69f   :  { %2589 = vmatpush.bf16.msrb.mxu0 %v5046_v43  ;;  %2602 = vmatpush.bf16.msrb.mxu1 %v5052_v51 }
 0x6a0   :  { %2615 = vmatpush.bf16.msrb.mxu2 %v5073_v5  ;;  %2628 = vmatpush.bf16.msrb.mxu3 %v5054_v52 }
 0x6a3   :  { %2590 = vmatpush.bf16.msrb.mxu0 %v5062_v11  ;;  %2603 = vmatpush.bf16.msrb.mxu1 %v5066_v40 }
 0x6a4   :  { %2616 = vmatpush.bf16.msrb.mxu2 %v5096_v9  ;;  %2629 = vmatpush.bf16.msrb.mxu3 %v5068_v31 }
 0x6a7   :  { %2591 = vmatpush.bf16.msrb.mxu0 %v5081_v19  ;;  %2604 = vmatpush.bf16.msrb.mxu1 %v5090_v8 }
 0x6a8   :  { %2617 = vmatpush.bf16.msrb.mxu2 %v5115_v57  ;;  %2630 = vmatpush.bf16.msrb.mxu3 %v5099_v26 }
 0x6ab   :  { %2592 = vmatpush.bf16.msrb.mxu0 %v5111_v16  ;;  %2605 = vmatpush.bf16.msrb.mxu1 %v5113_v33 }
 0x6ac   :  { %2618 = vmatpush.bf16.msrb.mxu2 %v5134_v21  ;;  %2631 = vmatpush.bf16.msrb.mxu3 %v5125_v49 }
 0x70a   :  { %v2346_v58 = vpop.f32.mrf.mxu0  ;;  %v2359_v48 = vpop.f32.mrf.mxu1 }
 0x70b   :  { %v2389_v23 = vadd.f32 %v2346_v58, %v1880_v63  ;;  %v2390_v15 = vadd.f32 %v2359_v48, %v1909_v37 }
 0x70d   :  { %v3845_v2 = vmul.f32 -1.442695, %v2389_v23  ;;  %v3846_v27 = vmul.f32 -1.442695, %v2390_v15 }
 0x70f   :  { %4191 = vpow2.f32 %v3845_v2 }
 0x710   :  { %4193 = vpow2.f32 %v3846_v27 }
 0x711   :  { %v2372_v14 = vpop.f32.mrf.mxu2  ;;  %v2385_v6 = vpop.f32.mrf.mxu3 }
 0x712   :  { %v2392_v18 = vadd.f32 %v2385_v6, %v1967_v20  ;;  %v2348_v32 = vpop.f32.mrf.mxu0  ;;  %v2361_v7 = vpop.f32.mrf.mxu1  ;;  %v2391_v44 = vadd.f32 %v2372_v14, %v1938_v39 }
 0x714   :  { %v3847_v45 = vmul.f32 -1.442695, %v2392_v18 }
 0x715   :  { %v4192_v36 = vpop.eup %4191 }
 0x716   :  { %v4194_v46 = vpop.eup %4193  ;;  %v2396_v34 = vadd.f32 1.0, %v4192_v36  ;;  %4195 = vpow2.f32 %v3847_v45 }
 0x717   :  { %v2415_v61 = vadd.f32 1.0, %v4194_v46 }
 0x718   :  { %4197 = vrcp.f32 %v2396_v34  ;;  %v2408_v15 = vand.u32 2147483648, %v2396_v34  ;;  %v2406_v20 = vand.u32 2147483647, %v2396_v34  ;;  %vm2402_vm14 = vweird.f32 %v2396_v34 }
 0x719   :  { %4199 = vrcp.f32 %v2415_v61  ;;  %v2374_v1 = vpop.f32.mrf.mxu2  ;;  %v2387_v42 = vpop.f32.mrf.mxu3  ;;  %v2427_v2 = vand.u32 2147483648, %v2415_v61  ;;  %v2425_v18 = vand.u32 2147483647, %v2415_v61  ;;  %vm2421_vm15 = vweird.f32 %v2415_v61 }
 0x71a   :  { %v2409_v14 = vor.u32 1.1754944e-38, %v2408_v15  ;;  %vm2407_vm2 = vcmp.eq.f32.partialorder %v2406_v20, 8.507059e+37 }
 0x71b   :  { %v2428_v46 = vor.u32 1.1754944e-38, %v2427_v2  ;;  %vm2426_vm3 = vcmp.eq.f32.partialorder %v2425_v18, 8.507059e+37  ;;  %v5651_v18 = vld [vmem:[#allocation14_spill] sm:$0xff] }
 0x71c   :  { %v4196_v25 = vpop.eup %4195 }
 0x71d   :  { %v2435_v29 = vadd.f32 1.0, %v4196_v25 }
 0x71e   :  { %v4198_v35 = vpop.eup %4197 }
 0x71f   :  { %v4200_v63 = vpop.eup %4199  ;;  %v2398_v37 = vmul.f32 %v4198_v35, %v2396_v34  ;;  %4201 = vrcp.f32 %v2435_v29  ;;  %vm2403_vm12 = vweird.f32 %v4198_v35  ;;  %vm2441_vm5 = vweird.f32 %v2435_v29 }
 0x720   :  { %v2417_v58 = vmul.f32 %v4200_v63, %v2415_v61  ;;  %4203 = vtanh.f32 %v2391_v44  ;;  %vm2422_vm13 = vweird.f32 %v4200_v63  ;;  %vm2404_vm0 = vmor %vm2402_vm14, %vm2403_vm12 }
 0x721   :  { %v2399_v48 = vsub.f32 1.0, %v2398_v37  ;;  %vm2423_vm1 = vmor %vm2421_vm15, %vm2422_vm13 }
 0x722   :  { %v2418_v23 = vsub.f32 1.0, %v2417_v58 }
 0x723   :  { %v2400_v27 = vmul.f32 %v4198_v35, %v2399_v48 }
 0x724   :  { %v2419_v6 = vmul.f32 %v4200_v63, %v2418_v23  ;;  %v2447_v23 = vand.u32 2147483648, %v2435_v29 }
 0x725   :  { %v4202_v32 = vpop.eup %4201  ;;  %v2401_v7 = vadd.f32 %v4198_v35, %v2400_v27 }
 0x726   :  { %v2420_v45 = vadd.f32 %v4200_v63, %v2419_v6  ;;  %v2437_v36 = vmul.f32 %v4202_v32, %v2435_v29  ;;  %v4204_v42 = vpop.eup %4203  ;;  %vm2442_vm4 = vweird.f32 %v4202_v32  ;;  %v2448_v2 = vor.u32 1.1754944e-38, %v2447_v23 }
 0x727   :  { %v2405_v1 = vsel %vm2404_vm0, %v4198_v35, %v2401_v7  ;;  %v2445_v35 = vand.u32 2147483647, %v2435_v29  ;;  %vm2443_vm6 = vmor %vm2441_vm5, %vm2442_vm4 }
 0x728   :  { %v2410_v25 = vsel %vm2407_vm2, %v2409_v14, %v2405_v1  ;;  %v2424_v0 = vsel %vm2423_vm1, %v4200_v63, %v2420_v45  ;;  %v2438_v39 = vsub.f32 1.0, %v2437_v36 }
 0x729   :  { %v2429_v44 = vsel %vm2426_vm3, %v2428_v46, %v2424_v0  ;;  %v2452_v37 = vmul.f32 %v4204_v42, %v2410_v25  ;;  %vm2446_vm7 = vcmp.eq.f32.partialorder %v2445_v35, 8.507059e+37  ;;  %v5652_v42 = vld [vmem:[#allocation17_spill] sm:$0xff] }
 0x72a   :  { %v2451_v58 = vmul.f32 %v2429_v44, %v5278_v12  ;;  %v2439_v48 = vmul.f32 %v4202_v32, %v2438_v39  ;;  %v5650_v12 = vld [vmem:[#allocation16_spill] sm:$0xff]  ;;  %v1970_v25 = vadd.f32 %v5652_v42, %v5272_v47 }
 0x72b   :  { %v1883_v29 = vadd.f32 %v5650_v12, %v5262_v41 }
 0x72c   :  { %v5322_v34 = vadd.f32 %v2452_v37, %v2451_v58  ;;  %v2440_v61 = vadd.f32 %v4202_v32, %v2439_v48 }
 0x72e   :  { %4205 = vtanh.f32 %v5322_v34  ;;  %v2444_v15 = vsel %vm2443_vm6, %v4202_v32, %v2440_v61  ;;  %v1912_v32 = vadd.f32 %v5651_v18, %v5264_v55 }
 0x72f   :  { %v2449_v27 = vsel %vm2446_vm7, %v2448_v2, %v2444_v15 }
 0x734   :  { %v4206_v63 = vpop.eup %4205 }
 0x735   :  { %v2455_v20 = vmul.f32 %v4206_v63, %v2449_v27 }
 0x737   :  { %v2460_v6 = vpack.c.bf16 %v2455_v20, %v2455_v20  ;;  %v5653_v20 = vld [vmem:[#allocation15_spill] sm:$0xff] }
 0x739   :  { %2469 = vmatmul.bf16.vlgmr.msra.gmra.mxu0 %v2460_v6  ;;  %2482 = vmatmul.bf16.vlgmr.msra.gmra.mxu1 %v2460_v6 }
 0x73a   :  { %2495 = vmatmul.bf16.vlgmr.msra.gmra.mxu2 %v2460_v6  ;;  %2508 = vmatmul.bf16.vlgmr.msra.gmra.mxu3 %v2460_v6  ;;  %v1941_v6 = vadd.f32 %v5653_v20, %v5648_v3 }
 0x73b   :  { %2709 = vmatpush.bf16.msra.mxu0 %v4990_v59  ;;  %2722 = vmatpush.bf16.msra.mxu1 %v4992_v17 }
 0x73c   :  { %2735 = vmatpush.bf16.msra.mxu2 %v5003_v22  ;;  %2748 = vmatpush.bf16.msra.mxu3 %v5000_v13 }
 0x73f   :  { %2710 = vmatpush.bf16.msra.mxu0 %v5010_v4  ;;  %2723 = vmatpush.bf16.msra.mxu1 %v5012_v30 }
 0x740   :  { %2736 = vmatpush.bf16.msra.mxu2 %v5029_v24  ;;  %2749 = vmatpush.bf16.msra.mxu3 %v5014_v54 }
 0x743   :  { %2711 = vmatpush.bf16.msra.mxu0 %v5019_v56  ;;  %2724 = vmatpush.bf16.msra.mxu1 %v5023_v38 }
 0x744   :  { %2737 = vmatpush.bf16.msra.mxu2 %v5041_v62  ;;  %2750 = vmatpush.bf16.msra.mxu3 %v5025_v28 }
 0x747   :  { %2712 = vmatpush.bf16.msra.mxu0 %v5032_v50  ;;  %2725 = vmatpush.bf16.msra.mxu1 %v5036_v53 }
 0x748   :  { %2738 = vmatpush.bf16.msra.mxu2 %v5058_v10  ;;  %2751 = vmatpush.bf16.msra.mxu3 %v5038_v60 }
 0x74b   :  { %2713 = vmatpush.bf16.msra.mxu0 %v5046_v43  ;;  %2726 = vmatpush.bf16.msra.mxu1 %v5052_v51 }
 0x74c   :  { %2739 = vmatpush.bf16.msra.mxu2 %v5073_v5  ;;  %2752 = vmatpush.bf16.msra.mxu3 %v5054_v52 }
 0x74f   :  { %2714 = vmatpush.bf16.msra.mxu0 %v5062_v11  ;;  %2727 = vmatpush.bf16.msra.mxu1 %v5066_v40 }
 0x750   :  { %2740 = vmatpush.bf16.msra.mxu2 %v5096_v9  ;;  %2753 = vmatpush.bf16.msra.mxu3 %v5068_v31 }
 0x753   :  { %2715 = vmatpush.bf16.msra.mxu0 %v5081_v19  ;;  %2728 = vmatpush.bf16.msra.mxu1 %v5090_v8 }
 0x754   :  { %2741 = vmatpush.bf16.msra.mxu2 %v5115_v57  ;;  %2754 = vmatpush.bf16.msra.mxu3 %v5099_v26 }
 0x757   :  { %2716 = vmatpush.bf16.msra.mxu0 %v5111_v16  ;;  %2729 = vmatpush.bf16.msra.mxu1 %v5113_v33 }
 0x758   :  { %2742 = vmatpush.bf16.msra.mxu2 %v5134_v21  ;;  %2755 = vmatpush.bf16.msra.mxu3 %v5125_v49 }
 0x7b6   :  { %v2470_v7 = vpop.f32.mrf.mxu0  ;;  %v2483_v14 = vpop.f32.mrf.mxu1 }
 0x7b7   :  { %v2513_v45 = vadd.f32 %v2470_v7, %v1883_v29  ;;  %v2514_v36 = vadd.f32 %v2483_v14, %v1912_v32 }
 0x7b9   :  { %v3848_v46 = vmul.f32 -1.442695, %v2513_v45  ;;  %v3849_v1 = vmul.f32 -1.442695, %v2514_v36 }
 0x7bb   :  { %4207 = vpow2.f32 %v3848_v46 }
 0x7bc   :  { %4209 = vpow2.f32 %v3849_v1 }
 0x7bd   :  { %v2496_v0 = vpop.f32.mrf.mxu2  ;;  %v2509_v39 = vpop.f32.mrf.mxu3 }
 0x7be   :  { %v2516_v44 = vadd.f32 %v2509_v39, %v1970_v25  ;;  %v2472_v37 = vpop.f32.mrf.mxu0  ;;  %v2485_v58 = vpop.f32.mrf.mxu1  ;;  %v2515_v18 = vadd.f32 %v2496_v0, %v1941_v6 }
 0x7c0   :  { %v3850_v48 = vmul.f32 -1.442695, %v2516_v44 }
 0x7c1   :  { %v4208_v61 = vpop.eup %4207 }
 0x7c2   :  { %v4210_v23 = vpop.eup %4209  ;;  %v2520_v35 = vadd.f32 1.0, %v4208_v61  ;;  %4211 = vpow2.f32 %v3850_v48 }
 0x7c3   :  { %v2539_v15 = vadd.f32 1.0, %v4210_v23 }
 0x7c4   :  { %4213 = vrcp.f32 %v2520_v35  ;;  %v2532_v46 = vand.u32 2147483648, %v2520_v35  ;;  %v2530_v25 = vand.u32 2147483647, %v2520_v35  ;;  %vm2526_vm10 = vweird.f32 %v2520_v35 }
 0x7c5   :  { %4215 = vrcp.f32 %v2539_v15  ;;  %v2498_v2 = vpop.f32.mrf.mxu2  ;;  %v2511_v63 = vpop.f32.mrf.mxu3  ;;  %v2551_v1 = vand.u32 2147483648, %v2539_v15  ;;  %v2549_v44 = vand.u32 2147483647, %v2539_v15  ;;  %vm2545_vm11 = vweird.f32 %v2539_v15 }
 0x7c6   :  { %v2533_v0 = vor.u32 1.1754944e-38, %v2532_v46  ;;  %vm2531_vm14 = vcmp.eq.f32.partialorder %v2530_v25, 8.507059e+37 }
 0x7c7   :  { %v2552_v23 = vor.u32 1.1754944e-38, %v2551_v1  ;;  %vm2550_vm15 = vcmp.eq.f32.partialorder %v2549_v44, 8.507059e+37  ;;  %v5655_v44 = vld [vmem:[#allocation18_spill] sm:$0xff] }
 0x7c8   :  { %v4212_v27 = vpop.eup %4211 }
 0x7c9   :  { %v2559_v12 = vadd.f32 1.0, %v4212_v27 }
 0x7ca   :  { %v4214_v29 = vpop.eup %4213 }
 0x7cb   :  { %v4216_v32 = vpop.eup %4215  ;;  %v2522_v7 = vmul.f32 %v4214_v29, %v2520_v35  ;;  %4217 = vrcp.f32 %v2559_v12  ;;  %vm2527_vm8 = vweird.f32 %v4214_v29  ;;  %vm2565_vm1 = vweird.f32 %v2559_v12 }
 0x7cc   :  { %v2541_v14 = vmul.f32 %v4216_v32, %v2539_v15  ;;  %4219 = vtanh.f32 %v2515_v18  ;;  %vm2546_vm9 = vweird.f32 %v4216_v32  ;;  %vm2528_vm12 = vmor %vm2526_vm10, %vm2527_vm8 }
 0x7cd   :  { %v2523_v45 = vsub.f32 1.0, %v2522_v7  ;;  %vm2547_vm13 = vmor %vm2545_vm11, %vm2546_vm9 }
 0x7ce   :  { %v2542_v36 = vsub.f32 1.0, %v2541_v14 }
 0x7cf   :  { %v2524_v42 = vmul.f32 %v4214_v29, %v2523_v45 }
 0x7d0   :  { %v2543_v39 = vmul.f32 %v4216_v32, %v2542_v36  ;;  %v2571_v36 = vand.u32 2147483648, %v2559_v12 }
 0x7d1   :  { %v4218_v37 = vpop.eup %4217  ;;  %v2525_v58 = vadd.f32 %v4214_v29, %v2524_v42 }
 0x7d2   :  { %v2544_v48 = vadd.f32 %v4216_v32, %v2543_v39  ;;  %v2561_v61 = vmul.f32 %v4218_v37, %v2559_v12  ;;  %v4220_v63 = vpop.eup %4219  ;;  %vm2566_vm0 = vweird.f32 %v4218_v37  ;;  %v2572_v1 = vor.u32 1.1754944e-38, %v2571_v36 }
 0x7d3   :  { %v2529_v2 = vsel %vm2528_vm12, %v4214_v29, %v2525_v58  ;;  %v2569_v29 = vand.u32 2147483647, %v2559_v12  ;;  %vm2567_vm2 = vmor %vm2565_vm1, %vm2566_vm0 }
 0x7d4   :  { %v2534_v27 = vsel %vm2531_vm14, %v2533_v0, %v2529_v2  ;;  %v2548_v20 = vsel %vm2547_vm13, %v4216_v32, %v2544_v48  ;;  %v2562_v6 = vsub.f32 1.0, %v2561_v61 }
 0x7d5   :  { %v2553_v18 = vsel %vm2550_vm15, %v2552_v23, %v2548_v20  ;;  %v2576_v7 = vmul.f32 %v4220_v63, %v2534_v27  ;;  %vm2570_vm3 = vcmp.eq.f32.partialorder %v2569_v29, 8.507059e+37  ;;  %v5656_v63 = vld [vmem:[#allocation21_spill] sm:$0xff] }
 0x7d6   :  { %v2575_v14 = vmul.f32 %v2553_v18, %v5322_v34  ;;  %v2563_v45 = vmul.f32 %v4218_v37, %v2562_v6  ;;  %v5654_v34 = vld [vmem:[#allocation19_spill] sm:$0xff]  ;;  %v1972_v27 = vadd.f32 %v5656_v63, %v5272_v47 }
 0x7d7   :  { %v1885_v12 = vadd.f32 %v5654_v34, %v5262_v41 }
 0x7d8   :  { %v5366_v35 = vadd.f32 %v2576_v7, %v2575_v14  ;;  %v2564_v15 = vadd.f32 %v4218_v37, %v2563_v45 }
 0x7da   :  { %4221 = vtanh.f32 %v5366_v35  ;;  %v2568_v46 = vsel %vm2567_vm2, %v4218_v37, %v2564_v15  ;;  %v1914_v37 = vadd.f32 %v5655_v44, %v5264_v55 }
 0x7db   :  { %v2573_v42 = vsel %vm2570_vm3, %v2572_v1, %v2568_v46 }
 0x7e0   :  { %v4222_v32 = vpop.eup %4221 }
 0x7e1   :  { %v2579_v25 = vmul.f32 %v4222_v32, %v2573_v42 }
 0x7e3   :  { %v2584_v39 = vpack.c.bf16 %v2579_v25, %v2579_v25  ;;  %v5657_v25 = vld [vmem:[#allocation20_spill] sm:$0xff] }
 0x7e5   :  { %2593 = vmatmul.bf16.vlgmr.msrb.gmra.mxu0 %v2584_v39  ;;  %2606 = vmatmul.bf16.vlgmr.msrb.gmra.mxu1 %v2584_v39 }
 0x7e6   :  { %2619 = vmatmul.bf16.vlgmr.msrb.gmra.mxu2 %v2584_v39  ;;  %2632 = vmatmul.bf16.vlgmr.msrb.gmra.mxu3 %v2584_v39  ;;  %v1943_v39 = vadd.f32 %v5657_v25, %v5648_v3 }
 0x7e7   :  { %2833 = vmatpush.bf16.msrb.mxu0 %v4990_v59  ;;  %2846 = vmatpush.bf16.msrb.mxu1 %v4992_v17 }
 0x7e8   :  { %2859 = vmatpush.bf16.msrb.mxu2 %v5003_v22  ;;  %2872 = vmatpush.bf16.msrb.mxu3 %v5000_v13 }
 0x7eb   :  { %2834 = vmatpush.bf16.msrb.mxu0 %v5010_v4  ;;  %2847 = vmatpush.bf16.msrb.mxu1 %v5012_v30 }
 0x7ec   :  { %2860 = vmatpush.bf16.msrb.mxu2 %v5029_v24  ;;  %2873 = vmatpush.bf16.msrb.mxu3 %v5014_v54 }
 0x7ef   :  { %2835 = vmatpush.bf16.msrb.mxu0 %v5019_v56  ;;  %2848 = vmatpush.bf16.msrb.mxu1 %v5023_v38 }
 0x7f0   :  { %2861 = vmatpush.bf16.msrb.mxu2 %v5041_v62  ;;  %2874 = vmatpush.bf16.msrb.mxu3 %v5025_v28 }
 0x7f3   :  { %2836 = vmatpush.bf16.msrb.mxu0 %v5032_v50  ;;  %2849 = vmatpush.bf16.msrb.mxu1 %v5036_v53 }
 0x7f4   :  { %2862 = vmatpush.bf16.msrb.mxu2 %v5058_v10  ;;  %2875 = vmatpush.bf16.msrb.mxu3 %v5038_v60 }
 0x7f7   :  { %2837 = vmatpush.bf16.msrb.mxu0 %v5046_v43  ;;  %2850 = vmatpush.bf16.msrb.mxu1 %v5052_v51 }
 0x7f8   :  { %2863 = vmatpush.bf16.msrb.mxu2 %v5073_v5  ;;  %2876 = vmatpush.bf16.msrb.mxu3 %v5054_v52 }
 0x7fb   :  { %2838 = vmatpush.bf16.msrb.mxu0 %v5062_v11  ;;  %2851 = vmatpush.bf16.msrb.mxu1 %v5066_v40 }
 0x7fc   :  { %2864 = vmatpush.bf16.msrb.mxu2 %v5096_v9  ;;  %2877 = vmatpush.bf16.msrb.mxu3 %v5068_v31 }
 0x7ff   :  { %2839 = vmatpush.bf16.msrb.mxu0 %v5081_v19  ;;  %2852 = vmatpush.bf16.msrb.mxu1 %v5090_v8 }
 0x800   :  { %2865 = vmatpush.bf16.msrb.mxu2 %v5115_v57  ;;  %2878 = vmatpush.bf16.msrb.mxu3 %v5099_v26 }
 0x803   :  { %2840 = vmatpush.bf16.msrb.mxu0 %v5111_v16  ;;  %2853 = vmatpush.bf16.msrb.mxu1 %v5113_v33 }
 0x804   :  { %2866 = vmatpush.bf16.msrb.mxu2 %v5134_v21  ;;  %2879 = vmatpush.bf16.msrb.mxu3 %v5125_v49 }
 0x862   :  { %v2594_v58 = vpop.f32.mrf.mxu0  ;;  %v2607_v0 = vpop.f32.mrf.mxu1 }
 0x863   :  { %v2637_v48 = vadd.f32 %v2594_v58, %v1885_v12  ;;  %v2638_v61 = vadd.f32 %v2607_v0, %v1914_v37 }
 0x865   :  { %v3851_v23 = vmul.f32 -1.442695, %v2637_v48  ;;  %v3852_v2 = vmul.f32 -1.442695, %v2638_v61 }
 0x867   :  { %4223 = vpow2.f32 %v3851_v23 }
 0x868   :  { %4225 = vpow2.f32 %v3852_v2 }
 0x869   :  { %v2620_v20 = vpop.f32.mrf.mxu2  ;;  %v2633_v6 = vpop.f32.mrf.mxu3 }
 0x86a   :  { %v2640_v18 = vadd.f32 %v2633_v6, %v1972_v27  ;;  %v2596_v7 = vpop.f32.mrf.mxu0  ;;  %v2609_v14 = vpop.f32.mrf.mxu1  ;;  %v2639_v44 = vadd.f32 %v2620_v20, %v1943_v39 }
 0x86c   :  { %v3853_v45 = vmul.f32 -1.442695, %v2640_v18 }
 0x86d   :  { %v4224_v15 = vpop.eup %4223 }
 0x86e   :  { %v4226_v36 = vpop.eup %4225  ;;  %v2644_v29 = vadd.f32 1.0, %v4224_v15  ;;  %4227 = vpow2.f32 %v3853_v45 }
 0x86f   :  { %v2663_v46 = vadd.f32 1.0, %v4226_v36 }
 0x870   :  { %4229 = vrcp.f32 %v2644_v29  ;;  %v2656_v23 = vand.u32 2147483648, %v2644_v29  ;;  %v2654_v27 = vand.u32 2147483647, %v2644_v29  ;;  %vm2650_vm6 = vweird.f32 %v2644_v29 }
 0x871   :  { %4231 = vrcp.f32 %v2663_v46  ;;  %v2622_v1 = vpop.f32.mrf.mxu2  ;;  %v2635_v32 = vpop.f32.mrf.mxu3  ;;  %v2675_v2 = vand.u32 2147483648, %v2663_v46  ;;  %v2673_v18 = vand.u32 2147483647, %v2663_v46  ;;  %vm2669_vm7 = vweird.f32 %v2663_v46 }
 0x872   :  { %v2657_v20 = vor.u32 1.1754944e-38, %v2656_v23  ;;  %vm2655_vm10 = vcmp.eq.f32.partialorder %v2654_v27, 8.507059e+37 }
 0x873   :  { %v2676_v36 = vor.u32 1.1754944e-38, %v2675_v2  ;;  %vm2674_vm11 = vcmp.eq.f32.partialorder %v2673_v18, 8.507059e+37  ;;  %v5659_v18 = vld [vmem:[#allocation22_spill] sm:$0xff] }
 0x874   :  { %v4228_v42 = vpop.eup %4227 }
 0x875   :  { %v2683_v34 = vadd.f32 1.0, %v4228_v42 }
 0x876   :  { %v4230_v12 = vpop.eup %4229 }
 0x877   :  { %v4232_v37 = vpop.eup %4231  ;;  %v2646_v58 = vmul.f32 %v4230_v12, %v2644_v29  ;;  %4233 = vrcp.f32 %v2683_v34  ;;  %vm2651_vm4 = vweird.f32 %v4230_v12  ;;  %vm2689_vm13 = vweird.f32 %v2683_v34 }
 0x878   :  { %v2665_v0 = vmul.f32 %v4232_v37, %v2663_v46  ;;  %4235 = vtanh.f32 %v2639_v44  ;;  %vm2670_vm5 = vweird.f32 %v4232_v37  ;;  %vm2652_vm8 = vmor %vm2650_vm6, %vm2651_vm4 }
 0x879   :  { %v2647_v48 = vsub.f32 1.0, %v2646_v58  ;;  %vm2671_vm9 = vmor %vm2669_vm7, %vm2670_vm5 }
 0x87a   :  { %v2666_v61 = vsub.f32 1.0, %v2665_v0 }
 0x87b   :  { %v2648_v63 = vmul.f32 %v4230_v12, %v2647_v48 }
 0x87c   :  { %v2667_v6 = vmul.f32 %v4232_v37, %v2666_v61  ;;  %v2695_v61 = vand.u32 2147483648, %v2683_v34 }
 0x87d   :  { %v4234_v7 = vpop.eup %4233  ;;  %v2649_v14 = vadd.f32 %v4230_v12, %v2648_v63 }
 0x87e   :  { %v2668_v45 = vadd.f32 %v4232_v37, %v2667_v6  ;;  %v2685_v15 = vmul.f32 %v4234_v7, %v2683_v34  ;;  %v4236_v32 = vpop.eup %4235  ;;  %vm2690_vm12 = vweird.f32 %v4234_v7  ;;  %v2696_v2 = vor.u32 1.1754944e-38, %v2695_v61 }
 0x87f   :  { %v2653_v1 = vsel %vm2652_vm8, %v4230_v12, %v2649_v14  ;;  %v2693_v12 = vand.u32 2147483647, %v2683_v34  ;;  %vm2691_vm14 = vmor %vm2689_vm13, %vm2690_vm12 }
 0x880   :  { %v2658_v42 = vsel %vm2655_vm10, %v2657_v20, %v2653_v1  ;;  %v2672_v25 = vsel %vm2671_vm9, %v4232_v37, %v2668_v45  ;;  %v2686_v39 = vsub.f32 1.0, %v2685_v15 }
 0x881   :  { %v2677_v44 = vsel %vm2674_vm11, %v2676_v36, %v2672_v25  ;;  %v2700_v58 = vmul.f32 %v4236_v32, %v2658_v42  ;;  %vm2694_vm15 = vcmp.eq.f32.partialorder %v2693_v12, 8.507059e+37  ;;  %v5660_v32 = vld [vmem:[#allocation25_spill] sm:$0xff] }
 0x882   :  { %v2699_v0 = vmul.f32 %v2677_v44, %v5366_v35  ;;  %v2687_v48 = vmul.f32 %v4234_v7, %v2686_v39  ;;  %v5658_v35 = vld [vmem:[#allocation24_spill] sm:$0xff]  ;;  %v1975_v42 = vadd.f32 %v5660_v32, %v5272_v47 }
 0x883   :  { %v1888_v34 = vadd.f32 %v5658_v35, %v5262_v41 }
 0x884   :  { %v5410_v29 = vadd.f32 %v2700_v58, %v2699_v0  ;;  %v2688_v46 = vadd.f32 %v4234_v7, %v2687_v48 }
 0x886   :  { %4237 = vtanh.f32 %v5410_v29  ;;  %v2692_v23 = vsel %vm2691_vm14, %v4234_v7, %v2688_v46  ;;  %v1917_v7 = vadd.f32 %v5659_v18, %v5264_v55 }
 0x887   :  { %v2697_v63 = vsel %vm2694_vm15, %v2696_v2, %v2692_v23 }
 0x88c   :  { %v4238_v37 = vpop.eup %4237 }
 0x88d   :  { %v2703_v27 = vmul.f32 %v4238_v37, %v2697_v63 }
 0x88f   :  { %v2708_v6 = vpack.c.bf16 %v2703_v27, %v2703_v27  ;;  %v5661_v27 = vld [vmem:[#allocation23_spill] sm:$0xff] }
 0x891   :  { %2717 = vmatmul.bf16.vlgmr.msra.gmra.mxu0 %v2708_v6  ;;  %2730 = vmatmul.bf16.vlgmr.msra.gmra.mxu1 %v2708_v6 }
 0x892   :  { %2743 = vmatmul.bf16.vlgmr.msra.gmra.mxu2 %v2708_v6  ;;  %2756 = vmatmul.bf16.vlgmr.msra.gmra.mxu3 %v2708_v6  ;;  %v1946_v6 = vadd.f32 %v5661_v27, %v5648_v3 }
 0x893   :  { %2957 = vmatpush.bf16.msra.mxu0 %v4990_v59  ;;  %2970 = vmatpush.bf16.msra.mxu1 %v4992_v17 }
 0x894   :  { %2983 = vmatpush.bf16.msra.mxu2 %v5003_v22  ;;  %2996 = vmatpush.bf16.msra.mxu3 %v5000_v13 }
 0x897   :  { %2958 = vmatpush.bf16.msra.mxu0 %v5010_v4  ;;  %2971 = vmatpush.bf16.msra.mxu1 %v5012_v30 }
 0x898   :  { %2984 = vmatpush.bf16.msra.mxu2 %v5029_v24  ;;  %2997 = vmatpush.bf16.msra.mxu3 %v5014_v54 }
 0x89b   :  { %2959 = vmatpush.bf16.msra.mxu0 %v5019_v56  ;;  %2972 = vmatpush.bf16.msra.mxu1 %v5023_v38 }
 0x89c   :  { %2985 = vmatpush.bf16.msra.mxu2 %v5041_v62  ;;  %2998 = vmatpush.bf16.msra.mxu3 %v5025_v28 }
 0x89f   :  { %2960 = vmatpush.bf16.msra.mxu0 %v5032_v50  ;;  %2973 = vmatpush.bf16.msra.mxu1 %v5036_v53 }
 0x8a0   :  { %2986 = vmatpush.bf16.msra.mxu2 %v5058_v10  ;;  %2999 = vmatpush.bf16.msra.mxu3 %v5038_v60 }
 0x8a3   :  { %2961 = vmatpush.bf16.msra.mxu0 %v5046_v43  ;;  %2974 = vmatpush.bf16.msra.mxu1 %v5052_v51 }
 0x8a4   :  { %2987 = vmatpush.bf16.msra.mxu2 %v5073_v5  ;;  %3000 = vmatpush.bf16.msra.mxu3 %v5054_v52 }
 0x8a7   :  { %2962 = vmatpush.bf16.msra.mxu0 %v5062_v11  ;;  %2975 = vmatpush.bf16.msra.mxu1 %v5066_v40 }
 0x8a8   :  { %2988 = vmatpush.bf16.msra.mxu2 %v5096_v9  ;;  %3001 = vmatpush.bf16.msra.mxu3 %v5068_v31 }
 0x8ab   :  { %2963 = vmatpush.bf16.msra.mxu0 %v5081_v19  ;;  %2976 = vmatpush.bf16.msra.mxu1 %v5090_v8 }
 0x8ac   :  { %2989 = vmatpush.bf16.msra.mxu2 %v5115_v57  ;;  %3002 = vmatpush.bf16.msra.mxu3 %v5099_v26 }
 0x8af   :  { %2964 = vmatpush.bf16.msra.mxu0 %v5111_v16  ;;  %2977 = vmatpush.bf16.msra.mxu1 %v5113_v33 }
 0x8b0   :  { %2990 = vmatpush.bf16.msra.mxu2 %v5134_v21  ;;  %3003 = vmatpush.bf16.msra.mxu3 %v5125_v49 }
 0x90e   :  { %v2718_v14 = vpop.f32.mrf.mxu0  ;;  %v2731_v20 = vpop.f32.mrf.mxu1 }
 0x90f   :  { %v2761_v45 = vadd.f32 %v2718_v14, %v1888_v34  ;;  %v2762_v15 = vadd.f32 %v2731_v20, %v1917_v7 }
 0x911   :  { %v3854_v36 = vmul.f32 -1.442695, %v2761_v45  ;;  %v3855_v1 = vmul.f32 -1.442695, %v2762_v15 }
 0x913   :  { %4239 = vpow2.f32 %v3854_v36 }
 0x914   :  { %4241 = vpow2.f32 %v3855_v1 }
 0x915   :  { %v2744_v25 = vpop.f32.mrf.mxu2  ;;  %v2757_v39 = vpop.f32.mrf.mxu3 }
 0x916   :  { %v2764_v44 = vadd.f32 %v2757_v39, %v1975_v42  ;;  %v2720_v58 = vpop.f32.mrf.mxu0  ;;  %v2733_v0 = vpop.f32.mrf.mxu1  ;;  %v2763_v18 = vadd.f32 %v2744_v25, %v1946_v6 }
 0x918   :  { %v3856_v48 = vmul.f32 -1.442695, %v2764_v44 }
 0x919   :  { %v4240_v46 = vpop.eup %4239 }
 0x91a   :  { %v4242_v61 = vpop.eup %4241  ;;  %v2768_v12 = vadd.f32 1.0, %v4240_v46  ;;  %4243 = vpow2.f32 %v3856_v48 }
 0x91b   :  { %v2787_v23 = vadd.f32 1.0, %v4242_v61 }
 0x91c   :  { %4245 = vrcp.f32 %v2768_v12  ;;  %v2780_v36 = vand.u32 2147483648, %v2768_v12  ;;  %v2778_v42 = vand.u32 2147483647, %v2768_v12  ;;  %vm2774_vm2 = vweird.f32 %v2768_v12 }
 0x91d   :  { %4247 = vrcp.f32 %v2787_v23  ;;  %v2746_v2 = vpop.f32.mrf.mxu2  ;;  %v2759_v37 = vpop.f32.mrf.mxu3  ;;  %v2799_v1 = vand.u32 2147483648, %v2787_v23  ;;  %v2797_v44 = vand.u32 2147483647, %v2787_v23  ;;  %vm2793_vm3 = vweird.f32 %v2787_v23 }
 0x91e   :  { %v2781_v25 = vor.u32 1.1754944e-38, %v2780_v36  ;;  %vm2779_vm6 = vcmp.eq.f32.partialorder %v2778_v42, 8.507059e+37 }
 0x91f   :  { %v2800_v61 = vor.u32 1.1754944e-38, %v2799_v1  ;;  %vm2798_vm7 = vcmp.eq.f32.partialorder %v2797_v44, 8.507059e+37 }
 0x920   :  { %v4244_v63 = vpop.eup %4243 }
 0x921   :  { %v2807_v35 = vadd.f32 1.0, %v4244_v63 }
 0x922   :  { %v4246_v34 = vpop.eup %4245 }
 0x923   :  { %v4248_v7 = vpop.eup %4247  ;;  %v2770_v14 = vmul.f32 %v4246_v34, %v2768_v12  ;;  %4249 = vrcp.f32 %v2807_v35  ;;  %vm2775_vm0 = vweird.f32 %v4246_v34  ;;  %vm2813_vm9 = vweird.f32 %v2807_v35 }
 0x924   :  { %v2789_v20 = vmul.f32 %v4248_v7, %v2787_v23  ;;  %4251 = vtanh.f32 %v2763_v18  ;;  %vm2794_vm1 = vweird.f32 %v4248_v7  ;;  %vm2776_vm4 = vmor %vm2774_vm2, %vm2775_vm0 }
 0x925   :  { %v2771_v45 = vsub.f32 1.0, %v2770_v14  ;;  %vm2795_vm5 = vmor %vm2793_vm3, %vm2794_vm1 }
 0x926   :  { %v2790_v15 = vsub.f32 1.0, %v2789_v20 }
 0x927   :  { %v2772_v32 = vmul.f32 %v4246_v34, %v2771_v45 }
 0x928   :  { %v2791_v39 = vmul.f32 %v4248_v7, %v2790_v15  ;;  %v2819_v15 = vand.u32 2147483648, %v2807_v35 }
 0x929   :  { %v4250_v58 = vpop.eup %4249  ;;  %v2773_v0 = vadd.f32 %v4246_v34, %v2772_v32 }
 0x92a   :  { %v2792_v48 = vadd.f32 %v4248_v7, %v2791_v39  ;;  %v2809_v46 = vmul.f32 %v4250_v58, %v2807_v35  ;;  %v4252_v37 = vpop.eup %4251  ;;  %vm2814_vm8 = vweird.f32 %v4250_v58  ;;  %v2820_v1 = vor.u32 1.1754944e-38, %v2819_v15 }
 0x92b   :  { %v2777_v2 = vsel %vm2776_vm4, %v4246_v34, %v2773_v0  ;;  %v2817_v34 = vand.u32 2147483647, %v2807_v35  ;;  %vm2815_vm10 = vmor %vm2813_vm9, %vm2814_vm8 }
 0x92c   :  { %v2782_v63 = vsel %vm2779_vm6, %v2781_v25, %v2777_v2  ;;  %v2796_v27 = vsel %vm2795_vm5, %v4248_v7, %v2792_v48  ;;  %v2810_v6 = vsub.f32 1.0, %v2809_v46 }
 0x92d   :  { %v2801_v18 = vsel %vm2798_vm7, %v2800_v61, %v2796_v27  ;;  %v2824_v14 = vmul.f32 %v4252_v37, %v2782_v63  ;;  %vm2818_vm11 = vcmp.eq.f32.partialorder %v2817_v34, 8.507059e+37 }
 0x92e   :  { %v2823_v20 = vmul.f32 %v2801_v18, %v5410_v29  ;;  %v2811_v45 = vmul.f32 %v4250_v58, %v2810_v6 }
 0x930   :  { %v5454_v12 = vadd.f32 %v2824_v14, %v2823_v20  ;;  %v2812_v23 = vadd.f32 %v4250_v58, %v2811_v45 }
 0x932   :  { %4253 = vtanh.f32 %v5454_v12  ;;  %v2816_v36 = vsel %vm2815_vm10, %v4250_v58, %v2812_v23 }
 0x933   :  { %v2821_v32 = vsel %vm2818_vm11, %v2820_v1, %v2816_v36 }
 0x938   :  { %v4254_v7 = vpop.eup %4253 }
 0x939   :  { %v2827_v42 = vmul.f32 %v4254_v7, %v2821_v32 }
 0x93b   :  { %v2832_v39 = vpack.c.bf16 %v2827_v42, %v2827_v42 }
 0x93d   :  { %2841 = vmatmul.bf16.vlgmr.msrb.gmra.mxu0 %v2832_v39  ;;  %2854 = vmatmul.bf16.vlgmr.msrb.gmra.mxu1 %v2832_v39 }
 0x93e   :  { %2867 = vmatmul.bf16.vlgmr.msrb.gmra.mxu2 %v2832_v39  ;;  %2880 = vmatmul.bf16.vlgmr.msrb.gmra.mxu3 %v2832_v39 }
 0x93f   :  { %3081 = vmatpush.bf16.msrb.mxu0 %v4990_v59  ;;  %3094 = vmatpush.bf16.msrb.mxu1 %v4992_v17  ;;  %v5662_v59 = vld [vmem:[#allocation27_spill] sm:$0xff] }
 0x940   :  { %3107 = vmatpush.bf16.msrb.mxu2 %v5003_v22  ;;  %3120 = vmatpush.bf16.msrb.mxu3 %v5000_v13  ;;  %v1890_v17 = vadd.f32 %v5662_v59, %v5262_v41  ;;  %v5663_v13 = vld [vmem:[#allocation26_spill] sm:$0xff] }
 0x941   :  { %v1919_v22 = vadd.f32 %v5663_v13, %v5264_v55 }
 0x943   :  { %3082 = vmatpush.bf16.msrb.mxu0 %v5010_v4  ;;  %3095 = vmatpush.bf16.msrb.mxu1 %v5012_v30 }
 0x944   :  { %3108 = vmatpush.bf16.msrb.mxu2 %v5029_v24  ;;  %3121 = vmatpush.bf16.msrb.mxu3 %v5014_v54  ;;  %v5664_v24 = vld [vmem:[#allocation29_spill] sm:$0xff] }
 0x947   :  { %3083 = vmatpush.bf16.msrb.mxu0 %v5019_v56  ;;  %3096 = vmatpush.bf16.msrb.mxu1 %v5023_v38 }
 0x948   :  { %3109 = vmatpush.bf16.msrb.mxu2 %v5041_v62  ;;  %3122 = vmatpush.bf16.msrb.mxu3 %v5025_v28 }
 0x94b   :  { %3084 = vmatpush.bf16.msrb.mxu0 %v5032_v50  ;;  %3097 = vmatpush.bf16.msrb.mxu1 %v5036_v53  ;;  %v1977_v50 = vadd.f32 %v5664_v24, %v5272_v47 }
 0x94c   :  { %3110 = vmatpush.bf16.msrb.mxu2 %v5058_v10  ;;  %3123 = vmatpush.bf16.msrb.mxu3 %v5038_v60 }
 0x94f   :  { %3085 = vmatpush.bf16.msrb.mxu0 %v5046_v43  ;;  %3098 = vmatpush.bf16.msrb.mxu1 %v5052_v51 }
 0x950   :  { %3111 = vmatpush.bf16.msrb.mxu2 %v5073_v5  ;;  %3124 = vmatpush.bf16.msrb.mxu3 %v5054_v52 }
 0x953   :  { %3086 = vmatpush.bf16.msrb.mxu0 %v5062_v11  ;;  %3099 = vmatpush.bf16.msrb.mxu1 %v5066_v40 }
 0x954   :  { %3112 = vmatpush.bf16.msrb.mxu2 %v5096_v9  ;;  %3125 = vmatpush.bf16.msrb.mxu3 %v5068_v31  ;;  %v5665_v9 = vld [vmem:[#allocation28_spill] sm:$0xff] }
 0x957   :  { %3087 = vmatpush.bf16.msrb.mxu0 %v5081_v19  ;;  %3100 = vmatpush.bf16.msrb.mxu1 %v5090_v8 }
 0x958   :  { %3113 = vmatpush.bf16.msrb.mxu2 %v5115_v57  ;;  %3126 = vmatpush.bf16.msrb.mxu3 %v5099_v26  ;;  %v1948_v26 = vadd.f32 %v5665_v9, %v5648_v3 }
 0x95b   :  { %3088 = vmatpush.bf16.msrb.mxu0 %v5111_v16  ;;  %3101 = vmatpush.bf16.msrb.mxu1 %v5113_v33 }
 0x95c   :  { %3114 = vmatpush.bf16.msrb.mxu2 %v5134_v21  ;;  %3127 = vmatpush.bf16.msrb.mxu3 %v5125_v49 }
 0x9ba   :  { %v2842_v4 = vpop.f32.mrf.mxu0  ;;  %v2855_v30 = vpop.f32.mrf.mxu1 }
 0x9bb   :  { %v2885_v54 = vadd.f32 %v2842_v4, %v1890_v17  ;;  %v2886_v56 = vadd.f32 %v2855_v30, %v1919_v22 }
 0x9bd   :  { %v3857_v38 = vmul.f32 -1.442695, %v2885_v54  ;;  %v3858_v28 = vmul.f32 -1.442695, %v2886_v56 }
 0x9bf   :  { %4255 = vpow2.f32 %v3857_v38  ;;  %v5667_v38 = vld [vmem:[#allocation30_spill] sm:$0xff] }
 0x9c0   :  { %4257 = vpow2.f32 %v3858_v28  ;;  %v1922_v28 = vadd.f32 %v5667_v38, %v5264_v55 }
 0x9c1   :  { %v2868_v53 = vpop.f32.mrf.mxu2  ;;  %v2881_v60 = vpop.f32.mrf.mxu3 }
 0x9c2   :  { %v2888_v62 = vadd.f32 %v2881_v60, %v1977_v50  ;;  %v2844_v43 = vpop.f32.mrf.mxu0  ;;  %v2857_v51 = vpop.f32.mrf.mxu1  ;;  %v2887_v57 = vadd.f32 %v2868_v53, %v1948_v26 }
 0x9c3   :  { %v5668_v51 = vld [vmem:[#allocation12_spill] sm:$0xff] }
 0x9c4   :  { %v3859_v52 = vmul.f32 -1.442695, %v2888_v62 }
 0x9c5   :  { %v4256_v10 = vpop.eup %4255 }
 0x9c6   :  { %v4258_v11 = vpop.eup %4257  ;;  %v2892_v40 = vadd.f32 1.0, %v4256_v10  ;;  %4259 = vpow2.f32 %v3859_v52  ;;  %v1980_v52 = vadd.f32 %v5668_v51, %v5272_v47  ;;  %v5670_v51 = vld [vmem:[#allocation31_spill] sm:$0xff] }
 0x9c7   :  { %v2911_v31 = vadd.f32 1.0, %v4258_v11 }
 0x9c8   :  { %4261 = vrcp.f32 %v2892_v40  ;;  %v2904_v58 = vand.u32 2147483648, %v2892_v40  ;;  %v2902_v48 = vand.u32 2147483647, %v2892_v40  ;;  %vm2898_vm14 = vweird.f32 %v2892_v40 }
 0x9c9   :  { %4263 = vrcp.f32 %v2911_v31  ;;  %v2870_v5 = vpop.f32.mrf.mxu2  ;;  %v2883_v19 = vpop.f32.mrf.mxu3  ;;  %v2923_v0 = vand.u32 2147483648, %v2911_v31  ;;  %v2921_v61 = vand.u32 2147483647, %v2911_v31  ;;  %vm2917_vm15 = vweird.f32 %v2911_v31 }
 0x9ca   :  { %v2905_v63 = vor.u32 1.1754944e-38, %v2904_v58  ;;  %vm2903_vm2 = vcmp.eq.f32.partialorder %v2902_v48, 8.507059e+37 }
 0x9cb   :  { %v2924_v18 = vor.u32 1.1754944e-38, %v2923_v0  ;;  %vm2922_vm3 = vcmp.eq.f32.partialorder %v2921_v61, 8.507059e+37 }
 0x9cc   :  { %v4260_v8 = vpop.eup %4259 }
 0x9cd   :  { %v2931_v16 = vadd.f32 1.0, %v4260_v8 }
 0x9ce   :  { %v4262_v33 = vpop.eup %4261 }
 0x9cf   :  { %v4264_v49 = vpop.eup %4263  ;;  %v2894_v21 = vmul.f32 %v4262_v33, %v2892_v40  ;;  %4265 = vrcp.f32 %v2931_v16  ;;  %vm2899_vm12 = vweird.f32 %v4262_v33  ;;  %v2943_v39 = vand.u32 2147483648, %v2931_v16 }
 0x9d0   :  { %v2913_v29 = vmul.f32 %v4264_v49, %v2911_v31  ;;  %4267 = vtanh.f32 %v2887_v57  ;;  %vm2918_vm13 = vweird.f32 %v4264_v49  ;;  %vm2900_vm0 = vmor %vm2898_vm14, %vm2899_vm12  ;;  %vm2937_vm5 = vweird.f32 %v2931_v16 }
 0x9d1   :  { %v2895_v35 = vsub.f32 1.0, %v2894_v21  ;;  %vm2919_vm1 = vmor %vm2917_vm15, %vm2918_vm13  ;;  %v2941_v59 = vand.u32 2147483647, %v2931_v16  ;;  %v2944_v13 = vor.u32 1.1754944e-38, %v2943_v39  ;;  %v5669_v21 = vld [vmem:[#allocation11_spill] sm:$0xff] }
 0x9d2   :  { %v2914_v44 = vsub.f32 1.0, %v2913_v29  ;;  %v1951_v29 = vadd.f32 %v5669_v21, %v5648_v3 }
 0x9d3   :  { %v2896_v25 = vmul.f32 %v4262_v33, %v2895_v35  ;;  %vm2942_vm7 = vcmp.eq.f32.partialorder %v2941_v59, 8.507059e+37 }
 0x9d4   :  { %v2915_v46 = vmul.f32 %v4264_v49, %v2914_v44 }
 0x9d5   :  { %v4266_v2 = vpop.eup %4265  ;;  %v2897_v37 = vadd.f32 %v4262_v33, %v2896_v25 }
 0x9d6   :  { %v2916_v27 = vadd.f32 %v4264_v49, %v2915_v46  ;;  %v2933_v6 = vmul.f32 %v4266_v2, %v2931_v16  ;;  %v4268_v20 = vpop.eup %4267  ;;  %vm2938_vm4 = vweird.f32 %v4266_v2 }
 0x9d7   :  { %v2901_v14 = vsel %vm2900_vm0, %v4262_v33, %v2897_v37  ;;  %vm2939_vm6 = vmor %vm2937_vm5, %vm2938_vm4 }
 0x9d8   :  { %v2906_v45 = vsel %vm2903_vm2, %v2905_v63, %v2901_v14  ;;  %v2920_v23 = vsel %vm2919_vm1, %v4264_v49, %v2916_v27  ;;  %v2934_v15 = vsub.f32 1.0, %v2933_v6 }
 0x9d9   :  { %v2925_v34 = vsel %vm2922_vm3, %v2924_v18, %v2920_v23  ;;  %v2948_v36 = vmul.f32 %v4268_v20, %v2906_v45 }
 0x9da   :  { %v2947_v1 = vmul.f32 %v2925_v34, %v5454_v12  ;;  %v2935_v7 = vmul.f32 %v4266_v2, %v2934_v15  ;;  %v5666_v12 = vld [vmem:[#allocation32_spill] sm:$0xff] }
 0x9db   :  { %v1893_v56 = vadd.f32 %v5666_v12, %v5262_v41 }
 0x9dc   :  { %v5498_v32 = vadd.f32 %v2948_v36, %v2947_v1  ;;  %v2936_v42 = vadd.f32 %v4266_v2, %v2935_v7 }
 0x9de   :  { %4269 = vtanh.f32 %v5498_v32  ;;  %v2940_v17 = vsel %vm2939_vm6, %v4266_v2, %v2936_v42 }
 0x9df   :  { %v2945_v4 = vsel %vm2942_vm7, %v2944_v13, %v2940_v17 }
 0x9e4   :  { %v4270_v22 = vpop.eup %4269 }
 0x9e5   :  { %v2951_v30 = vmul.f32 %v4270_v22, %v2945_v4 }
 0x9e7   :  { %v2956_v54 = vpack.c.bf16 %v2951_v30, %v2951_v30 }
 0x9e9   :  { %2965 = vmatmul.bf16.vlgmr.msra.gmra.mxu0 %v2956_v54  ;;  %2978 = vmatmul.bf16.vlgmr.msra.gmra.mxu1 %v2956_v54 }
 0x9ea   :  { %2991 = vmatmul.bf16.vlgmr.msra.gmra.mxu2 %v2956_v54  ;;  %3004 = vmatmul.bf16.vlgmr.msra.gmra.mxu3 %v2956_v54 }
 0xa66   :  { %v2966_v24 = vpop.f32.mrf.mxu0  ;;  %v2979_v50 = vpop.f32.mrf.mxu1 }
 0xa67   :  { %v3009_v53 = vadd.f32 %v2966_v24, %v1893_v56  ;;  %v3010_v60 = vadd.f32 %v2979_v50, %v1922_v28 }
 0xa69   :  { %v3860_v62 = vmul.f32 -1.442695, %v3009_v53  ;;  %v3861_v43 = vmul.f32 -1.442695, %v3010_v60  ;;  %v4036_v60 = vld [vmem:[%s5556_s4 + $0x30] sm:$0xff] }
 0xa6b   :  { %4271 = vpow2.f32 %v3860_v62  ;;  %v4035_v62 = vld [vmem:[%s5556_s4 + $0x28] sm:$0xff] }
 0xa6c   :  { %4273 = vpow2.f32 %v3861_v43  ;;  %v4034_v43 = vld [vmem:[%s5556_s4 + $0x20] sm:$0xff] }
 0xa6d   :  { %v2992_v10 = vpop.f32.mrf.mxu2  ;;  %v3005_v11 = vpop.f32.mrf.mxu3 }
 0xa6e   :  { %v3012_v40 = vadd.f32 %v3005_v11, %v1980_v52  ;;  %v2968_v31 = vpop.f32.mrf.mxu0  ;;  %v2981_v5 = vpop.f32.mrf.mxu1  ;;  %v3011_v58 = vadd.f32 %v2992_v10, %v1951_v29  ;;  %v1895_v52 = vadd.f32 %v5670_v51, %v5262_v41  ;;  %v5671_v10 = vld [vmem:[#allocation33_spill] sm:$0xff]  ;;  %v5672_v41 = vld [vmem:[#allocation34_spill] sm:$0xff] }
 0xa6f   :  { %v1924_v11 = vadd.f32 %v5671_v10, %v5264_v55  ;;  %v1982_v55 = vadd.f32 %v5672_v41, %v5272_v47 }
 0xa70   :  { %v3862_v19 = vmul.f32 -1.442695, %v3012_v40 }
 0xa71   :  { %v4272_v8 = vpop.eup %4271 }
 0xa72   :  { %v4274_v9 = vpop.eup %4273  ;;  %v3016_v26 = vadd.f32 1.0, %v4272_v8  ;;  %4275 = vpow2.f32 %v3862_v19  ;;  %v4033_v8 = vld [vmem:[%s5556_s4 + $0x18] sm:$0xff] }
 0xa73   :  { %v3035_v16 = vadd.f32 1.0, %v4274_v9 }
 0xa74   :  { %4277 = vrcp.f32 %v3016_v26  ;;  %v3028_v2 = vand.u32 2147483648, %v3016_v26  ;;  %v3026_v27 = vand.u32 2147483647, %v3016_v26  ;;  %vm3022_vm10 = vweird.f32 %v3016_v26 }
 0xa75   :  { %4279 = vrcp.f32 %v3035_v16  ;;  %v2994_v33 = vpop.f32.mrf.mxu2  ;;  %v3007_v57 = vpop.f32.mrf.mxu3  ;;  %v3047_v37 = vand.u32 2147483648, %v3035_v16  ;;  %v3045_v18 = vand.u32 2147483647, %v3035_v16  ;;  %vm3041_vm11 = vweird.f32 %v3035_v16 }
 0xa76   :  { %v3029_v45 = vor.u32 1.1754944e-38, %v3028_v2  ;;  %vm3027_vm14 = vcmp.eq.f32.partialorder %v3026_v27, 8.507059e+37 }
 0xa77   :  { %v3048_v34 = vor.u32 1.1754944e-38, %v3047_v37  ;;  %vm3046_vm15 = vcmp.eq.f32.partialorder %v3045_v18, 8.507059e+37  ;;  %v5673_v37 = vld [vmem:[#allocation35_spill] sm:$0xff] }
 0xa78   :  { %v4276_v49 = vpop.eup %4275 }
 0xa79   :  { %v3055_v35 = vadd.f32 1.0, %v4276_v49  ;;  %v4031_v49 = vld [vmem:[%s5556_s4 + $0x8] sm:$0xff] }
 0xa7a   :  { %v4278_v44 = vpop.eup %4277 }
 0xa7b   :  { %v4280_v0 = vpop.eup %4279  ;;  %v3018_v25 = vmul.f32 %v4278_v44, %v3016_v26  ;;  %4281 = vrcp.f32 %v3055_v35  ;;  %vm3023_vm8 = vweird.f32 %v4278_v44  ;;  %v3067_v54 = vand.u32 2147483648, %v3055_v35 }
 0xa7c   :  { %v3037_v48 = vmul.f32 %v4280_v0, %v3035_v16  ;;  %4283 = vtanh.f32 %v3011_v58  ;;  %vm3042_vm9 = vweird.f32 %v4280_v0  ;;  %vm3024_vm12 = vmor %vm3022_vm10, %vm3023_vm8  ;;  %vm3061_vm1 = vweird.f32 %v3055_v35  ;;  %v4032_v16 = vld [vmem:[%s5556_s4 + $0x10] sm:$0xff] }
 0xa7d   :  { %v3019_v46 = vsub.f32 1.0, %v3018_v25  ;;  %vm3043_vm13 = vmor %vm3041_vm11, %vm3042_vm9  ;;  %v3065_v12 = vand.u32 2147483647, %v3055_v35  ;;  %v3068_v38 = vor.u32 1.1754944e-38, %v3067_v54 }
 0xa7e   :  { %v3038_v61 = vsub.f32 1.0, %v3037_v48 }
 0xa7f   :  { %v3020_v63 = vmul.f32 %v4278_v44, %v3019_v46  ;;  %vm3066_vm3 = vcmp.eq.f32.partialorder %v3065_v12, 8.507059e+37 }
 0xa80   :  { %v3039_v6 = vmul.f32 %v4280_v0, %v3038_v61 }
 0xa81   :  { %v4282_v14 = vpop.eup %4281  ;;  %v3021_v20 = vadd.f32 %v4278_v44, %v3020_v63  ;;  %v1953_v63 = vadd.f32 %v5673_v37, %v5648_v3 }
 0xa82   :  { %v3040_v23 = vadd.f32 %v4280_v0, %v3039_v6  ;;  %v3057_v15 = vmul.f32 %v4282_v14, %v3055_v35  ;;  %v4284_v1 = vpop.eup %4283  ;;  %vm3062_vm0 = vweird.f32 %v4282_v14 }
 0xa83   :  { %v3025_v36 = vsel %vm3024_vm12, %v4278_v44, %v3021_v20  ;;  %vm3063_vm2 = vmor %vm3061_vm1, %vm3062_vm0 }
 0xa84   :  { %v3030_v7 = vsel %vm3027_vm14, %v3029_v45, %v3025_v36  ;;  %v3044_v42 = vsel %vm3043_vm13, %v4280_v0, %v3040_v23  ;;  %v3058_v39 = vsub.f32 1.0, %v3057_v15  ;;  %v4030_v0 = vld [vmem:[%s5556_s4] sm:$0xff] }
 0xa85   :  { %v3049_v59 = vsel %vm3046_vm15, %v3048_v34, %v3044_v42  ;;  %v3072_v17 = vmul.f32 %v4284_v1, %v3030_v7 }
 0xa86   :  { %v3071_v13 = vmul.f32 %v3049_v59, %v5498_v32  ;;  %v3059_v22 = vmul.f32 %v4282_v14, %v3058_v39  ;;  %v4037_v32 = vld [vmem:[%s5556_s4 + $0x38] sm:$0xff] }
 0xa87   :  { %3270 = vmatpush.bf16.msra.mxu0 %v4037_v32 }
 0xa88   :  { %v5510_v4 = vadd.f32 %v3072_v17, %v3071_v13  ;;  %v3060_v30 = vadd.f32 %v4282_v14, %v3059_v22 }
 0xa8a   :  { %4285 = vtanh.f32 %v5510_v4  ;;  %v3064_v56 = vsel %vm3063_vm2, %v4282_v14, %v3060_v30 }
 0xa8b   :  { %v3069_v24 = vsel %vm3066_vm3, %v3068_v38, %v3064_v56  ;;  %3271 = vmatpush.bf16.msra.mxu0 %v4036_v60 }
 0xa8f   :  { %3272 = vmatpush.bf16.msra.mxu0 %v4035_v62 }
 0xa90   :  { %v4286_v28 = vpop.eup %4285 }
 0xa91   :  { %v3075_v50 = vmul.f32 %v4286_v28, %v3069_v24 }
 0xa93   :  { %v3080_v53 = vpack.c.bf16 %v3075_v50, %v3075_v50  ;;  %3273 = vmatpush.bf16.msra.mxu0 %v4034_v43 }
 0xa95   :  { %3089 = vmatmul.bf16.vlgmr.msrb.gmra.mxu0 %v3080_v53  ;;  %3102 = vmatmul.bf16.vlgmr.msrb.gmra.mxu1 %v3080_v53 }
 0xa96   :  { %3115 = vmatmul.bf16.vlgmr.msrb.gmra.mxu2 %v3080_v53  ;;  %3128 = vmatmul.bf16.vlgmr.msrb.gmra.mxu3 %v3080_v53 }
 0xa97   :  { %3274 = vmatpush.bf16.msra.mxu0 %v4033_v8 }
 0xa9b   :  { %3275 = vmatpush.bf16.msra.mxu0 %v4032_v16 }
 0xa9f   :  { %3276 = vmatpush.bf16.msra.mxu0 %v4031_v49 }
 0xaa3   :  { %3277 = vmatpush.bf16.msra.mxu0 %v4030_v0 }
 0xb12   :  { %v3090_v40 = vpop.f32.mrf.mxu0  ;;  %v3103_v31 = vpop.f32.mrf.mxu1 }
 0xb13   :  { %v3133_v5 = vadd.f32 %v3090_v40, %v1895_v52  ;;  %v3134_v19 = vadd.f32 %v3103_v31, %v1924_v11 }
 0xb15   :  { %v3863_v9 = vmul.f32 -1.442695, %v3133_v5  ;;  %v3864_v26 = vmul.f32 -1.442695, %v3134_v19 }
 0xb17   :  { %4287 = vpow2.f32 %v3863_v9 }
 0xb18   :  { %4289 = vpow2.f32 %v3864_v26 }
 0xb19   :  { %v3116_v33 = vpop.f32.mrf.mxu2  ;;  %v3129_v57 = vpop.f32.mrf.mxu3 }
 0xb1a   :  { %v3136_v21 = vadd.f32 %v3129_v57, %v1982_v55  ;;  %v3092_v29 = vpop.f32.mrf.mxu0  ;;  %v3105_v35 = vpop.f32.mrf.mxu1  ;;  %v3135_v18 = vadd.f32 %v3116_v33, %v1953_v63 }
 0xb1c   :  { %v3865_v44 = vmul.f32 -1.442695, %v3136_v21 }
 0xb1d   :  { %v4288_v58 = vpop.eup %4287 }
 0xb1e   :  { %v4290_v25 = vpop.eup %4289  ;;  %v3140_v47 = vadd.f32 1.0, %v4288_v58  ;;  %4291 = vpow2.f32 %v3865_v44 }
 0xb1f   :  { %v3159_v48 = vadd.f32 1.0, %v4290_v25 }
 0xb20   :  { %4293 = vrcp.f32 %v3140_v47  ;;  %v3152_v34 = vand.u32 2147483648, %v3140_v47  ;;  %v3150_v7 = vand.u32 2147483647, %v3140_v47  ;;  %vm3146_vm6 = vweird.f32 %v3140_v47 }
 0xb21   :  { %4295 = vrcp.f32 %v3159_v48  ;;  %v3118_v46 = vpop.f32.mrf.mxu2  ;;  %v3131_v61 = vpop.f32.mrf.mxu3  ;;  %v3171_v36 = vand.u32 2147483648, %v3159_v48  ;;  %v3169_v39 = vand.u32 2147483647, %v3159_v48  ;;  %vm3165_vm7 = vweird.f32 %v3159_v48 }
 0xb22   :  { %v3153_v17 = vor.u32 1.1754944e-38, %v3152_v34  ;;  %vm3151_vm10 = vcmp.eq.f32.partialorder %v3150_v7, 8.507059e+37 }
 0xb23   :  { %v3172_v30 = vor.u32 1.1754944e-38, %v3171_v36  ;;  %vm3170_vm11 = vcmp.eq.f32.partialorder %v3169_v39, 8.507059e+37 }
 0xb24   :  { %v4292_v2 = vpop.eup %4291 }
 0xb25   :  { %v3179_v27 = vadd.f32 1.0, %v4292_v2 }
 0xb26   :  { %v4294_v6 = vpop.eup %4293 }
 0xb27   :  { %v4296_v14 = vpop.eup %4295  ;;  %v3142_v20 = vmul.f32 %v4294_v6, %v3140_v47  ;;  %4297 = vrcp.f32 %v3179_v27  ;;  %vm3147_vm4 = vweird.f32 %v4294_v6  ;;  %v3191_v43 = vand.u32 2147483648, %v3179_v27 }
 0xb28   :  { %v3161_v45 = vmul.f32 %v4296_v14, %v3159_v48  ;;  %4299 = vtanh.f32 %v3135_v18  ;;  %vm3166_vm5 = vweird.f32 %v4296_v14  ;;  %vm3148_vm8 = vmor %vm3146_vm6, %vm3147_vm4  ;;  %vm3185_vm13 = vweird.f32 %v3179_v27 }
 0xb29   :  { %v3143_v23 = vsub.f32 1.0, %v3142_v20  ;;  %vm3167_vm9 = vmor %vm3165_vm7, %vm3166_vm5  ;;  %v3189_v51 = vand.u32 2147483647, %v3179_v27  ;;  %v3192_v10 = vor.u32 1.1754944e-38, %v3191_v43 }
 0xb2a   :  { %v3162_v15 = vsub.f32 1.0, %v3161_v45 }
 0xb2b   :  { %v3144_v1 = vmul.f32 %v4294_v6, %v3143_v23  ;;  %vm3190_vm15 = vcmp.eq.f32.partialorder %v3189_v51, 8.507059e+37 }
 0xb2c   :  { %v3163_v42 = vmul.f32 %v4296_v14, %v3162_v15 }
 0xb2d   :  { %v4298_v59 = vpop.eup %4297  ;;  %v3145_v3 = vadd.f32 %v4294_v6, %v3144_v1 }
 0xb2e   :  { %v3164_v13 = vadd.f32 %v4296_v14, %v3163_v42  ;;  %v3181_v22 = vmul.f32 %v4298_v59, %v3179_v27  ;;  %v4300_v12 = vpop.eup %4299  ;;  %vm3186_vm12 = vweird.f32 %v4298_v59 }
 0xb2f   :  { %v3149_v54 = vsel %vm3148_vm8, %v4294_v6, %v3145_v3  ;;  %vm3187_vm14 = vmor %vm3185_vm13, %vm3186_vm12 }
 0xb30   :  { %v3154_v56 = vsel %vm3151_vm10, %v3153_v17, %v3149_v54  ;;  %v3168_v38 = vsel %vm3167_vm9, %v4296_v14, %v3164_v13  ;;  %v3182_v28 = vsub.f32 1.0, %v3181_v22 }
 0xb31   :  { %v3173_v24 = vsel %vm3170_vm11, %v3172_v30, %v3168_v38  ;;  %v3196_v50 = vmul.f32 %v4300_v12, %v3154_v56 }
 0xb32   :  { %v3195_v53 = vmul.f32 %v3173_v24, %v5510_v4  ;;  %v3183_v32 = vmul.f32 %v4298_v59, %v3182_v28  ;;  %v4046_v4 = vld [vmem:[%s5557_s5] ss:$0 sm:$0xff] }
 0xb34   :  { %v3197_v60 = vadd.f32 %v3196_v50, %v3195_v53  ;;  %v3184_v62 = vadd.f32 %v4298_v59, %v3183_v32 }
 0xb36   :  { %4301 = vtanh.f32 %v3197_v60  ;;  %v3188_v52 = vsel %vm3187_vm14, %v4298_v59, %v3184_v62 }
 0xb37   :  { %v3193_v40 = vsel %vm3190_vm15, %v3192_v10, %v3188_v52 }
 0xb3c   :  { %v4302_v11 = vpop.eup %4301 }
 0xb3d   :  { %v3199_v31 = vmul.f32 %v4302_v11, %v3193_v40 }
 0xb3f   :  { %v3200_v5 = vmax.f32 %v3199_v31, 0.0 }
 0xb41   :  { %v3201_v19 = vpack.c.bf16 %v3200_v5, %v3200_v5 }
 0xb43   :  { %3278 = vmatmul.bf16.vlgmr.msra.gmra.mxu0 %v3201_v19 }
 0xbc0   :  { %v3279_v8 = vpop.f32.mrf.mxu0 }
 0xbc1   :  { %v3280_v9 = vadd.f32 %v4046_v4, %v3279_v8 }
 0xbc3   :  { %3283 = vst [vmem:[%s5558_s6] sm:$0xff] %v3280_v9 }
 0xbc8   :  { %v3281_v26 = vpop.f32.mrf.mxu0 }
 0xbc9   :  { %3288 = vsyncpa [#allocation5], 1 }
 0xbca   :  { %3289 = vsyncpa [#allocation7], 1 }

</bundles_post_ra>
